<compile_context>
chip_gen: v7x
topology: tpu7x:2x2x1
jax: 0.10.0
libtpu: 0.0.40
codegen_flags: <defaults>
</compile_context>

<pallas_src>
import jax
import jax.numpy as jnp
from jax.experimental import pallas as pl
from jax.experimental.pallas import tpu as pltpu

# ---- model hyperparameters (match PyTorch defaults) ----
L_XYZ = 10
L_DIR = 4
XYZ_W = 2 * L_XYZ * 3          # 60
DIR_W = 2 * L_DIR * 3          # 24
CH = 128                       # hidden channels
HEAD_ROWS = 8                  # fused head rows: [density(1), rgb(3), zero-pad(4)]


def _round_up(x, m):
    return ((x + m - 1) // m) * m


def _softplus(x):
    # PyTorch Softplus(beta=1, threshold=20): x if x > 20 else log(1 + exp(x))
    return jnp.where(x > 20.0, x, jnp.log1p(jnp.exp(jnp.minimum(x, 20.0))))


def nerf_kernel(xyz_ref, dir_ref,
                w1x_ref, w1d_ref, b1_ref,
                w2_ref, b2_ref, w3_ref, b3_ref, w4_ref, b4_ref,
                whead_ref, bhead_ref,
                out_ref):
    # ---- trunk: 4 x (Linear + ReLU); bf16 operands, f32 accumulation ----
    h = (jnp.dot(xyz_ref[...], w1x_ref[...], preferred_element_type=jnp.float32)
         + jnp.dot(dir_ref[...], w1d_ref[...], preferred_element_type=jnp.float32)
         + b1_ref[...])
    h = jnp.maximum(h, 0.0).astype(jnp.bfloat16)

    h = jnp.dot(h, w2_ref[...], preferred_element_type=jnp.float32) + b2_ref[...]
    h = jnp.maximum(h, 0.0).astype(jnp.bfloat16)

    h = jnp.dot(h, w3_ref[...], preferred_element_type=jnp.float32) + b3_ref[...]
    h = jnp.maximum(h, 0.0).astype(jnp.bfloat16)

    h = jnp.dot(h, w4_ref[...], preferred_element_type=jnp.float32) + b4_ref[...]
    h = jnp.maximum(h, 0.0).astype(jnp.bfloat16)                 # (TM, CH)

    # ---- fused density+rgb head, lane-dense output ----
    # whead: (HEAD_ROWS, CH), h: (TM, CH); contract CH with CH -> (HEAD_ROWS, TM)
    z = jax.lax.dot_general(
        whead_ref[...], h,
        dimension_numbers=(((1,), (1,)), ((), ())),
        preferred_element_type=jnp.float32)                      # (HEAD_ROWS, TM)
    z = z + bhead_ref[...]                                       # (HEAD_ROWS, 1) bcast

    # row 0 -> softplus (density), rows 1..3 -> sigmoid (rgb), rows 4..7 unused
    row = jax.lax.broadcasted_iota(jnp.int32, z.shape, 0)
    out_ref[...] = jnp.where(row == 0, _softplus(z), jax.nn.sigmoid(z))


def nerf_forward(xyz, directions, params, *, tile_m=1024):
    """xyz: (N, 60) f32, directions: (N, 24) f32 -> (s: (N,1), rgb: (N,3))."""
    assert tile_m % 8 == 0
    N = xyz.shape[0]
    tm = min(tile_m, _round_up(N, 8))
    Np = _round_up(N, tm)
    if Np != N:
        xyz = jnp.pad(xyz, ((0, Np - N), (0, 0)))
        directions = jnp.pad(directions, ((0, Np - N), (0, 0)))

    (w1x, w1d, b1, w2, b2, w3, b3, w4, b4, whead, bhead) = params

    # bf16 streaming inputs + bf16 weights; biases stay f32.
    xyz_bf = xyz.astype(jnp.bfloat16)
    dir_bf = directions.astype(jnp.bfloat16)
    bf = lambda w: w.astype(jnp.bfloat16)

    full = lambda i: (0, 0)     # weights / biases: whole array resident
    rows = lambda i: (i, 0)     # inputs: tiled along the ray (sublane) axis
    cols = lambda i: (0, i)     # output: rays on the lane axis

    grid_spec = pltpu.PrefetchScalarGridSpec(
        num_scalar_prefetch=0,
        grid=(Np // tm,),
        in_specs=[
            pl.BlockSpec((tm, XYZ_W), rows),
            pl.BlockSpec((tm, DIR_W), rows),
            pl.BlockSpec((XYZ_W, CH), full),
            pl.BlockSpec((DIR_W, CH), full),
            pl.BlockSpec((1, CH), full),
            pl.BlockSpec((CH, CH), full), pl.BlockSpec((1, CH), full),
            pl.BlockSpec((CH, CH), full), pl.BlockSpec((1, CH), full),
            pl.BlockSpec((CH, CH), full), pl.BlockSpec((1, CH), full),
            pl.BlockSpec((HEAD_ROWS, CH), full),
            pl.BlockSpec((HEAD_ROWS, 1), full),
        ],
        out_specs=pl.BlockSpec((HEAD_ROWS, tm), cols),
    )

    out = pl.pallas_call(
        nerf_kernel,
        out_shape=jax.ShapeDtypeStruct((HEAD_ROWS, Np), jnp.float32),
        grid_spec=grid_spec,
        compiler_params=pltpu.CompilerParams(
            dimension_semantics=("parallel",)),
    )(xyz_bf, dir_bf,
      bf(w1x), bf(w1d), b1,
      bf(w2), b2, bf(w3), b3, bf(w4), b4,
      bf(whead), bhead)

    s = out[0:1, :N].T          # (N, 1)
    rgb = out[1:4, :N].T        # (N, 3)
    return s, rgb


def init_params(key):
    """Deterministic synthetic parameters (PyTorch Linear semantics).

    Hidden-layer weights are stored transposed (in, out); the fused head is
    stored row-major (out, in) = (HEAD_ROWS, CH) with rows [density, r, g, b, 0...].
    """
    ks = jax.random.split(key, 13)
    scale = 0.05

    def w(k, shape):
        return scale * jax.random.normal(k, shape, jnp.float32)

    w1x = w(ks[0], (XYZ_W, CH))
    w1d = w(ks[1], (DIR_W, CH))
    b1 = w(ks[2], (1, CH))
    w2 = w(ks[3], (CH, CH)); b2 = w(ks[4], (1, CH))
    w3 = w(ks[5], (CH, CH)); b3 = w(ks[6], (1, CH))
    w4 = w(ks[7], (CH, CH)); b4 = w(ks[8], (1, CH))
    wd = w(ks[9], (1, CH)); bd = w(ks[10], (1, 1))
    wc = w(ks[11], (3, CH)); bc = w(ks[12], (3, 1))

    whead = jnp.concatenate(
        [wd, wc, jnp.zeros((HEAD_ROWS - 4, CH), jnp.float32)], axis=0)
    bhead = jnp.concatenate(
        [bd, bc, jnp.zeros((HEAD_ROWS - 4, 1), jnp.float32)], axis=0)
    return (w1x, w1d, b1, w2, b2, w3, b3, w4, b4, whead, bhead)


def nerf_reference(xyz, directions, params):
    """Pure-JAX f32 reference mirroring the PyTorch forward."""
    (w1x, w1d, b1, w2, b2, w3, b3, w4, b4, whead, bhead) = params
    h = jnp.maximum(xyz @ w1x + directions @ w1d + b1, 0.0)
    h = jnp.maximum(h @ w2 + b2, 0.0)
    h = jnp.maximum(h @ w3 + b3, 0.0)
    h = jnp.maximum(h @ w4 + b4, 0.0)
    z = h @ whead[:4].T + bhead[:4, 0]
    s = _softplus(z[:, 0:1])
    rgb = jax.nn.sigmoid(z[:, 1:4])
    return s, rgb


if __name__ == "__main__":
    key = jax.random.PRNGKey(0)
    k_p, k_xyz, k_dir = jax.random.split(key, 3)

    # Small demo: 2048 rays -> grid of 2 tiles of 1024 rows (keeps both v7x cores busy).
    N = 2048
    params = init_params(k_p)
    xyz = jax.random.normal(k_xyz, (N, XYZ_W), jnp.float32)
    directions = jax.random.normal(k_dir, (N, DIR_W), jnp.float32)

    s, rgb = nerf_forward(xyz, directions, params, tile_m=1024)
    jax.block_until_ready((s, rgb))

    s_ref, rgb_ref = nerf_reference(xyz, directions, params)
    assert s.shape == (N, 1) and rgb.shape == (N, 3)
    # bf16 matmuls (f32 accumulation) -> relaxed tolerance vs f32 reference.
    assert jnp.allclose(s, s_ref, atol=2e-2, rtol=2e-2), \
        float(jnp.max(jnp.abs(s - s_ref)))
    assert jnp.allclose(rgb, rgb_ref, atol=2e-2, rtol=2e-2), \
        float(jnp.max(jnp.abs(rgb - rgb_ref)))

    print("KERNEL_OK")
</pallas_src>

<mosaic_0001>
module attributes {stable_mosaic.version = 11 : i64} {
  func.func @nerf_kernel(%arg0: i32, %arg1: memref<1024x60xbf16, #tpu.memory_space<vmem>>, %arg2: memref<1024x24xbf16, #tpu.memory_space<vmem>>, %arg3: memref<60x128xbf16, #tpu.memory_space<vmem>>, %arg4: memref<24x128xbf16, #tpu.memory_space<vmem>>, %arg5: memref<1x128xf32, #tpu.memory_space<vmem>>, %arg6: memref<128x128xbf16, #tpu.memory_space<vmem>>, %arg7: memref<1x128xf32, #tpu.memory_space<vmem>>, %arg8: memref<128x128xbf16, #tpu.memory_space<vmem>>, %arg9: memref<1x128xf32, #tpu.memory_space<vmem>>, %arg10: memref<128x128xbf16, #tpu.memory_space<vmem>>, %arg11: memref<1x128xf32, #tpu.memory_space<vmem>>, %arg12: memref<8x128xbf16, #tpu.memory_space<vmem>>, %arg13: memref<8x1xf32, #tpu.memory_space<vmem>>, %arg14: memref<8x1024xf32, #tpu.memory_space<vmem>>) attributes {dimension_semantics = [#tpu.dimension_semantics<parallel>], iteration_bounds = array<i64: 2>, scalar_prefetch = 0 : i64, scratch_operands = 0 : i64, tpu.core_type = #tpu.core_type<tc>, window_params = [{transform_indices = @transform_0, window_bounds = array<i64: 1024, 60>}, {transform_indices = @transform_1, window_bounds = array<i64: 1024, 24>}, {pipeline_mode = #tpu.pipeline_mode<synchronous>, transform_indices = @transform_2, window_bounds = array<i64: 60, 128>}, {pipeline_mode = #tpu.pipeline_mode<synchronous>, transform_indices = @transform_3, window_bounds = array<i64: 24, 128>}, {pipeline_mode = #tpu.pipeline_mode<synchronous>, transform_indices = @transform_4, window_bounds = array<i64: 1, 128>}, {pipeline_mode = #tpu.pipeline_mode<synchronous>, transform_indices = @transform_5, window_bounds = array<i64: 128, 128>}, {pipeline_mode = #tpu.pipeline_mode<synchronous>, transform_indices = @transform_6, window_bounds = array<i64: 1, 128>}, {pipeline_mode = #tpu.pipeline_mode<synchronous>, transform_indices = @transform_7, window_bounds = array<i64: 128, 128>}, {pipeline_mode = #tpu.pipeline_mode<synchronous>, transform_indices = @transform_8, window_bounds = array<i64: 1, 128>}, {pipeline_mode = #tpu.pipeline_mode<synchronous>, transform_indices = @transform_9, window_bounds = array<i64: 128, 128>}, {pipeline_mode = #tpu.pipeline_mode<synchronous>, transform_indices = @transform_10, window_bounds = array<i64: 1, 128>}, {pipeline_mode = #tpu.pipeline_mode<synchronous>, transform_indices = @transform_11, window_bounds = array<i64: 8, 128>}, {pipeline_mode = #tpu.pipeline_mode<synchronous>, transform_indices = @transform_12, window_bounds = array<i64: 8, 1>}, {transform_indices = @transform_13, window_bounds = array<i64: 8, 1024>}]} {
    %c0 = arith.constant 0 : index
    %c0_0 = arith.constant 0 : index
    %0 = vector.load %arg1[%c0, %c0_0] : memref<1024x60xbf16, #tpu.memory_space<vmem>>, vector<1024x60xbf16>
    %c0_1 = arith.constant 0 : index
    %c0_2 = arith.constant 0 : index
    %1 = vector.load %arg3[%c0_1, %c0_2] : memref<60x128xbf16, #tpu.memory_space<vmem>>, vector<60x128xbf16>
    %cst = arith.constant dense<0.000000e+00> : vector<1024x128xf32>
    %2 = tpu.matmul %0, %1, %cst {dimension_numbers = #tpu.dot_dimension_numbers<[1], [0], [0], [1], [0, 0, 1, 1], [], []>} : vector<1024x60xbf16>, vector<60x128xbf16>, vector<1024x128xf32> -> vector<1024x128xf32>
    %c0_3 = arith.constant 0 : index
    %c0_4 = arith.constant 0 : index
    %3 = vector.load %arg2[%c0_3, %c0_4] : memref<1024x24xbf16, #tpu.memory_space<vmem>>, vector<1024x24xbf16>
    %c0_5 = arith.constant 0 : index
    %c0_6 = arith.constant 0 : index
    %4 = vector.load %arg4[%c0_5, %c0_6] : memref<24x128xbf16, #tpu.memory_space<vmem>>, vector<24x128xbf16>
    %cst_7 = arith.constant dense<0.000000e+00> : vector<1024x128xf32>
    %5 = tpu.matmul %3, %4, %cst_7 {dimension_numbers = #tpu.dot_dimension_numbers<[1], [0], [0], [1], [0, 0, 1, 1], [], []>} : vector<1024x24xbf16>, vector<24x128xbf16>, vector<1024x128xf32> -> vector<1024x128xf32>
    %6 = arith.addf %2, %5 : vector<1024x128xf32>
    %c0_8 = arith.constant 0 : index
    %c0_9 = arith.constant 0 : index
    %7 = vector.load %arg5[%c0_8, %c0_9] : memref<1x128xf32, #tpu.memory_space<vmem>>, vector<1x128xf32>
    %8 = vector.broadcast %7 : vector<1x128xf32> to vector<1024x128xf32>
    %9 = arith.addf %6, %8 : vector<1024x128xf32>
    %cst_10 = arith.constant 0.000000e+00 : f32
    %10 = vector.broadcast %cst_10 : f32 to vector<1024x128xf32>
    %11 = arith.maximumf %9, %10 : vector<1024x128xf32>
    %12 = arith.truncf %11 : vector<1024x128xf32> to vector<1024x128xbf16>
    %c0_11 = arith.constant 0 : index
    %c0_12 = arith.constant 0 : index
    %13 = vector.load %arg6[%c0_11, %c0_12] : memref<128x128xbf16, #tpu.memory_space<vmem>>, vector<128x128xbf16>
    %cst_13 = arith.constant dense<0.000000e+00> : vector<1024x128xf32>
    %14 = tpu.matmul %12, %13, %cst_13 {dimension_numbers = #tpu.dot_dimension_numbers<[1], [0], [0], [1], [0, 0, 1, 1], [], []>} : vector<1024x128xbf16>, vector<128x128xbf16>, vector<1024x128xf32> -> vector<1024x128xf32>
    %c0_14 = arith.constant 0 : index
    %c0_15 = arith.constant 0 : index
    %15 = vector.load %arg7[%c0_14, %c0_15] : memref<1x128xf32, #tpu.memory_space<vmem>>, vector<1x128xf32>
    %16 = vector.broadcast %15 : vector<1x128xf32> to vector<1024x128xf32>
    %17 = arith.addf %14, %16 : vector<1024x128xf32>
    %cst_16 = arith.constant 0.000000e+00 : f32
    %18 = vector.broadcast %cst_16 : f32 to vector<1024x128xf32>
    %19 = arith.maximumf %17, %18 : vector<1024x128xf32>
    %20 = arith.truncf %19 : vector<1024x128xf32> to vector<1024x128xbf16>
    %c0_17 = arith.constant 0 : index
    %c0_18 = arith.constant 0 : index
    %21 = vector.load %arg8[%c0_17, %c0_18] : memref<128x128xbf16, #tpu.memory_space<vmem>>, vector<128x128xbf16>
    %cst_19 = arith.constant dense<0.000000e+00> : vector<1024x128xf32>
    %22 = tpu.matmul %20, %21, %cst_19 {dimension_numbers = #tpu.dot_dimension_numbers<[1], [0], [0], [1], [0, 0, 1, 1], [], []>} : vector<1024x128xbf16>, vector<128x128xbf16>, vector<1024x128xf32> -> vector<1024x128xf32>
    %c0_20 = arith.constant 0 : index
    %c0_21 = arith.constant 0 : index
    %23 = vector.load %arg9[%c0_20, %c0_21] : memref<1x128xf32, #tpu.memory_space<vmem>>, vector<1x128xf32>
    %24 = vector.broadcast %23 : vector<1x128xf32> to vector<1024x128xf32>
    %25 = arith.addf %22, %24 : vector<1024x128xf32>
    %cst_22 = arith.constant 0.000000e+00 : f32
    %26 = vector.broadcast %cst_22 : f32 to vector<1024x128xf32>
    %27 = arith.maximumf %25, %26 : vector<1024x128xf32>
    %28 = arith.truncf %27 : vector<1024x128xf32> to vector<1024x128xbf16>
    %c0_23 = arith.constant 0 : index
    %c0_24 = arith.constant 0 : index
    %29 = vector.load %arg10[%c0_23, %c0_24] : memref<128x128xbf16, #tpu.memory_space<vmem>>, vector<128x128xbf16>
    %cst_25 = arith.constant dense<0.000000e+00> : vector<1024x128xf32>
    %30 = tpu.matmul %28, %29, %cst_25 {dimension_numbers = #tpu.dot_dimension_numbers<[1], [0], [0], [1], [0, 0, 1, 1], [], []>} : vector<1024x128xbf16>, vector<128x128xbf16>, vector<1024x128xf32> -> vector<1024x128xf32>
    %c0_26 = arith.constant 0 : index
    %c0_27 = arith.constant 0 : index
    %31 = vector.load %arg11[%c0_26, %c0_27] : memref<1x128xf32, #tpu.memory_space<vmem>>, vector<1x128xf32>
    %32 = vector.broadcast %31 : vector<1x128xf32> to vector<1024x128xf32>
    %33 = arith.addf %30, %32 : vector<1024x128xf32>
    %cst_28 = arith.constant 0.000000e+00 : f32
    %34 = vector.broadcast %cst_28 : f32 to vector<1024x128xf32>
    %35 = arith.maximumf %33, %34 : vector<1024x128xf32>
    %36 = arith.truncf %35 : vector<1024x128xf32> to vector<1024x128xbf16>
    %c0_29 = arith.constant 0 : index
    %c0_30 = arith.constant 0 : index
    %37 = vector.load %arg12[%c0_29, %c0_30] : memref<8x128xbf16, #tpu.memory_space<vmem>>, vector<8x128xbf16>
    %cst_31 = arith.constant dense<0.000000e+00> : vector<8x1024xf32>
    %38 = tpu.matmul %37, %36, %cst_31 {dimension_numbers = #tpu.dot_dimension_numbers<[1], [1], [0], [0], [0, 0, 1, 0], [], []>} : vector<8x128xbf16>, vector<1024x128xbf16>, vector<8x1024xf32> -> vector<8x1024xf32>
    %c0_32 = arith.constant 0 : index
    %c0_33 = arith.constant 0 : index
    %39 = vector.load %arg13[%c0_32, %c0_33] : memref<8x1xf32, #tpu.memory_space<vmem>>, vector<8x1xf32>
    %40 = vector.broadcast %39 : vector<8x1xf32> to vector<8x1024xf32>
    %41 = arith.addf %38, %40 : vector<8x1024xf32>
    %42 = tpu.iota {dimensions = array<i32: 0>} : vector<8x1024xi32>
    %c0_i32 = arith.constant 0 : i32
    %43 = vector.broadcast %c0_i32 : i32 to vector<8x1024xi32>
    %44 = arith.cmpi eq, %42, %43 : vector<8x1024xi32>
    %cst_34 = arith.constant 2.000000e+01 : f32
    %45 = vector.broadcast %cst_34 : f32 to vector<8x1024xf32>
    %46 = arith.cmpf ogt, %41, %45 : vector<8x1024xf32>
    %cst_35 = arith.constant 2.000000e+01 : f32
    %47 = vector.broadcast %cst_35 : f32 to vector<8x1024xf32>
    %48 = arith.minimumf %41, %47 : vector<8x1024xf32>
    %49 = math.exp %48 : vector<8x1024xf32>
    %50 = math.log1p %49 : vector<8x1024xf32>
    %51 = arith.select %46, %41, %50 : vector<8x1024xi1>, vector<8x1024xf32>
    %52 = arith.negf %41 : vector<8x1024xf32>
    %53 = math.exp %52 : vector<8x1024xf32>
    %cst_36 = arith.constant 1.000000e+00 : f32
    %54 = vector.broadcast %cst_36 : f32 to vector<8x1024xf32>
    %55 = arith.addf %54, %53 : vector<8x1024xf32>
    %56 = arith.divf %54, %55 : vector<8x1024xf32>
    %57 = arith.select %44, %51, %56 : vector<8x1024xi1>, vector<8x1024xf32>
    %c0_37 = arith.constant 0 : index
    %c0_38 = arith.constant 0 : index
    %58 = vector.load %arg14[%c0_37, %c0_38] : memref<8x1024xf32, #tpu.memory_space<vmem>>, vector<8x1024xf32>
    tpu.vector_store %arg14[%c0_37, %c0_38], %57 {strides = array<i32>} : memref<8x1024xf32, #tpu.memory_space<vmem>>, vector<8x1024xf32>,
    return
  }
  func.func @transform_0(%arg0: i32) -> (i32, i32) {
    %c0_i32 = arith.constant 0 : i32
    %c0_i32_0 = arith.constant 0 : i32
    return %arg0, %c0_i32 : i32, i32
  }
  func.func @transform_1(%arg0: i32) -> (i32, i32) {
    %c0_i32 = arith.constant 0 : i32
    %c0_i32_0 = arith.constant 0 : i32
    return %arg0, %c0_i32 : i32, i32
  }
  func.func @transform_2(%arg0: i32) -> (i32, i32) {
    %c0_i32 = arith.constant 0 : i32
    %c0_i32_0 = arith.constant 0 : i32
    %c0_i32_1 = arith.constant 0 : i32
    return %c0_i32, %c0_i32_0 : i32, i32
  }
  func.func @transform_3(%arg0: i32) -> (i32, i32) {
    %c0_i32 = arith.constant 0 : i32
    %c0_i32_0 = arith.constant 0 : i32
    %c0_i32_1 = arith.constant 0 : i32
    return %c0_i32, %c0_i32_0 : i32, i32
  }
  func.func @transform_4(%arg0: i32) -> (i32, i32) {
    %c0_i32 = arith.constant 0 : i32
    %c0_i32_0 = arith.constant 0 : i32
    %c0_i32_1 = arith.constant 0 : i32
    return %c0_i32, %c0_i32_0 : i32, i32
  }
  func.func @transform_5(%arg0: i32) -> (i32, i32) {
    %c0_i32 = arith.constant 0 : i32
    %c0_i32_0 = arith.constant 0 : i32
    %c0_i32_1 = arith.constant 0 : i32
    return %c0_i32, %c0_i32_0 : i32, i32
  }
  func.func @transform_6(%arg0: i32) -> (i32, i32) {
    %c0_i32 = arith.constant 0 : i32
    %c0_i32_0 = arith.constant 0 : i32
    %c0_i32_1 = arith.constant 0 : i32
    return %c0_i32, %c0_i32_0 : i32, i32
  }
  func.func @transform_7(%arg0: i32) -> (i32, i32) {
    %c0_i32 = arith.constant 0 : i32
    %c0_i32_0 = arith.constant 0 : i32
    %c0_i32_1 = arith.constant 0 : i32
    return %c0_i32, %c0_i32_0 : i32, i32
  }
  func.func @transform_8(%arg0: i32) -> (i32, i32) {
    %c0_i32 = arith.constant 0 : i32
    %c0_i32_0 = arith.constant 0 : i32
    %c0_i32_1 = arith.constant 0 : i32
    return %c0_i32, %c0_i32_0 : i32, i32
  }
  func.func @transform_9(%arg0: i32) -> (i32, i32) {
    %c0_i32 = arith.constant 0 : i32
    %c0_i32_0 = arith.constant 0 : i32
    %c0_i32_1 = arith.constant 0 : i32
    return %c0_i32, %c0_i32_0 : i32, i32
  }
  func.func @transform_10(%arg0: i32) -> (i32, i32) {
    %c0_i32 = arith.constant 0 : i32
    %c0_i32_0 = arith.constant 0 : i32
    %c0_i32_1 = arith.constant 0 : i32
    return %c0_i32, %c0_i32_0 : i32, i32
  }
  func.func @transform_11(%arg0: i32) -> (i32, i32) {
    %c0_i32 = arith.constant 0 : i32
    %c0_i32_0 = arith.constant 0 : i32
    %c0_i32_1 = arith.constant 0 : i32
    return %c0_i32, %c0_i32_0 : i32, i32
  }
  func.func @transform_12(%arg0: i32) -> (i32, i32) {
    %c0_i32 = arith.constant 0 : i32
    %c0_i32_0 = arith.constant 0 : i32
    %c0_i32_1 = arith.constant 0 : i32
    return %c0_i32, %c0_i32_0 : i32, i32
  }
  func.func @transform_13(%arg0: i32) -> (i32, i32) {
    %c0_i32 = arith.constant 0 : i32
    %c0_i32_0 = arith.constant 0 : i32
    return %c0_i32, %arg0 : i32, i32
  }
}

</mosaic_0001>

<bundles_post_ra>
// kernel: tpu_custom_call.1
= control target key start
LH: loop header
LB: loop body
LE: loop exit
PB: predicated region body
PF: predicated region fallthrough
CT: control target
= control target key end

     0   :  { %s9347_s0 = inlined_call_operand.vmem [shape: bf16[2048,60], index: 0, kind: input, shape index: {}]   ;;  %s9348_s1 = inlined_call_operand.vmem [shape: bf16[2048,24], index: 1, kind: input, shape index: {}]   ;;  %s9349_s2 = inlined_call_operand.vmem [shape: bf16[60,128], index: 2, kind: input, shape index: {}]   ;;  %s9350_s3 = inlined_call_operand.vmem [shape: bf16[24,128], index: 3, kind: input, shape index: {}]   ;;  %s9351_s4 = inlined_call_operand.vmem [shape: f32[1,128], index: 4, kind: input, shape index: {}]   ;;  %s9352_s5 = inlined_call_operand.vmem [shape: bf16[128,128], index: 5, kind: input, shape index: {}]   ;;  %s9353_s6 = inlined_call_operand.vmem [shape: f32[1,128], index: 6, kind: input, shape index: {}]   ;;  %s9354_s7 = inlined_call_operand.vmem [shape: bf16[128,128], index: 7, kind: input, shape index: {}]   ;;  %s9355_s8 = inlined_call_operand.vmem [shape: f32[1,128], index: 8, kind: input, shape index: {}]   ;;  %s9356_s9 = inlined_call_operand.vmem [shape: bf16[128,128], index: 9, kind: input, shape index: {}]   ;;  %s9357_s10 = inlined_call_operand.vmem [shape: f32[1,128], index: 10, kind: input, shape index: {}]   ;;  %s9358_s11 = inlined_call_operand.vmem [shape: bf16[8,128], index: 11, kind: input, shape index: {}]   ;;  %s9359_s12 = inlined_call_operand.vmem [shape: f32[8,1], index: 12, kind: input, shape index: {}]   ;;  %s9360_s13 = inlined_call_operand.hbm [shape: f32[8,2048], index: 13, kind: output, shape index: {}]  }
   0x1   :  { %9361 = sst [smem:[#allocation5_spill]] %s9347_s0 }
   0x2   :  { %9362 = sst [smem:[#allocation6_spill]] %s9348_s1 }
   0x3   :  { %18 = vsyncpa [#allocation3], 0 }
   0x4   :  { %20 = vsyncpa [#allocation3 + $0x1], 0  ;;  %s8044_s25 = smov 0   ;;  %s8046_s26 = smov 0  }
   0x5   :  { %s8048_s27 = smov 0   ;;  %s8050_s28 = smov 0  }
   0x6 LB: > { %s8065_s29 = sadd.s32 4294967295, %s7970_s28   ;;  %s6075_s30 = sadd.s32 4294967294, %s7970_s28   ;;  %s7970_s28 = sphi %s8050_s28, %s9370_s28   ;;  %s7966_s27 = sphi %s8048_s27, %s9369_s27   ;;  %s7962_s26 = sphi %s8046_s26, %s9368_s26   ;;  %s7958_s25 = sphi %s8044_s25, %s9367_s25  }
   0x7   : > { %s8069_s14 = sadd.s32 1, %s7970_s28   ;;  %s316_s15 = sadd.s32 1, %s7966_s27 }
   0x8   : > { %s313_s16 = ssub.s32 %s7970_s28, %s8069_s14  ;;  %p326_p0 = scmp.ne.s32.totalorder %s7966_s27, %s7962_s26 }
   0x9   : > { %p314_p1 = scmp.eq.s32.totalorder %s313_s16, 0  ;;  %p327_p2 = scmp.eq.s32.totalorder %s8065_s29, 1 }
   0xa   : > { %p332_p3 = scmp.ne.s32.totalorder %s7962_s26, %s7958_s25  ;;  %p333_p4 = scmp.eq.s32.totalorder %s6075_s30, 1 }
   0xb   : > { %s8080_s17 = scalar_select %p314_p1, %s7966_s27, %s316_s15  }
   0xc   : > { %p8082_p5 = por %p327_p2, %p326_p0  ;;  %p8086_p6 = por %p333_p4, %p332_p3 }
   0xd   : > { %p6078_p7 = scmp.ge.s32.totalorder %s7970_s28, 1  ;;  %p402_p8 = scmp.lt.s32.totalorder %s7970_s28, 3 }
   0xf   : > { %p403_p9 = pnand %p6078_p7, %p402_p8 }
  0x10   : > { %v7681_v0 = vld [vmem:[%s9350_s3] sm:$0xff] (!%p403_p9)   ;;  %v7682_v1 = vld [vmem:[%s9350_s3 + $0x8] ss:$0 sps:$4 sm:$0xff] (!%p403_p9)   ;;  %vm1254_vm0 = vcmask (!%p403_p9), 1043456   ;;  %s6080_s24 = sshll.u32 (!%p403_p9), %s8065_s29, 7  ;;  %vm1061_vm1 = vcmask (!%p403_p9), 195584  }
  0x11   : > { %406 = sbr.rel (%p403_p9) target bundleno = 1756 (0x6dc), region = 72  ;;  %6810 = vmatprep.subr.bf16.mxu0 (!%p403_p9), %v7681_v0  ;;  %p452_p10 = scmp.lt.s32.totalorder (!%p403_p9), %s6080_s24, 255  ;;  %v1256_v2 = vsel (!%p403_p9), %vm1254_vm0, %v7682_v1, 0  ;;  %v7732_v20 = vld [vmem:[%s9349_s2] sm:$0xff] (!%p403_p9)   ;;  %v7746_v35 = vld [vmem:[%s9349_s2 + $0x8] sm:$0xff] (!%p403_p9)   ;;  %v7749_v38 = vld [vmem:[%s9349_s2 + $0x10] sm:$0xff] (!%p403_p9)  }
  0x12   : > { %6811 = vmatpush3.bf16.msra.mxu0 (!%p403_p9), %v7681_v0  ;;  %s9365_s1 = sld [smem:[#allocation6_spill]] (!%p403_p9)  ;;  %s9366_s0 = sld [smem:[#allocation5_spill]] (!%p403_p9)  ;;  %v7750_v39 = vld [vmem:[%s9349_s2 + $0x18] sm:$0x3f] (!%p403_p9)   ;;  %vm2339_vm2 = vcmask (!%p403_p9), 1045504   ;;  %vm2146_vm3 = vcmask (!%p403_p9), 490496  }
  0x13   : > { %7638 = vmatprep.subr.msk.bf16.mxu0 (!%p403_p9), %vm1254_vm0, %v7682_v1  ;;  %v2341_v40 = vsel (!%p403_p9), %vm2339_vm2, %v7750_v39, 0  ;;  %s6387_s21 = sshll.u32 (!%p403_p9), %s8065_s29, 10  ;;  %s7973_s22 = smov (!%p403_p9), [#allocation2]  }
  0x14   : > { %s9299_s29 = scalar_lea.hbm (!%p403_p9), %s9360_s13, %s6387_s21  ;;  %s7912_s21 = sshll.u32 (!%p403_p9), %s7973_s22, 4  ;;  %s7913_s21 = int_to_ptr.vmem [resolvable:$false] %s7912_s21 }
  0x15   : > { %s7914_s15 = scalar_lea.vmem (!%p403_p9), %s7913_s21, 2048 }
  0x16   : > { %6813 = vmatpush3.bf16.msra.mxu0 (!%p403_p9), %v1256_v2 }
  0x17   : > { %6942 = vmatprep.subr.bf16.mxu0 (!%p403_p9), %v7732_v20 }
  0x18   : > { %s9372_s24 = smov (!%p452_p10, %s6080_s24), 255 }
  0x19   : > { %s6081_s30 = sshll.u32 %s9372_s24, 2 }
  0x1a   : > { %s8107_s20 = scalar_lea.vmem %s9365_s1, %s6081_s30  ;;  %s8146_s23 = scalar_lea.vmem %s9366_s0, %s6081_s30 }
  0x1b   : > { %v7683_v3 = vld [vmem:[%s8107_s20] sm:$0xff]   ;;  %v7684_v4 = vld [vmem:[%s8107_s20 + $0x8] sm:$0xff]   ;;  %v7685_v5 = vld [vmem:[%s8107_s20 + $0x10] sm:$0xff]  }
  0x1c   : > { %6814 = vmatprep.mubr.msk.bf16.mxu0 %vm1061_vm1, %v7683_v3  ;;  %v7686_v6 = vld [vmem:[%s8107_s20 + $0x18] sm:$0xff]   ;;  %v7687_v7 = vld [vmem:[%s8107_s20 + $0x20] sm:$0xff]   ;;  %v7688_v8 = vld [vmem:[%s8107_s20 + $0x28] sm:$0xff]  }
  0x1d   : > { %6815 = vmatmul.mubr.msk.bf16.vlgmr.msra.gmra.mrb[0].mxu0 %vm1061_vm1, %v7684_v4  ;;  %v7689_v9 = vld [vmem:[%s8107_s20 + $0x30] sm:$0xff]   ;;  %v7690_v10 = vld [vmem:[%s8107_s20 + $0x38] sm:$0xff]   ;;  %v7691_v11 = vld [vmem:[%s8107_s20 + $0x40] sm:$0xff]  }
  0x1e   : > { %6818 = vmatprep.mubr.msk.bf16.mxu0 %vm1061_vm1, %v7685_v5  ;;  %v7692_v12 = vld [vmem:[%s8107_s20 + $0x48] sm:$0xff]   ;;  %v7693_v13 = vld [vmem:[%s8107_s20 + $0x50] sm:$0xff]   ;;  %v7694_v14 = vld [vmem:[%s8107_s20 + $0x58] sm:$0xff]   ;;  %6943 = vmatpush3.bf16.msra.mxu0 %v7732_v20 }
  0x1f   : > { %v7695_v15 = vld [vmem:[%s8107_s20 + $0x60] sm:$0xff]   ;;  %v7696_v16 = vld [vmem:[%s8107_s20 + $0x68] sm:$0xff]   ;;  %v7697_v17 = vld [vmem:[%s8107_s20 + $0x70] sm:$0xff]   ;;  %6944 = vmatprep.subr.bf16.mxu0 %v7746_v35 }
  0x20   : > { %v7698_v18 = vld [vmem:[%s8107_s20 + $0x78] sm:$0xff]   ;;  %v7699_v19 = vld [vmem:[%s8107_s20 + $0x80] sm:$0xff]   ;;  %v7700_v21 = vld [vmem:[%s8107_s20 + $0x88] sm:$0xff]  }
  0x21   : > { %v7701_v22 = vld [vmem:[%s8107_s20 + $0x90] sm:$0xff]   ;;  %v7702_v23 = vld [vmem:[%s8107_s20 + $0x98] sm:$0xff]   ;;  %v7703_v24 = vld [vmem:[%s8107_s20 + $0xa0] sm:$0xff]  }
  0x22   : > { %v7704_v25 = vld [vmem:[%s8107_s20 + $0xa8] sm:$0xff]   ;;  %v7705_v26 = vld [vmem:[%s8107_s20 + $0xb0] sm:$0xff]   ;;  %v7706_v27 = vld [vmem:[%s8107_s20 + $0xb8] sm:$0xff]   ;;  %6945 = vmatpush3.bf16.msra.mxu0 %v7746_v35 }
  0x23   : > { %v7707_v28 = vld [vmem:[%s8107_s20 + $0xc0] sm:$0xff]   ;;  %v7708_v29 = vld [vmem:[%s8107_s20 + $0xc8] sm:$0xff]   ;;  %v7709_v30 = vld [vmem:[%s8107_s20 + $0xd0] sm:$0xff]   ;;  %6946 = vmatprep.subr.bf16.mxu0 %v7749_v38 }
  0x24   : > { %v7710_v31 = vld [vmem:[%s8107_s20 + $0xd8] sm:$0xff]   ;;  %v7711_v32 = vld [vmem:[%s8107_s20 + $0xe0] sm:$0xff]   ;;  %v7712_v33 = vld [vmem:[%s8107_s20 + $0xe8] sm:$0xff]  }
  0x25   : > { %6819 = vmatmul.mubr.msk.bf16.gmra.mrb[4].mxu0 %vm1061_vm1, %v7686_v6  ;;  %v7713_v34 = vld [vmem:[%s8107_s20 + $0xf0] sm:$0xff]   ;;  %v7714_v36 = vld [vmem:[%s8107_s20 + $0xf8] sm:$0xff]   ;;  %v7715_v37 = vld [vmem:[%s8107_s20 + $0x100] sm:$0xff]  }
  0x26   : > { %6822 = vmatprep.mubr.msk.bf16.mxu0 %vm1061_vm1, %v7687_v7  ;;  %6947 = vmatpush3.bf16.msra.mxu0 %v7749_v38  ;;  %v7716_v41 = vld [vmem:[%s8107_s20 + $0x108] sm:$0xff]   ;;  %v7717_v42 = vld [vmem:[%s8107_s20 + $0x110] sm:$0xff]   ;;  %v7718_v43 = vld [vmem:[%s8107_s20 + $0x118] sm:$0xff]  }
  0x27   : > { %7639 = vmatprep.subr.msk.bf16.mxu0 %vm2339_vm2, %v7750_v39  ;;  %v7719_v44 = vld [vmem:[%s8107_s20 + $0x120] sm:$0xff]   ;;  %v7720_v45 = vld [vmem:[%s8107_s20 + $0x128] sm:$0xff]   ;;  %v7721_v46 = vld [vmem:[%s8107_s20 + $0x130] sm:$0xff]  }
  0x28   : > { %v7722_v47 = vld [vmem:[%s8107_s20 + $0x138] sm:$0xff]   ;;  %v7723_v48 = vld [vmem:[%s8107_s20 + $0x140] sm:$0xff]   ;;  %v7724_v49 = vld [vmem:[%s8107_s20 + $0x148] sm:$0xff]  }
  0x29   : > { %v7725_v50 = vld [vmem:[%s8107_s20 + $0x150] sm:$0xff]   ;;  %v7726_v51 = vld [vmem:[%s8107_s20 + $0x158] sm:$0xff]   ;;  %v7727_v52 = vld [vmem:[%s8107_s20 + $0x160] sm:$0xff]  }
  0x2a   : > { %6949 = vmatpush3.bf16.msra.mxu0 %v2341_v40  ;;  %v7728_v53 = vld [vmem:[%s8107_s20 + $0x168] sm:$0xff]   ;;  %v7729_v54 = vld [vmem:[%s8107_s20 + $0x170] sm:$0xff]   ;;  %v7730_v55 = vld [vmem:[%s8107_s20 + $0x178] sm:$0xff]  }
  0x2b   : > { %v7731_v56 = vld [vmem:[%s8107_s20 + $0x180] sm:$0xff]   ;;  %v7733_v57 = vld [vmem:[%s8107_s20 + $0x188] sm:$0xff]   ;;  %v7734_v58 = vld [vmem:[%s8107_s20 + $0x190] sm:$0xff]  }
  0x2c   : > { %v7735_v59 = vld [vmem:[%s8107_s20 + $0x198] sm:$0xff]   ;;  %v7736_v60 = vld [vmem:[%s8107_s20 + $0x1a0] sm:$0xff]   ;;  %v7737_v61 = vld [vmem:[%s8107_s20 + $0x1a8] sm:$0xff]  }
  0x2d   : > { %6823 = vmatmul.mubr.msk.bf16.gmra.mrb[8].mxu0 %vm1061_vm1, %v7688_v8  ;;  %v7738_v62 = vld [vmem:[%s8107_s20 + $0x1b0] sm:$0xff]   ;;  %v7739_v63 = vld [vmem:[%s8107_s20 + $0x1b8] sm:$0xff]   ;;  %v7740_v0 = vld [vmem:[%s8107_s20 + $0x1c0] sm:$0xff]  }
  0x2e   : > { %6826 = vmatprep.mubr.msk.bf16.mxu0 %vm1061_vm1, %v7689_v9  ;;  %v7741_v1 = vld [vmem:[%s8107_s20 + $0x1c8] sm:$0xff]   ;;  %v7742_v2 = vld [vmem:[%s8107_s20 + $0x1d0] sm:$0xff]   ;;  %v7743_v3 = vld [vmem:[%s8107_s20 + $0x1d8] sm:$0xff]  }
  0x2f   : > { %v7744_v4 = vld [vmem:[%s8107_s20 + $0x1e0] sm:$0xff]   ;;  %v7745_v5 = vld [vmem:[%s8107_s20 + $0x1e8] sm:$0xff]   ;;  %v7747_v6 = vld [vmem:[%s8107_s20 + $0x1f0] sm:$0xff]  }
  0x30   : > { %v7748_v7 = vld [vmem:[%s8107_s20 + $0x1f8] sm:$0xff]   ;;  %v7751_v8 = vld [vmem:[%s8146_s23] sm:$0xff]   ;;  %v7752_v9 = vld [vmem:[%s8146_s23 + $0x8] sm:$0xff]   ;;  %s448_s20 = sand.u32 1, %s7962_s26  }
  0x31   : > { %v7763_v20 = vld [vmem:[%s8146_s23 + $0x60] sm:$0xff]   ;;  %v7773_v35 = vld [vmem:[%s8146_s23 + $0xb0] sm:$0xff]   ;;  %v7814_v40 = vld [vmem:[%s9352_s5 + $0x38] sm:$0xff]   ;;  %s6079_s24 = sshll.u32 %s448_s20, 6  ;;  %s5990_s16 = scalar_lea.sflag [#allocation3], %s448_s20 }
  0x32   : > { %v7811_v38 = vld [vmem:[%s9352_s5 + $0x30] sm:$0xff]   ;;  %v7775_v39 = vld [vmem:[%s8146_s23 + $0xc0] sm:$0xff]   ;;  %s9268_s30 = scalar_lea.vmem [#allocation2], %s6079_s24 }
  0x35   : > { %6827 = vmatmul.mubr.msk.bf16.gmra.mrb[12].mxu0 %vm1061_vm1, %v7690_v10  ;;  %v7753_v10 = vld [vmem:[%s8146_s23 + $0x10] sm:$0xff]  }
  0x36   : > { %6830 = vmatprep.mubr.msk.bf16.mxu0 %vm1061_vm1, %v7691_v11  ;;  %v7754_v11 = vld [vmem:[%s8146_s23 + $0x18] sm:$0xff]  }
  0x3d   : > { %6831 = vmatmul.mubr.msk.bf16.gmra.mrb[16].mxu0 %vm1061_vm1, %v7692_v12  ;;  %v7755_v12 = vld [vmem:[%s8146_s23 + $0x20] sm:$0xff]  }
  0x3e   : > { %6834 = vmatprep.mubr.msk.bf16.mxu0 %vm1061_vm1, %v7693_v13  ;;  %v7756_v13 = vld [vmem:[%s8146_s23 + $0x28] sm:$0xff]  }
  0x45   : > { %6835 = vmatmul.mubr.msk.bf16.gmra.mrb[20].mxu0 %vm1061_vm1, %v7694_v14  ;;  %v7757_v14 = vld [vmem:[%s8146_s23 + $0x30] sm:$0xff]  }
  0x46   : > { %6838 = vmatprep.mubr.msk.bf16.mxu0 %vm1061_vm1, %v7695_v15  ;;  %v7758_v15 = vld [vmem:[%s8146_s23 + $0x38] sm:$0xff]  }
  0x4d   : > { %6839 = vmatmul.mubr.msk.bf16.gmra.mrb[24].mxu0 %vm1061_vm1, %v7696_v16  ;;  %v7759_v16 = vld [vmem:[%s8146_s23 + $0x40] sm:$0xff]  }
  0x4e   : > { %6842 = vmatprep.mubr.msk.bf16.mxu0 %vm1061_vm1, %v7697_v17  ;;  %v7760_v17 = vld [vmem:[%s8146_s23 + $0x48] sm:$0xff]  }
  0x55   : > { %6843 = vmatmul.mubr.msk.bf16.gmra.mrb[28].mxu0 %vm1061_vm1, %v7698_v18  ;;  %v7761_v18 = vld [vmem:[%s8146_s23 + $0x50] sm:$0xff]  }
  0x56   : > { %6846 = vmatprep.mubr.msk.bf16.mxu0 %vm1061_vm1, %v7699_v19  ;;  %v7762_v19 = vld [vmem:[%s8146_s23 + $0x58] sm:$0xff]  }
  0x5d   : > { %6847 = vmatmul.mubr.msk.bf16.gmra.mrb[32].mxu0 %vm1061_vm1, %v7700_v21  ;;  %v7764_v21 = vld [vmem:[%s8146_s23 + $0x68] sm:$0xff]  }
  0x5e   : > { %6850 = vmatprep.mubr.msk.bf16.mxu0 %vm1061_vm1, %v7701_v22  ;;  %v7765_v22 = vld [vmem:[%s8146_s23 + $0x70] sm:$0xff]  }
  0x65   : > { %6851 = vmatmul.mubr.msk.bf16.gmra.mrb[36].mxu0 %vm1061_vm1, %v7702_v23  ;;  %v7766_v23 = vld [vmem:[%s8146_s23 + $0x78] sm:$0xff]  }
  0x66   : > { %6854 = vmatprep.mubr.msk.bf16.mxu0 %vm1061_vm1, %v7703_v24  ;;  %v7767_v24 = vld [vmem:[%s8146_s23 + $0x80] sm:$0xff]  }
  0x6d   : > { %6855 = vmatmul.mubr.msk.bf16.gmra.mrb[40].mxu0 %vm1061_vm1, %v7704_v25  ;;  %v7799_v25 = vld [vmem:[%s9352_s5] sm:$0xff]  }
  0x6e   : > { %6858 = vmatprep.mubr.msk.bf16.mxu0 %vm1061_vm1, %v7705_v26  ;;  %7078 = vmatprep.subr.bf16.mxu1 %v7799_v25  ;;  %v7768_v26 = vld [vmem:[%s8146_s23 + $0x88] sm:$0xff]  }
  0x6f   : > { %7079 = vmatpush3.bf16.msra.mxu1 %v7799_v25 }
  0x75   : > { %6859 = vmatmul.mubr.msk.bf16.gmra.mrb[44].mxu0 %vm1061_vm1, %v7706_v27  ;;  %v7769_v27 = vld [vmem:[%s8146_s23 + $0x90] sm:$0xff]  }
  0x76   : > { %6862 = vmatprep.mubr.msk.bf16.mxu0 %vm1061_vm1, %v7707_v28  ;;  %v7802_v28 = vld [vmem:[%s9352_s5 + $0x8] sm:$0xff]  }
  0x77   : > { %7080 = vmatprep.subr.bf16.mxu1 %v7802_v28 }
  0x78   : > { %7081 = vmatpush3.bf16.msra.mxu1 %v7802_v28 }
  0x7d   : > { %6863 = vmatmul.mubr.msk.bf16.gmra.mrb[48].mxu0 %vm1061_vm1, %v7708_v29  ;;  %v7803_v29 = vld [vmem:[%s9352_s5 + $0x10] sm:$0xff]  }
  0x7e   : > { %6866 = vmatprep.mubr.msk.bf16.mxu0 %vm1061_vm1, %v7709_v30  ;;  %v7770_v30 = vld [vmem:[%s8146_s23 + $0x98] sm:$0xff]   ;;  %7082 = vmatprep.subr.bf16.mxu1 %v7803_v29 }
  0x7f   : > { %7083 = vmatpush3.bf16.msra.mxu1 %v7803_v29 }
  0x85   : > { %6867 = vmatmul.mubr.msk.bf16.gmra.mrb[52].mxu0 %vm1061_vm1, %v7710_v31  ;;  %v7771_v31 = vld [vmem:[%s8146_s23 + $0xa0] sm:$0xff]  }
  0x86   : > { %6870 = vmatprep.mubr.msk.bf16.mxu0 %vm1061_vm1, %v7711_v32  ;;  %v7806_v32 = vld [vmem:[%s9352_s5 + $0x18] sm:$0xff]  }
  0x87   : > { %7084 = vmatprep.subr.bf16.mxu1 %v7806_v32 }
  0x88   : > { %7085 = vmatpush3.bf16.msra.mxu1 %v7806_v32 }
  0x8d   : > { %6871 = vmatmul.mubr.msk.bf16.gmra.mrb[56].mxu0 %vm1061_vm1, %v7712_v33  ;;  %v7807_v33 = vld [vmem:[%s9352_s5 + $0x20] sm:$0xff]  }
  0x8e   : > { %6874 = vmatprep.mubr.msk.bf16.mxu0 %vm1061_vm1, %v7713_v34  ;;  %v7772_v34 = vld [vmem:[%s8146_s23 + $0xa8] sm:$0xff]   ;;  %7086 = vmatprep.subr.bf16.mxu1 %v7807_v33 }
  0x8f   : > { %7087 = vmatpush3.bf16.msra.mxu1 %v7807_v33 }
  0x95   : > { %6875 = vmatmul.mubr.msk.bf16.gmra.mrb[60].mxu0 %vm1061_vm1, %v7714_v36  ;;  %v7810_v36 = vld [vmem:[%s9352_s5 + $0x28] sm:$0xff]  }
  0x96   : > { %6878 = vmatprep.mubr.msk.bf16.mxu0 %vm1061_vm1, %v7715_v37  ;;  %7088 = vmatprep.subr.bf16.mxu1 %v7810_v36  ;;  %v7774_v37 = vld [vmem:[%s8146_s23 + $0xb8] sm:$0xff]  }
  0x97   : > { %7089 = vmatpush3.bf16.msra.mxu1 %v7810_v36 }
  0x98   : > { %7090 = vmatprep.subr.bf16.mxu1 %v7811_v38 }
  0x9b   : > { %7091 = vmatpush3.bf16.msra.mxu1 %v7811_v38 }
  0x9c   : > { %7092 = vmatprep.subr.bf16.mxu1 %v7814_v40 }
  0x9d   : > { %6879 = vmatmul.mubr.msk.bf16.gmra.mrb[64].mxu0 %vm1061_vm1, %v7716_v41  ;;  %v7776_v41 = vld [vmem:[%s8146_s23 + $0xc8] sm:$0xff]  }
  0x9e   : > { %6882 = vmatprep.mubr.msk.bf16.mxu0 %vm1061_vm1, %v7717_v42  ;;  %v7777_v42 = vld [vmem:[%s8146_s23 + $0xd0] sm:$0xff]  }
  0x9f   : > { %7093 = vmatpush3.bf16.msra.mxu1 %v7814_v40 }
  0xa5   : > { %6883 = vmatmul.mubr.msk.bf16.gmra.mrb[68].mxu0 %vm1061_vm1, %v7718_v43  ;;  %v7778_v43 = vld [vmem:[%s8146_s23 + $0xd8] sm:$0xff]  }
  0xa6   : > { %6886 = vmatprep.mubr.msk.bf16.mxu0 %vm1061_vm1, %v7719_v44  ;;  %v7779_v44 = vld [vmem:[%s8146_s23 + $0xe0] sm:$0xff]  }
  0xad   : > { %6887 = vmatmul.mubr.msk.bf16.gmra.mrb[72].mxu0 %vm1061_vm1, %v7720_v45  ;;  %v7780_v45 = vld [vmem:[%s8146_s23 + $0xe8] sm:$0xff]  }
  0xae   : > { %6890 = vmatprep.mubr.msk.bf16.mxu0 %vm1061_vm1, %v7721_v46  ;;  %v7781_v46 = vld [vmem:[%s8146_s23 + $0xf0] sm:$0xff]  }
  0xb5   : > { %6891 = vmatmul.mubr.msk.bf16.gmra.mrb[76].mxu0 %vm1061_vm1, %v7722_v47  ;;  %v7782_v47 = vld [vmem:[%s8146_s23 + $0xf8] sm:$0xff]  }
  0xb6   : > { %6894 = vmatprep.mubr.msk.bf16.mxu0 %vm1061_vm1, %v7723_v48  ;;  %v7783_v48 = vld [vmem:[%s8146_s23 + $0x100] sm:$0xff]  }
  0xbd   : > { %6895 = vmatmul.mubr.msk.bf16.gmra.mrb[80].mxu0 %vm1061_vm1, %v7724_v49  ;;  %v7784_v49 = vld [vmem:[%s8146_s23 + $0x108] sm:$0xff]  }
  0xbe   : > { %6898 = vmatprep.mubr.msk.bf16.mxu0 %vm1061_vm1, %v7725_v50  ;;  %v7785_v50 = vld [vmem:[%s8146_s23 + $0x110] sm:$0xff]  }
  0xc5   : > { %6899 = vmatmul.mubr.msk.bf16.gmra.mrb[84].mxu0 %vm1061_vm1, %v7726_v51  ;;  %v7786_v51 = vld [vmem:[%s8146_s23 + $0x118] sm:$0xff]  }
  0xc6   : > { %6902 = vmatprep.mubr.msk.bf16.mxu0 %vm1061_vm1, %v7727_v52  ;;  %v7787_v52 = vld [vmem:[%s8146_s23 + $0x120] sm:$0xff]  }
  0xcd   : > { %6903 = vmatmul.mubr.msk.bf16.gmra.mrb[88].mxu0 %vm1061_vm1, %v7728_v53  ;;  %v7788_v53 = vld [vmem:[%s8146_s23 + $0x128] sm:$0xff]  }
  0xce   : > { %6906 = vmatprep.mubr.msk.bf16.mxu0 %vm1061_vm1, %v7729_v54  ;;  %v7789_v54 = vld [vmem:[%s8146_s23 + $0x130] sm:$0xff]  }
  0xd5   : > { %6907 = vmatmul.mubr.msk.bf16.gmra.mrb[92].mxu0 %vm1061_vm1, %v7730_v55  ;;  %v7790_v55 = vld [vmem:[%s8146_s23 + $0x138] sm:$0xff]  }
  0xd6   : > { %6910 = vmatprep.mubr.msk.bf16.mxu0 %vm1061_vm1, %v7731_v56  ;;  %v7791_v56 = vld [vmem:[%s8146_s23 + $0x140] sm:$0xff]  }
  0xdd   : > { %6911 = vmatmul.mubr.msk.bf16.gmra.mrb[96].mxu0 %vm1061_vm1, %v7733_v57  ;;  %v7792_v57 = vld [vmem:[%s8146_s23 + $0x148] sm:$0xff]  }
  0xde   : > { %6914 = vmatprep.mubr.msk.bf16.mxu0 %vm1061_vm1, %v7734_v58  ;;  %v7793_v58 = vld [vmem:[%s8146_s23 + $0x150] sm:$0xff]  }
  0xe5   : > { %6915 = vmatmul.mubr.msk.bf16.gmra.mrb[100].mxu0 %vm1061_vm1, %v7735_v59  ;;  %v7794_v59 = vld [vmem:[%s8146_s23 + $0x158] sm:$0xff]  }
  0xe6   : > { %6918 = vmatprep.mubr.msk.bf16.mxu0 %vm1061_vm1, %v7736_v60  ;;  %v7795_v60 = vld [vmem:[%s8146_s23 + $0x160] sm:$0xff]  }
  0xed   : > { %6919 = vmatmul.mubr.msk.bf16.gmra.mrb[104].mxu0 %vm1061_vm1, %v7737_v61  ;;  %v7796_v61 = vld [vmem:[%s8146_s23 + $0x168] sm:$0xff]  }
  0xee   : > { %6922 = vmatprep.mubr.msk.bf16.mxu0 %vm1061_vm1, %v7738_v62  ;;  %v7797_v62 = vld [vmem:[%s8146_s23 + $0x170] sm:$0xff]  }
  0xf5   : > { %6923 = vmatmul.mubr.msk.bf16.gmra.mrb[108].mxu0 %vm1061_vm1, %v7739_v63  ;;  %v7798_v63 = vld [vmem:[%s8146_s23 + $0x178] sm:$0xff]  }
  0xf6   : > { %6926 = vmatprep.mubr.msk.bf16.mxu0 %vm1061_vm1, %v7740_v0  ;;  %v7800_v0 = vld [vmem:[%s8146_s23 + $0x180] sm:$0xff]  }
  0xfd   : > { %6927 = vmatmul.mubr.msk.bf16.gmra.mrb[112].mxu0 %vm1061_vm1, %v7741_v1  ;;  %v7801_v1 = vld [vmem:[%s8146_s23 + $0x188] sm:$0xff]  }
  0xfe   : > { %6930 = vmatprep.mubr.msk.bf16.mxu0 %vm1061_vm1, %v7742_v2  ;;  %v7804_v2 = vld [vmem:[%s8146_s23 + $0x190] sm:$0xff]  }
 0x105   : > { %6931 = vmatmul.mubr.msk.bf16.gmra.mrb[116].mxu0 %vm1061_vm1, %v7743_v3  ;;  %v7805_v3 = vld [vmem:[%s8146_s23 + $0x198] sm:$0xff]  }
 0x106   : > { %6934 = vmatprep.mubr.msk.bf16.mxu0 %vm1061_vm1, %v7744_v4  ;;  %v7808_v4 = vld [vmem:[%s8146_s23 + $0x1a0] sm:$0xff]  }
 0x10d   : > { %6935 = vmatmul.mubr.msk.bf16.gmra.mrb[120].mxu0 %vm1061_vm1, %v7745_v5  ;;  %v7809_v5 = vld [vmem:[%s8146_s23 + $0x1a8] sm:$0xff]  }
 0x10e   : > { %6938 = vmatprep.mubr.msk.bf16.mxu0 %vm1061_vm1, %v7747_v6  ;;  %v7812_v6 = vld [vmem:[%s8146_s23 + $0x1b0] sm:$0xff]  }
 0x115   : > { %6939 = vmatmul.mubr.msk.bf16.gmra.mrb[124].mxu0 %vm1061_vm1, %v7748_v7  ;;  %v8392_v7 = vld [vmem:[%s9351_s4] ss:$0 sm:$0xff] }
 0x116   : > { %6950 = vmatprep.mubr.msk.bf16.mxu0 %vm2146_vm3, %v7751_v8 }
 0x11d   : > { %6951 = vmatmul.mubr.msk.bf16.vlgmr.msra.gmra.mrb[0].mxu0 %vm2146_vm3, %v7752_v9 }
 0x11e   : > { %6954 = vmatprep.mubr.msk.bf16.mxu0 %vm2146_vm3, %v7753_v10 }
 0x125   : > { %6955 = vmatmul.mubr.msk.bf16.gmra.mrb[4].mxu0 %vm2146_vm3, %v7754_v11  ;;  %v7813_v11 = vld [vmem:[%s8146_s23 + $0x1b8] sm:$0xff]  }
 0x126   : > { %6958 = vmatprep.mubr.msk.bf16.mxu0 %vm2146_vm3, %v7755_v12 }
 0x12d   : > { %6959 = vmatmul.mubr.msk.bf16.gmra.mrb[8].mxu0 %vm2146_vm3, %v7756_v13 }
 0x12e   : > { %6962 = vmatprep.mubr.msk.bf16.mxu0 %vm2146_vm3, %v7757_v14  ;;  %v7815_v14 = vld [vmem:[%s8146_s23 + $0x1c0] sm:$0xff]  }
 0x135   : > { %6963 = vmatmul.mubr.msk.bf16.gmra.mrb[12].mxu0 %vm2146_vm3, %v7758_v15 }
 0x136   : > { %6966 = vmatprep.mubr.msk.bf16.mxu0 %vm2146_vm3, %v7759_v16 }
 0x13d   : > { %6967 = vmatmul.mubr.msk.bf16.gmra.mrb[16].mxu0 %vm2146_vm3, %v7760_v17 }
 0x13e   : > { %6970 = vmatprep.mubr.msk.bf16.mxu0 %vm2146_vm3, %v7761_v18 }
 0x145   : > { %6971 = vmatmul.mubr.msk.bf16.gmra.mrb[20].mxu0 %vm2146_vm3, %v7762_v19 }
 0x146   : > { %6974 = vmatprep.mubr.msk.bf16.mxu0 %vm2146_vm3, %v7763_v20 }
 0x14d   : > { %6975 = vmatmul.mubr.msk.bf16.gmra.mrb[24].mxu0 %vm2146_vm3, %v7764_v21 }
 0x14e   : > { %6978 = vmatprep.mubr.msk.bf16.mxu0 %vm2146_vm3, %v7765_v22 }
 0x155   : > { %6979 = vmatmul.mubr.msk.bf16.gmra.mrb[28].mxu0 %vm2146_vm3, %v7766_v23 }
 0x156   : > { %6982 = vmatprep.mubr.msk.bf16.mxu0 %vm2146_vm3, %v7767_v24 }
 0x15d   : > { %6983 = vmatmul.mubr.msk.bf16.gmra.mrb[32].mxu0 %vm2146_vm3, %v7768_v26 }
 0x15e   : > { %6986 = vmatprep.mubr.msk.bf16.mxu0 %vm2146_vm3, %v7769_v27  ;;  %v7816_v27 = vld [vmem:[%s8146_s23 + $0x1c8] sm:$0xff]  }
 0x165   : > { %6987 = vmatmul.mubr.msk.bf16.gmra.mrb[36].mxu0 %vm2146_vm3, %v7770_v30  ;;  %v7817_v30 = vld [vmem:[%s8146_s23 + $0x1d0] sm:$0xff]  }
 0x166   : > { %6990 = vmatprep.mubr.msk.bf16.mxu0 %vm2146_vm3, %v7771_v31 }
 0x16d   : > { %6991 = vmatmul.mubr.msk.bf16.gmra.mrb[40].mxu0 %vm2146_vm3, %v7772_v34 }
 0x16e   : > { %6994 = vmatprep.mubr.msk.bf16.mxu0 %vm2146_vm3, %v7773_v35 }
 0x175   : > { %6995 = vmatmul.mubr.msk.bf16.gmra.mrb[44].mxu0 %vm2146_vm3, %v7774_v37 }
 0x176   : > { %6998 = vmatprep.mubr.msk.bf16.mxu0 %vm2146_vm3, %v7775_v39 }
 0x17d   : > { %6999 = vmatmul.mubr.msk.bf16.gmra.mrb[48].mxu0 %vm2146_vm3, %v7776_v41 }
 0x17e   : > { %7002 = vmatprep.mubr.msk.bf16.mxu0 %vm2146_vm3, %v7777_v42 }
 0x185   : > { %7003 = vmatmul.mubr.msk.bf16.gmra.mrb[52].mxu0 %vm2146_vm3, %v7778_v43  ;;  %v7818_v43 = vld [vmem:[%s8146_s23 + $0x1d8] sm:$0xff]  }
 0x186   : > { %7006 = vmatprep.mubr.msk.bf16.mxu0 %vm2146_vm3, %v7779_v44 }
 0x18d   : > { %7007 = vmatmul.mubr.msk.bf16.gmra.mrb[56].mxu0 %vm2146_vm3, %v7780_v45 }
 0x18e   : > { %7010 = vmatprep.mubr.msk.bf16.mxu0 %vm2146_vm3, %v7781_v46  ;;  %v7819_v46 = vld [vmem:[%s8146_s23 + $0x1e0] sm:$0xff]  }
 0x195   : > { %7011 = vmatmul.mubr.msk.bf16.gmra.mrb[60].mxu0 %vm2146_vm3, %v7782_v47 }
 0x196   : > { %7014 = vmatprep.mubr.msk.bf16.mxu0 %vm2146_vm3, %v7783_v48 }
 0x19d   : > { %7015 = vmatmul.mubr.msk.bf16.gmra.mrb[64].mxu0 %vm2146_vm3, %v7784_v49 }
 0x19e   : > { %7018 = vmatprep.mubr.msk.bf16.mxu0 %vm2146_vm3, %v7785_v50 }
 0x1a5   : > { %7019 = vmatmul.mubr.msk.bf16.gmra.mrb[68].mxu0 %vm2146_vm3, %v7786_v51 }
 0x1a6   : > { %7022 = vmatprep.mubr.msk.bf16.mxu0 %vm2146_vm3, %v7787_v52 }
 0x1ad   : > { %7023 = vmatmul.mubr.msk.bf16.gmra.mrb[72].mxu0 %vm2146_vm3, %v7788_v53 }
 0x1ae   : > { %7026 = vmatprep.mubr.msk.bf16.mxu0 %vm2146_vm3, %v7789_v54 }
 0x1b5   : > { %7027 = vmatmul.mubr.msk.bf16.gmra.mrb[76].mxu0 %vm2146_vm3, %v7790_v55 }
 0x1b6   : > { %7030 = vmatprep.mubr.msk.bf16.mxu0 %vm2146_vm3, %v7791_v56 }
 0x1bd   : > { %7031 = vmatmul.mubr.msk.bf16.gmra.mrb[80].mxu0 %vm2146_vm3, %v7792_v57 }
 0x1be   : > { %7034 = vmatprep.mubr.msk.bf16.mxu0 %vm2146_vm3, %v7793_v58 }
 0x1c5   : > { %7035 = vmatmul.mubr.msk.bf16.gmra.mrb[84].mxu0 %vm2146_vm3, %v7794_v59  ;;  %v7820_v59 = vld [vmem:[%s8146_s23 + $0x1e8] sm:$0xff]  }
 0x1c6   : > { %7038 = vmatprep.mubr.msk.bf16.mxu0 %vm2146_vm3, %v7795_v60 }
 0x1cd   : > { %7039 = vmatmul.mubr.msk.bf16.gmra.mrb[88].mxu0 %vm2146_vm3, %v7796_v61 }
 0x1ce   : > { %7042 = vmatprep.mubr.msk.bf16.mxu0 %vm2146_vm3, %v7797_v62  ;;  %v7821_v62 = vld [vmem:[%s8146_s23 + $0x1f0] sm:$0xff]  }
 0x1d5   : > { %7043 = vmatmul.mubr.msk.bf16.gmra.mrb[92].mxu0 %vm2146_vm3, %v7798_v63 }
 0x1d6   : > { %7046 = vmatprep.mubr.msk.bf16.mxu0 %vm2146_vm3, %v7800_v0 }
 0x1dd   : > { %7047 = vmatmul.mubr.msk.bf16.gmra.mrb[96].mxu0 %vm2146_vm3, %v7801_v1 }
 0x1de   : > { %7050 = vmatprep.mubr.msk.bf16.mxu0 %vm2146_vm3, %v7804_v2 }
 0x1e5   : > { %7051 = vmatmul.mubr.msk.bf16.gmra.mrb[100].mxu0 %vm2146_vm3, %v7805_v3 }
 0x1e6   : > { %7054 = vmatprep.mubr.msk.bf16.mxu0 %vm2146_vm3, %v7808_v4 }
 0x1ed   : > { %7055 = vmatmul.mubr.msk.bf16.gmra.mrb[104].mxu0 %vm2146_vm3, %v7809_v5 }
 0x1ee   : > { %7058 = vmatprep.mubr.msk.bf16.mxu0 %vm2146_vm3, %v7812_v6 }
 0x1f0   : > { %v6952_v8 = vpop.f32.mrb[0].mxu0 }
 0x1f1   : > { %v2897_v9 = vadd.f32 %v6952_v8, %v8392_v7  ;;  %v2377_v10 = vpop.f32.mrb[1].mxu0 }
 0x1f2   : > { %v2895_v12 = vadd.f32 %v8392_v7, %v2377_v10  ;;  %v6953_v13 = vpop.f32.mrb[2].mxu0 }
 0x1f3   : > { %v2898_v15 = vadd.f32 %v6953_v13, %v8392_v7  ;;  %v2380_v16 = vpop.f32.mrb[3].mxu0  ;;  %v3025_v18 = vmax.f32 %v2897_v9, 0.0 }
 0x1f4   : > { %v2896_v17 = vadd.f32 %v8392_v7, %v2380_v16  ;;  %v3023_v20 = vmax.f32 %v2895_v12, 0.0  ;;  %v7822_v12 = vld [vmem:[%s8146_s23 + $0x1f8] sm:$0xff]   ;;  %s6004_s23 = sshll.u32 %s9268_s30, 4  ;;  %s9301_s23 = int_to_ptr.vmem [resolvable:$true] %s6004_s23 }
 0x1f5   : > { %v3026_v19 = vmax.f32 %v2898_v15, 0.0  ;;  %7059 = vmatmul.mubr.msk.bf16.gmra.mrb[108].mxu0 %vm2146_vm3, %v7813_v11  ;;  %s7908_s24 = scalar_lea.vmem %s9301_s23, 1024  ;;  %p7915_p0 = scmp.lt.s32.totalorder %s9301_s23, %s7913_s21 }
 0x1f6   : > { %v3024_v21 = vmax.f32 %v2896_v17, 0.0  ;;  %7062 = vmatprep.mubr.msk.bf16.mxu0 %vm2146_vm3, %v7815_v14  ;;  %p7909_p11 = scmp.ne.s32.totalorder %s9301_s23, %s7908_s24  ;;  %p7916_p1 = scmp.lt.s32.totalorder %s7914_s15, %s7908_s24 }
 0x1f7   : > { %v3152_v22 = vpack.c.bf16 %v3026_v19, %v3025_v18 }
 0x1f8   : > { %v6956_v23 = vpop.f32.mrb[4].mxu0  ;;  %v3151_v24 = vpack.c.bf16 %v3024_v21, %v3023_v20  ;;  %p7910_p12 = pnand %p7909_p11, %p8082_p5  ;;  %p7917_p2 = por %p7916_p1, %p7915_p0 }
 0x1f9   : > { %v2901_v25 = vadd.f32 %v6956_v23, %v8392_v7  ;;  %v2393_v26 = vpop.f32.mrb[5].mxu0 }
 0x1fa   : > { %v2899_v28 = vadd.f32 %v8392_v7, %v2393_v26  ;;  %v6957_v29 = vpop.f32.mrb[6].mxu0  ;;  %7094 = vmatprep.mubr.bf16.mxu1 %v3151_v24  ;;  %p7911_p13 = pneg %p7910_p12 }
 0x1fb   : > { %v2902_v31 = vadd.f32 %v6957_v29, %v8392_v7  ;;  %v2396_v32 = vpop.f32.mrb[7].mxu0  ;;  %7095 = vmatmul.mubr.bf16.vlgmr.msra.gmra.mrb[0].mxu1 %v3152_v22  ;;  %v3029_v34 = vmax.f32 %v2901_v25, 0.0 }
 0x1fc   : > { %v2900_v33 = vadd.f32 %v8392_v7, %v2396_v32  ;;  %v3027_v36 = vmax.f32 %v2899_v28, 0.0  ;;  %p7918_p3 = pnand %p7917_p2, %p7911_p13 }
 0x1fd   : > { %v3030_v35 = vmax.f32 %v2902_v31, 0.0  ;;  %7063 = vmatmul.mubr.msk.bf16.gmra.mrb[112].mxu0 %vm2146_vm3, %v7816_v27 }
 0x1fe   : > { %v3028_v37 = vmax.f32 %v2900_v33, 0.0  ;;  %7066 = vmatprep.mubr.msk.bf16.mxu0 %vm2146_vm3, %v7817_v30 }
 0x1ff   : > { %v3154_v38 = vpack.c.bf16 %v3030_v35, %v3029_v34 }
 0x200   : > { %v3153_v39 = vpack.c.bf16 %v3028_v37, %v3027_v36  ;;  %v6960_v40 = vpop.f32.mrb[8].mxu0 }
 0x201   : > { %v2905_v41 = vadd.f32 %v6960_v40, %v8392_v7  ;;  %v2409_v42 = vpop.f32.mrb[9].mxu0 }
 0x202   : > { %v2903_v44 = vadd.f32 %v8392_v7, %v2409_v42  ;;  %v6961_v45 = vpop.f32.mrb[10].mxu0  ;;  %7098 = vmatprep.mubr.bf16.mxu1 %v3153_v39 }
 0x203   : > { %v2906_v47 = vadd.f32 %v6961_v45, %v8392_v7  ;;  %v2412_v48 = vpop.f32.mrb[11].mxu0  ;;  %7099 = vmatmul.mubr.bf16.gmra.mrb[4].mxu1 %v3154_v38  ;;  %v3033_v50 = vmax.f32 %v2905_v41, 0.0 }
 0x204   : > { %v2904_v49 = vadd.f32 %v8392_v7, %v2412_v48  ;;  %v3031_v52 = vmax.f32 %v2903_v44, 0.0 }
 0x205   : > { %v3034_v51 = vmax.f32 %v2906_v47, 0.0  ;;  %7067 = vmatmul.mubr.msk.bf16.gmra.mrb[116].mxu0 %vm2146_vm3, %v7818_v43 }
 0x206   : > { %v3032_v53 = vmax.f32 %v2904_v49, 0.0  ;;  %7070 = vmatprep.mubr.msk.bf16.mxu0 %vm2146_vm3, %v7819_v46 }
 0x207   : > { %v3156_v54 = vpack.c.bf16 %v3034_v51, %v3033_v50 }
 0x208   : > { %v3155_v55 = vpack.c.bf16 %v3032_v53, %v3031_v52  ;;  %v6964_v56 = vpop.f32.mrb[12].mxu0 }
 0x209   : > { %v2909_v57 = vadd.f32 %v6964_v56, %v8392_v7  ;;  %v2425_v58 = vpop.f32.mrb[13].mxu0 }
 0x20a   : > { %v2907_v60 = vadd.f32 %v8392_v7, %v2425_v58  ;;  %v6965_v61 = vpop.f32.mrb[14].mxu0  ;;  %7102 = vmatprep.mubr.bf16.mxu1 %v3155_v55 }
 0x20b   : > { %v2910_v63 = vadd.f32 %v6965_v61, %v8392_v7  ;;  %v2428_v0 = vpop.f32.mrb[15].mxu0  ;;  %7103 = vmatmul.mubr.bf16.gmra.mrb[8].mxu1 %v3156_v54  ;;  %v3037_v2 = vmax.f32 %v2909_v57, 0.0 }
 0x20c   : > { %v2908_v1 = vadd.f32 %v8392_v7, %v2428_v0  ;;  %v3035_v4 = vmax.f32 %v2907_v60, 0.0 }
 0x20d   : > { %v3038_v3 = vmax.f32 %v2910_v63, 0.0  ;;  %7071 = vmatmul.mubr.msk.bf16.gmra.mrb[120].mxu0 %vm2146_vm3, %v7820_v59 }
 0x20e   : > { %v3036_v5 = vmax.f32 %v2908_v1, 0.0  ;;  %7074 = vmatprep.mubr.msk.bf16.mxu0 %vm2146_vm3, %v7821_v62 }
 0x20f   : > { %v3158_v6 = vpack.c.bf16 %v3038_v3, %v3037_v2 }
 0x210   : > { %v3157_v8 = vpack.c.bf16 %v3036_v5, %v3035_v4  ;;  %v6968_v9 = vpop.f32.mrb[16].mxu0 }
 0x211   : > { %v2913_v10 = vadd.f32 %v6968_v9, %v8392_v7  ;;  %v2441_v11 = vpop.f32.mrb[17].mxu0 }
 0x212   : > { %v2911_v13 = vadd.f32 %v8392_v7, %v2441_v11  ;;  %v6969_v14 = vpop.f32.mrb[18].mxu0  ;;  %7106 = vmatprep.mubr.bf16.mxu1 %v3157_v8 }
 0x213   : > { %v2914_v15 = vadd.f32 %v6969_v14, %v8392_v7  ;;  %v2444_v16 = vpop.f32.mrb[19].mxu0  ;;  %7107 = vmatmul.mubr.bf16.gmra.mrb[12].mxu1 %v3158_v6  ;;  %v3041_v18 = vmax.f32 %v2913_v10, 0.0 }
 0x214   : > { %v2912_v17 = vadd.f32 %v8392_v7, %v2444_v16  ;;  %v3039_v20 = vmax.f32 %v2911_v13, 0.0 }
 0x215   : > { %v3042_v19 = vmax.f32 %v2914_v15, 0.0  ;;  %7075 = vmatmul.mubr.msk.bf16.gmra.mrb[124].mxu0 %vm2146_vm3, %v7822_v12 }
 0x216   : > { %v3040_v21 = vmax.f32 %v2912_v17, 0.0 }
 0x217   : > { %v3160_v22 = vpack.c.bf16 %v3042_v19, %v3041_v18 }
 0x218   : > { %v3159_v23 = vpack.c.bf16 %v3040_v21, %v3039_v20  ;;  %v6972_v24 = vpop.f32.mrb[20].mxu0 }
 0x219   : > { %v2917_v25 = vadd.f32 %v6972_v24, %v8392_v7  ;;  %v2457_v26 = vpop.f32.mrb[21].mxu0 }
 0x21a   : > { %v2915_v27 = vadd.f32 %v8392_v7, %v2457_v26  ;;  %v6973_v28 = vpop.f32.mrb[22].mxu0  ;;  %7110 = vmatprep.mubr.bf16.mxu1 %v3159_v23 }
 0x21b   : > { %v2918_v29 = vadd.f32 %v6973_v28, %v8392_v7  ;;  %v2460_v30 = vpop.f32.mrb[23].mxu0  ;;  %7111 = vmatmul.mubr.bf16.gmra.mrb[16].mxu1 %v3160_v22  ;;  %v3045_v32 = vmax.f32 %v2917_v25, 0.0 }
 0x21c   : > { %v2916_v31 = vadd.f32 %v8392_v7, %v2460_v30  ;;  %v3043_v34 = vmax.f32 %v2915_v27, 0.0  ;;  %v7823_v30 = vld [vmem:[%s9354_s7] sm:$0xff]  }
 0x21d   : > { %v3046_v33 = vmax.f32 %v2918_v29, 0.0  ;;  %7222 = vmatprep.subr.bf16.mxu1 %v7823_v30 }
 0x21e   : > { %v3044_v35 = vmax.f32 %v2916_v31, 0.0  ;;  %7223 = vmatpush3.bf16.msra.mxu1 %v7823_v30 }
 0x21f   : > { %v3162_v36 = vpack.c.bf16 %v3046_v33, %v3045_v32 }
 0x220   : > { %v3161_v37 = vpack.c.bf16 %v3044_v35, %v3043_v34  ;;  %v6976_v38 = vpop.f32.mrb[24].mxu0 }
 0x221   : > { %v2921_v39 = vadd.f32 %v6976_v38, %v8392_v7  ;;  %v2473_v40 = vpop.f32.mrb[25].mxu0 }
 0x222   : > { %v2919_v41 = vadd.f32 %v8392_v7, %v2473_v40  ;;  %v6977_v42 = vpop.f32.mrb[26].mxu0  ;;  %7114 = vmatprep.mubr.bf16.mxu1 %v3161_v37 }
 0x223   : > { %v2922_v43 = vadd.f32 %v6977_v42, %v8392_v7  ;;  %v2476_v44 = vpop.f32.mrb[27].mxu0  ;;  %7115 = vmatmul.mubr.bf16.gmra.mrb[20].mxu1 %v3162_v36  ;;  %v3049_v46 = vmax.f32 %v2921_v39, 0.0 }
 0x224   : > { %v2920_v45 = vadd.f32 %v8392_v7, %v2476_v44  ;;  %v3047_v48 = vmax.f32 %v2919_v41, 0.0 }
 0x225   : > { %v3050_v47 = vmax.f32 %v2922_v43, 0.0 }
 0x226   : > { %v3048_v49 = vmax.f32 %v2920_v45, 0.0 }
 0x227   : > { %v3164_v50 = vpack.c.bf16 %v3050_v47, %v3049_v46 }
 0x228   : > { %v3163_v51 = vpack.c.bf16 %v3048_v49, %v3047_v48  ;;  %v6980_v52 = vpop.f32.mrb[28].mxu0 }
 0x229   : > { %v2925_v53 = vadd.f32 %v6980_v52, %v8392_v7  ;;  %v2489_v54 = vpop.f32.mrb[29].mxu0 }
 0x22a   : > { %v2923_v55 = vadd.f32 %v8392_v7, %v2489_v54  ;;  %v6981_v56 = vpop.f32.mrb[30].mxu0  ;;  %7118 = vmatprep.mubr.bf16.mxu1 %v3163_v51 }
 0x22b   : > { %v2926_v57 = vadd.f32 %v6981_v56, %v8392_v7  ;;  %v2492_v58 = vpop.f32.mrb[31].mxu0  ;;  %7119 = vmatmul.mubr.bf16.gmra.mrb[24].mxu1 %v3164_v50  ;;  %v3053_v60 = vmax.f32 %v2925_v53, 0.0 }
 0x22c   : > { %v2924_v59 = vadd.f32 %v8392_v7, %v2492_v58  ;;  %v3051_v62 = vmax.f32 %v2923_v55, 0.0 }
 0x22d   : > { %v3054_v61 = vmax.f32 %v2926_v57, 0.0 }
 0x22e   : > { %v3052_v63 = vmax.f32 %v2924_v59, 0.0 }
 0x22f   : > { %v3166_v0 = vpack.c.bf16 %v3054_v61, %v3053_v60 }
 0x230   : > { %v3165_v1 = vpack.c.bf16 %v3052_v63, %v3051_v62  ;;  %v6984_v2 = vpop.f32.mrb[32].mxu0 }
 0x231   : > { %v2929_v3 = vadd.f32 %v6984_v2, %v8392_v7  ;;  %v2505_v4 = vpop.f32.mrb[33].mxu0 }
 0x232   : > { %v2927_v5 = vadd.f32 %v8392_v7, %v2505_v4  ;;  %v6985_v6 = vpop.f32.mrb[34].mxu0  ;;  %7122 = vmatprep.mubr.bf16.mxu1 %v3165_v1 }
 0x233   : > { %v2930_v8 = vadd.f32 %v6985_v6, %v8392_v7  ;;  %v2508_v9 = vpop.f32.mrb[35].mxu0  ;;  %7123 = vmatmul.mubr.bf16.gmra.mrb[28].mxu1 %v3166_v0  ;;  %v3057_v11 = vmax.f32 %v2929_v3, 0.0 }
 0x234   : > { %v2928_v10 = vadd.f32 %v8392_v7, %v2508_v9  ;;  %v3055_v13 = vmax.f32 %v2927_v5, 0.0 }
 0x235   : > { %v3058_v12 = vmax.f32 %v2930_v8, 0.0 }
 0x236   : > { %v3056_v14 = vmax.f32 %v2928_v10, 0.0 }
 0x237   : > { %v3168_v15 = vpack.c.bf16 %v3058_v12, %v3057_v11 }
 0x238   : > { %v3167_v16 = vpack.c.bf16 %v3056_v14, %v3055_v13  ;;  %v6988_v17 = vpop.f32.mrb[36].mxu0 }
 0x239   : > { %v2933_v18 = vadd.f32 %v6988_v17, %v8392_v7  ;;  %v2521_v19 = vpop.f32.mrb[37].mxu0 }
 0x23a   : > { %v2931_v20 = vadd.f32 %v8392_v7, %v2521_v19  ;;  %v6989_v21 = vpop.f32.mrb[38].mxu0  ;;  %7126 = vmatprep.mubr.bf16.mxu1 %v3167_v16 }
 0x23b   : > { %v2934_v22 = vadd.f32 %v6989_v21, %v8392_v7  ;;  %v2524_v23 = vpop.f32.mrb[39].mxu0  ;;  %7127 = vmatmul.mubr.bf16.gmra.mrb[32].mxu1 %v3168_v15  ;;  %v3061_v25 = vmax.f32 %v2933_v18, 0.0  ;;  %v7824_v21 = vld [vmem:[%s9354_s7 + $0x8] sm:$0xff]  }
 0x23c   : > { %v2932_v24 = vadd.f32 %v8392_v7, %v2524_v23  ;;  %v3059_v27 = vmax.f32 %v2931_v20, 0.0  ;;  %7224 = vmatprep.subr.bf16.mxu1 %v7824_v21 }
 0x23d   : > { %v3062_v26 = vmax.f32 %v2934_v22, 0.0  ;;  %7225 = vmatpush3.bf16.msra.mxu1 %v7824_v21 }
 0x23e   : > { %v3060_v28 = vmax.f32 %v2932_v24, 0.0 }
 0x23f   : > { %v3170_v29 = vpack.c.bf16 %v3062_v26, %v3061_v25 }
 0x240   : > { %v3169_v31 = vpack.c.bf16 %v3060_v28, %v3059_v27  ;;  %v6992_v32 = vpop.f32.mrb[40].mxu0 }
 0x241   : > { %v2937_v33 = vadd.f32 %v6992_v32, %v8392_v7  ;;  %v2537_v34 = vpop.f32.mrb[41].mxu0 }
 0x242   : > { %v2935_v35 = vadd.f32 %v8392_v7, %v2537_v34  ;;  %v6993_v36 = vpop.f32.mrb[42].mxu0  ;;  %7130 = vmatprep.mubr.bf16.mxu1 %v3169_v31 }
 0x243   : > { %v2938_v37 = vadd.f32 %v6993_v36, %v8392_v7  ;;  %v2540_v38 = vpop.f32.mrb[43].mxu0  ;;  %7131 = vmatmul.mubr.bf16.gmra.mrb[36].mxu1 %v3170_v29  ;;  %v3065_v40 = vmax.f32 %v2937_v33, 0.0  ;;  %v7825_v29 = vld [vmem:[%s9354_s7 + $0x10] sm:$0xff]  }
 0x244   : > { %v2936_v39 = vadd.f32 %v8392_v7, %v2540_v38  ;;  %v3063_v42 = vmax.f32 %v2935_v35, 0.0  ;;  %7226 = vmatprep.subr.bf16.mxu1 %v7825_v29 }
 0x245   : > { %v3066_v41 = vmax.f32 %v2938_v37, 0.0  ;;  %7227 = vmatpush3.bf16.msra.mxu1 %v7825_v29  ;;  %v7826_v37 = vld [vmem:[%s9354_s7 + $0x18] sm:$0xff]  }
 0x246   : > { %v3064_v43 = vmax.f32 %v2936_v39, 0.0  ;;  %7228 = vmatprep.subr.bf16.mxu1 %v7826_v37 }
 0x247   : > { %v3172_v44 = vpack.c.bf16 %v3066_v41, %v3065_v40 }
 0x248   : > { %v3171_v45 = vpack.c.bf16 %v3064_v43, %v3063_v42  ;;  %v6996_v46 = vpop.f32.mrb[44].mxu0 }
 0x249   : > { %v2941_v47 = vadd.f32 %v6996_v46, %v8392_v7  ;;  %v2553_v48 = vpop.f32.mrb[45].mxu0  ;;  %7229 = vmatpush3.bf16.msra.mxu1 %v7826_v37 }
 0x24a   : > { %v2939_v49 = vadd.f32 %v8392_v7, %v2553_v48  ;;  %v6997_v50 = vpop.f32.mrb[46].mxu0  ;;  %7134 = vmatprep.mubr.bf16.mxu1 %v3171_v45  ;;  %v7827_v45 = vld [vmem:[%s9354_s7 + $0x20] sm:$0xff]  }
 0x24b   : > { %v2942_v51 = vadd.f32 %v6997_v50, %v8392_v7  ;;  %v2556_v52 = vpop.f32.mrb[47].mxu0  ;;  %7135 = vmatmul.mubr.bf16.gmra.mrb[40].mxu1 %v3172_v44  ;;  %v3069_v54 = vmax.f32 %v2941_v47, 0.0  ;;  %7230 = vmatprep.subr.bf16.mxu1 %v7827_v45 }
 0x24c   : > { %v2940_v53 = vadd.f32 %v8392_v7, %v2556_v52  ;;  %v3067_v56 = vmax.f32 %v2939_v49, 0.0 }
 0x24d   : > { %v3070_v55 = vmax.f32 %v2942_v51, 0.0  ;;  %7231 = vmatpush3.bf16.msra.mxu1 %v7827_v45 }
 0x24e   : > { %v3068_v57 = vmax.f32 %v2940_v53, 0.0  ;;  %v7828_v53 = vld [vmem:[%s9354_s7 + $0x28] sm:$0xff]  }
 0x24f   : > { %v3174_v58 = vpack.c.bf16 %v3070_v55, %v3069_v54  ;;  %7232 = vmatprep.subr.bf16.mxu1 %v7828_v53 }
 0x250   : > { %v3173_v59 = vpack.c.bf16 %v3068_v57, %v3067_v56  ;;  %v7000_v60 = vpop.f32.mrb[48].mxu0 }
 0x251   : > { %v2945_v61 = vadd.f32 %v7000_v60, %v8392_v7  ;;  %v2569_v62 = vpop.f32.mrb[49].mxu0  ;;  %7233 = vmatpush3.bf16.msra.mxu1 %v7828_v53 }
 0x252   : > { %v2943_v63 = vadd.f32 %v8392_v7, %v2569_v62  ;;  %v7001_v0 = vpop.f32.mrb[50].mxu0  ;;  %7138 = vmatprep.mubr.bf16.mxu1 %v3173_v59 }
 0x253   : > { %v2946_v1 = vadd.f32 %v7001_v0, %v8392_v7  ;;  %v2572_v2 = vpop.f32.mrb[51].mxu0  ;;  %7139 = vmatmul.mubr.bf16.gmra.mrb[44].mxu1 %v3174_v58  ;;  %v3073_v4 = vmax.f32 %v2945_v61, 0.0  ;;  %v7829_v61 = vld [vmem:[%s9354_s7 + $0x30] sm:$0xff]  }
 0x254   : > { %v2944_v3 = vadd.f32 %v8392_v7, %v2572_v2  ;;  %v3071_v6 = vmax.f32 %v2943_v63, 0.0  ;;  %7234 = vmatprep.subr.bf16.mxu1 %v7829_v61 }
 0x255   : > { %v3074_v5 = vmax.f32 %v2946_v1, 0.0  ;;  %7235 = vmatpush3.bf16.msra.mxu1 %v7829_v61 }
 0x256   : > { %v3072_v8 = vmax.f32 %v2944_v3, 0.0 }
 0x257   : > { %v3176_v9 = vpack.c.bf16 %v3074_v5, %v3073_v4  ;;  %v7830_v5 = vld [vmem:[%s9354_s7 + $0x38] sm:$0xff]  }
 0x258   : > { %v3175_v10 = vpack.c.bf16 %v3072_v8, %v3071_v6  ;;  %v7004_v11 = vpop.f32.mrb[52].mxu0  ;;  %7236 = vmatprep.subr.bf16.mxu1 %v7830_v5 }
 0x259   : > { %v2949_v12 = vadd.f32 %v7004_v11, %v8392_v7  ;;  %v2585_v13 = vpop.f32.mrb[53].mxu0  ;;  %7237 = vmatpush3.bf16.msra.mxu1 %v7830_v5 }
 0x25a   : > { %v2947_v14 = vadd.f32 %v8392_v7, %v2585_v13  ;;  %v7005_v15 = vpop.f32.mrb[54].mxu0  ;;  %7142 = vmatprep.mubr.bf16.mxu1 %v3175_v10 }
 0x25b   : > { %v2950_v16 = vadd.f32 %v7005_v15, %v8392_v7  ;;  %v2588_v17 = vpop.f32.mrb[55].mxu0  ;;  %7143 = vmatmul.mubr.bf16.gmra.mrb[48].mxu1 %v3176_v9  ;;  %v3077_v19 = vmax.f32 %v2949_v12, 0.0 }
 0x25c   : > { %v2948_v18 = vadd.f32 %v8392_v7, %v2588_v17  ;;  %v3075_v22 = vmax.f32 %v2947_v14, 0.0 }
 0x25d   : > { %v3078_v20 = vmax.f32 %v2950_v16, 0.0 }
 0x25e   : > { %v3076_v23 = vmax.f32 %v2948_v18, 0.0 }
 0x25f   : > { %v3178_v24 = vpack.c.bf16 %v3078_v20, %v3077_v19 }
 0x260   : > { %v3177_v25 = vpack.c.bf16 %v3076_v23, %v3075_v22  ;;  %v7008_v26 = vpop.f32.mrb[56].mxu0 }
 0x261   : > { %v2953_v27 = vadd.f32 %v7008_v26, %v8392_v7  ;;  %v2601_v28 = vpop.f32.mrb[57].mxu0 }
 0x262   : > { %v2951_v30 = vadd.f32 %v8392_v7, %v2601_v28  ;;  %v7009_v31 = vpop.f32.mrb[58].mxu0  ;;  %7146 = vmatprep.mubr.bf16.mxu1 %v3177_v25 }
 0x263   : > { %v2954_v32 = vadd.f32 %v7009_v31, %v8392_v7  ;;  %v2604_v33 = vpop.f32.mrb[59].mxu0  ;;  %7147 = vmatmul.mubr.bf16.gmra.mrb[52].mxu1 %v3178_v24  ;;  %v3081_v35 = vmax.f32 %v2953_v27, 0.0 }
 0x264   : > { %v2952_v34 = vadd.f32 %v8392_v7, %v2604_v33  ;;  %v3079_v38 = vmax.f32 %v2951_v30, 0.0 }
 0x265   : > { %v3082_v36 = vmax.f32 %v2954_v32, 0.0 }
 0x266   : > { %v3080_v39 = vmax.f32 %v2952_v34, 0.0 }
 0x267   : > { %v3180_v40 = vpack.c.bf16 %v3082_v36, %v3081_v35 }
 0x268   : > { %v3179_v41 = vpack.c.bf16 %v3080_v39, %v3079_v38  ;;  %v7012_v42 = vpop.f32.mrb[60].mxu0 }
 0x269   : > { %v2957_v43 = vadd.f32 %v7012_v42, %v8392_v7  ;;  %v2617_v44 = vpop.f32.mrb[61].mxu0 }
 0x26a   : > { %v2955_v46 = vadd.f32 %v8392_v7, %v2617_v44  ;;  %v7013_v47 = vpop.f32.mrb[62].mxu0  ;;  %7150 = vmatprep.mubr.bf16.mxu1 %v3179_v41 }
 0x26b   : > { %v2958_v48 = vadd.f32 %v7013_v47, %v8392_v7  ;;  %v2620_v49 = vpop.f32.mrb[63].mxu0  ;;  %7151 = vmatmul.mubr.bf16.gmra.mrb[56].mxu1 %v3180_v40  ;;  %v3085_v51 = vmax.f32 %v2957_v43, 0.0 }
 0x26c   : > { %v2956_v50 = vadd.f32 %v8392_v7, %v2620_v49  ;;  %v3083_v54 = vmax.f32 %v2955_v46, 0.0 }
 0x26d   : > { %v3086_v52 = vmax.f32 %v2958_v48, 0.0 }
 0x26e   : > { %v3084_v55 = vmax.f32 %v2956_v50, 0.0 }
 0x26f   : > { %v3182_v56 = vpack.c.bf16 %v3086_v52, %v3085_v51 }
 0x270   : > { %v3181_v57 = vpack.c.bf16 %v3084_v55, %v3083_v54  ;;  %v7016_v58 = vpop.f32.mrb[64].mxu0 }
 0x271   : > { %v2961_v59 = vadd.f32 %v7016_v58, %v8392_v7  ;;  %v2633_v60 = vpop.f32.mrb[65].mxu0 }
 0x272   : > { %v2959_v62 = vadd.f32 %v8392_v7, %v2633_v60  ;;  %v7017_v63 = vpop.f32.mrb[66].mxu0  ;;  %7154 = vmatprep.mubr.bf16.mxu1 %v3181_v57 }
 0x273   : > { %v2962_v0 = vadd.f32 %v7017_v63, %v8392_v7  ;;  %v2636_v1 = vpop.f32.mrb[67].mxu0  ;;  %7155 = vmatmul.mubr.bf16.gmra.mrb[60].mxu1 %v3182_v56  ;;  %v3089_v3 = vmax.f32 %v2961_v59, 0.0 }
 0x274   : > { %v2960_v2 = vadd.f32 %v8392_v7, %v2636_v1  ;;  %v3087_v6 = vmax.f32 %v2959_v62, 0.0 }
 0x275   : > { %v3090_v4 = vmax.f32 %v2962_v0, 0.0 }
 0x276   : > { %v3088_v8 = vmax.f32 %v2960_v2, 0.0 }
 0x277   : > { %v3184_v9 = vpack.c.bf16 %v3090_v4, %v3089_v3 }
 0x278   : > { %v3183_v10 = vpack.c.bf16 %v3088_v8, %v3087_v6  ;;  %v7020_v11 = vpop.f32.mrb[68].mxu0 }
 0x279   : > { %v2965_v12 = vadd.f32 %v7020_v11, %v8392_v7  ;;  %v2649_v13 = vpop.f32.mrb[69].mxu0 }
 0x27a   : > { %v2963_v14 = vadd.f32 %v8392_v7, %v2649_v13  ;;  %v7021_v15 = vpop.f32.mrb[70].mxu0  ;;  %7158 = vmatprep.mubr.bf16.mxu1 %v3183_v10 }
 0x27b   : > { %v2966_v16 = vadd.f32 %v7021_v15, %v8392_v7  ;;  %v2652_v17 = vpop.f32.mrb[71].mxu0  ;;  %7159 = vmatmul.mubr.bf16.gmra.mrb[64].mxu1 %v3184_v9  ;;  %v3093_v19 = vmax.f32 %v2965_v12, 0.0 }
 0x27c   : > { %v2964_v18 = vadd.f32 %v8392_v7, %v2652_v17  ;;  %v3091_v21 = vmax.f32 %v2963_v14, 0.0 }
 0x27d   : > { %v3094_v20 = vmax.f32 %v2966_v16, 0.0 }
 0x27e   : > { %v3092_v22 = vmax.f32 %v2964_v18, 0.0 }
 0x27f   : > { %v3186_v23 = vpack.c.bf16 %v3094_v20, %v3093_v19 }
 0x280   : > { %v3185_v24 = vpack.c.bf16 %v3092_v22, %v3091_v21  ;;  %v7024_v25 = vpop.f32.mrb[72].mxu0 }
 0x281   : > { %v2969_v26 = vadd.f32 %v7024_v25, %v8392_v7  ;;  %v2665_v27 = vpop.f32.mrb[73].mxu0 }
 0x282   : > { %v2967_v28 = vadd.f32 %v8392_v7, %v2665_v27  ;;  %v7025_v29 = vpop.f32.mrb[74].mxu0  ;;  %7162 = vmatprep.mubr.bf16.mxu1 %v3185_v24 }
 0x283   : > { %v2970_v30 = vadd.f32 %v7025_v29, %v8392_v7  ;;  %v2668_v31 = vpop.f32.mrb[75].mxu0  ;;  %7163 = vmatmul.mubr.bf16.gmra.mrb[68].mxu1 %v3186_v23  ;;  %v3097_v33 = vmax.f32 %v2969_v26, 0.0 }
 0x284   : > { %v2968_v32 = vadd.f32 %v8392_v7, %v2668_v31  ;;  %v3095_v35 = vmax.f32 %v2967_v28, 0.0 }
 0x285   : > { %v3098_v34 = vmax.f32 %v2970_v30, 0.0 }
 0x286   : > { %v3096_v36 = vmax.f32 %v2968_v32, 0.0 }
 0x287   : > { %v3188_v37 = vpack.c.bf16 %v3098_v34, %v3097_v33 }
 0x288   : > { %v3187_v38 = vpack.c.bf16 %v3096_v36, %v3095_v35  ;;  %v7028_v39 = vpop.f32.mrb[76].mxu0 }
 0x289   : > { %v2973_v40 = vadd.f32 %v7028_v39, %v8392_v7  ;;  %v2681_v41 = vpop.f32.mrb[77].mxu0 }
 0x28a   : > { %v2971_v42 = vadd.f32 %v8392_v7, %v2681_v41  ;;  %v7029_v43 = vpop.f32.mrb[78].mxu0  ;;  %7166 = vmatprep.mubr.bf16.mxu1 %v3187_v38 }
 0x28b   : > { %v2974_v44 = vadd.f32 %v7029_v43, %v8392_v7  ;;  %v2684_v45 = vpop.f32.mrb[79].mxu0  ;;  %7167 = vmatmul.mubr.bf16.gmra.mrb[72].mxu1 %v3188_v37  ;;  %v3101_v47 = vmax.f32 %v2973_v40, 0.0 }
 0x28c   : > { %v2972_v46 = vadd.f32 %v8392_v7, %v2684_v45  ;;  %v3099_v49 = vmax.f32 %v2971_v42, 0.0 }
 0x28d   : > { %v3102_v48 = vmax.f32 %v2974_v44, 0.0 }
 0x28e   : > { %v3100_v50 = vmax.f32 %v2972_v46, 0.0 }
 0x28f   : > { %v3190_v51 = vpack.c.bf16 %v3102_v48, %v3101_v47 }
 0x290   : > { %v3189_v52 = vpack.c.bf16 %v3100_v50, %v3099_v49  ;;  %v7032_v53 = vpop.f32.mrb[80].mxu0 }
 0x291   : > { %v2977_v54 = vadd.f32 %v7032_v53, %v8392_v7  ;;  %v2697_v55 = vpop.f32.mrb[81].mxu0 }
 0x292   : > { %v2975_v56 = vadd.f32 %v8392_v7, %v2697_v55  ;;  %v7033_v57 = vpop.f32.mrb[82].mxu0  ;;  %7170 = vmatprep.mubr.bf16.mxu1 %v3189_v52 }
 0x293   : > { %v2978_v58 = vadd.f32 %v7033_v57, %v8392_v7  ;;  %v2700_v59 = vpop.f32.mrb[83].mxu0  ;;  %7171 = vmatmul.mubr.bf16.gmra.mrb[76].mxu1 %v3190_v51  ;;  %v3105_v61 = vmax.f32 %v2977_v54, 0.0 }
 0x294   : > { %v2976_v60 = vadd.f32 %v8392_v7, %v2700_v59  ;;  %v3103_v63 = vmax.f32 %v2975_v56, 0.0 }
 0x295   : > { %v3106_v62 = vmax.f32 %v2978_v58, 0.0 }
 0x296   : > { %v3104_v0 = vmax.f32 %v2976_v60, 0.0 }
 0x297   : > { %v3192_v1 = vpack.c.bf16 %v3106_v62, %v3105_v61 }
 0x298   : > { %v3191_v2 = vpack.c.bf16 %v3104_v0, %v3103_v63  ;;  %v7036_v3 = vpop.f32.mrb[84].mxu0 }
 0x299   : > { %v2981_v4 = vadd.f32 %v7036_v3, %v8392_v7  ;;  %v2713_v5 = vpop.f32.mrb[85].mxu0 }
 0x29a   : > { %v2979_v6 = vadd.f32 %v8392_v7, %v2713_v5  ;;  %v7037_v8 = vpop.f32.mrb[86].mxu0  ;;  %7174 = vmatprep.mubr.bf16.mxu1 %v3191_v2 }
 0x29b   : > { %v2982_v9 = vadd.f32 %v7037_v8, %v8392_v7  ;;  %v2716_v10 = vpop.f32.mrb[87].mxu0  ;;  %7175 = vmatmul.mubr.bf16.gmra.mrb[80].mxu1 %v3192_v1  ;;  %v3109_v12 = vmax.f32 %v2981_v4, 0.0 }
 0x29c   : > { %v2980_v11 = vadd.f32 %v8392_v7, %v2716_v10  ;;  %v3107_v14 = vmax.f32 %v2979_v6, 0.0 }
 0x29d   : > { %v3110_v13 = vmax.f32 %v2982_v9, 0.0 }
 0x29e   : > { %v3108_v15 = vmax.f32 %v2980_v11, 0.0 }
 0x29f   : > { %v3194_v16 = vpack.c.bf16 %v3110_v13, %v3109_v12 }
 0x2a0   : > { %v3193_v17 = vpack.c.bf16 %v3108_v15, %v3107_v14  ;;  %v7040_v18 = vpop.f32.mrb[88].mxu0 }
 0x2a1   : > { %v2985_v19 = vadd.f32 %v7040_v18, %v8392_v7  ;;  %v2729_v20 = vpop.f32.mrb[89].mxu0 }
 0x2a2   : > { %v2983_v21 = vadd.f32 %v8392_v7, %v2729_v20  ;;  %v7041_v22 = vpop.f32.mrb[90].mxu0  ;;  %7178 = vmatprep.mubr.bf16.mxu1 %v3193_v17 }
 0x2a3   : > { %v2986_v23 = vadd.f32 %v7041_v22, %v8392_v7  ;;  %v2732_v24 = vpop.f32.mrb[91].mxu0  ;;  %7179 = vmatmul.mubr.bf16.gmra.mrb[84].mxu1 %v3194_v16  ;;  %v3113_v26 = vmax.f32 %v2985_v19, 0.0 }
 0x2a4   : > { %v2984_v25 = vadd.f32 %v8392_v7, %v2732_v24  ;;  %v3111_v28 = vmax.f32 %v2983_v21, 0.0 }
 0x2a5   : > { %v3114_v27 = vmax.f32 %v2986_v23, 0.0 }
 0x2a6   : > { %v3112_v29 = vmax.f32 %v2984_v25, 0.0 }
 0x2a7   : > { %v3196_v30 = vpack.c.bf16 %v3114_v27, %v3113_v26 }
 0x2a8   : > { %v3195_v31 = vpack.c.bf16 %v3112_v29, %v3111_v28  ;;  %v7044_v32 = vpop.f32.mrb[92].mxu0 }
 0x2a9   : > { %v2989_v33 = vadd.f32 %v7044_v32, %v8392_v7  ;;  %v2745_v34 = vpop.f32.mrb[93].mxu0 }
 0x2aa   : > { %v2987_v35 = vadd.f32 %v8392_v7, %v2745_v34  ;;  %v7045_v36 = vpop.f32.mrb[94].mxu0  ;;  %7182 = vmatprep.mubr.bf16.mxu1 %v3195_v31 }
 0x2ab   : > { %v2990_v37 = vadd.f32 %v7045_v36, %v8392_v7  ;;  %v2748_v38 = vpop.f32.mrb[95].mxu0  ;;  %7183 = vmatmul.mubr.bf16.gmra.mrb[88].mxu1 %v3196_v30  ;;  %v3117_v40 = vmax.f32 %v2989_v33, 0.0  ;;  %v8552_v33 = vld [vmem:[%s9353_s6] ss:$0 sm:$0xff] }
 0x2ac   : > { %v2988_v39 = vadd.f32 %v8392_v7, %v2748_v38  ;;  %v3115_v42 = vmax.f32 %v2987_v35, 0.0 }
 0x2ad   : > { %v3118_v41 = vmax.f32 %v2990_v37, 0.0 }
 0x2ae   : > { %v3116_v43 = vmax.f32 %v2988_v39, 0.0 }
 0x2af   : > { %v3198_v44 = vpack.c.bf16 %v3118_v41, %v3117_v40 }
 0x2b0   : > { %v3197_v45 = vpack.c.bf16 %v3116_v43, %v3115_v42  ;;  %v7048_v46 = vpop.f32.mrb[96].mxu0 }
 0x2b1   : > { %v2993_v47 = vadd.f32 %v7048_v46, %v8392_v7  ;;  %v2761_v48 = vpop.f32.mrb[97].mxu0 }
 0x2b2   : > { %v2991_v49 = vadd.f32 %v8392_v7, %v2761_v48  ;;  %v7049_v50 = vpop.f32.mrb[98].mxu0  ;;  %7186 = vmatprep.mubr.bf16.mxu1 %v3197_v45 }
 0x2b3   : > { %v2994_v51 = vadd.f32 %v7049_v50, %v8392_v7  ;;  %v2764_v52 = vpop.f32.mrb[99].mxu0  ;;  %7187 = vmatmul.mubr.bf16.gmra.mrb[92].mxu1 %v3198_v44  ;;  %v3121_v54 = vmax.f32 %v2993_v47, 0.0 }
 0x2b4   : > { %v2992_v53 = vadd.f32 %v8392_v7, %v2764_v52  ;;  %v3119_v56 = vmax.f32 %v2991_v49, 0.0 }
 0x2b5   : > { %v3122_v55 = vmax.f32 %v2994_v51, 0.0 }
 0x2b6   : > { %v3120_v57 = vmax.f32 %v2992_v53, 0.0 }
 0x2b7   : > { %v3200_v58 = vpack.c.bf16 %v3122_v55, %v3121_v54 }
 0x2b8   : > { %v3199_v59 = vpack.c.bf16 %v3120_v57, %v3119_v56  ;;  %v7052_v60 = vpop.f32.mrb[100].mxu0 }
 0x2b9   : > { %v2997_v61 = vadd.f32 %v7052_v60, %v8392_v7  ;;  %v2777_v62 = vpop.f32.mrb[101].mxu0 }
 0x2ba   : > { %v2995_v63 = vadd.f32 %v8392_v7, %v2777_v62  ;;  %v7053_v0 = vpop.f32.mrb[102].mxu0  ;;  %7190 = vmatprep.mubr.bf16.mxu1 %v3199_v59  ;;  %v8564_v59 = vld [vmem:[%s9351_s4] ss:$0 sm:$0xff] }
 0x2bb   : > { %v2998_v1 = vadd.f32 %v7053_v0, %v8392_v7  ;;  %v2780_v2 = vpop.f32.mrb[103].mxu0  ;;  %7191 = vmatmul.mubr.bf16.gmra.mrb[96].mxu1 %v3200_v58  ;;  %v3125_v4 = vmax.f32 %v2997_v61, 0.0 }
 0x2bc   : > { %v2996_v3 = vadd.f32 %v8392_v7, %v2780_v2  ;;  %v3123_v6 = vmax.f32 %v2995_v63, 0.0 }
 0x2bd   : > { %v3126_v5 = vmax.f32 %v2998_v1, 0.0 }
 0x2be   : > { %v3124_v8 = vmax.f32 %v2996_v3, 0.0 }
 0x2bf   : > { %v3202_v9 = vpack.c.bf16 %v3126_v5, %v3125_v4 }
 0x2c0   : > { %v3201_v10 = vpack.c.bf16 %v3124_v8, %v3123_v6  ;;  %v7056_v11 = vpop.f32.mrb[104].mxu0 }
 0x2c1   : > { %v3001_v12 = vadd.f32 %v7056_v11, %v8392_v7  ;;  %v2793_v13 = vpop.f32.mrb[105].mxu0 }
 0x2c2   : > { %v2999_v14 = vadd.f32 %v8392_v7, %v2793_v13  ;;  %v7057_v15 = vpop.f32.mrb[106].mxu0  ;;  %7194 = vmatprep.mubr.bf16.mxu1 %v3201_v10 }
 0x2c3   : > { %v3002_v16 = vadd.f32 %v7057_v15, %v8392_v7  ;;  %v2796_v17 = vpop.f32.mrb[107].mxu0  ;;  %7195 = vmatmul.mubr.bf16.gmra.mrb[100].mxu1 %v3202_v9  ;;  %v3129_v19 = vmax.f32 %v3001_v12, 0.0 }
 0x2c4   : > { %v3000_v18 = vadd.f32 %v8392_v7, %v2796_v17  ;;  %v3127_v21 = vmax.f32 %v2999_v14, 0.0 }
 0x2c5   : > { %v3130_v20 = vmax.f32 %v3002_v16, 0.0 }
 0x2c6   : > { %v3128_v22 = vmax.f32 %v3000_v18, 0.0 }
 0x2c7   : > { %v3204_v23 = vpack.c.bf16 %v3130_v20, %v3129_v19 }
 0x2c8   : > { %v3203_v24 = vpack.c.bf16 %v3128_v22, %v3127_v21  ;;  %v7060_v25 = vpop.f32.mrb[108].mxu0 }
 0x2c9   : > { %v3005_v26 = vadd.f32 %v7060_v25, %v8392_v7  ;;  %v2809_v27 = vpop.f32.mrb[109].mxu0 }
 0x2ca   : > { %v3003_v28 = vadd.f32 %v8392_v7, %v2809_v27  ;;  %v7061_v29 = vpop.f32.mrb[110].mxu0  ;;  %7198 = vmatprep.mubr.bf16.mxu1 %v3203_v24 }
 0x2cb   : > { %v3006_v30 = vadd.f32 %v7061_v29, %v8392_v7  ;;  %v2812_v31 = vpop.f32.mrb[111].mxu0  ;;  %7199 = vmatmul.mubr.bf16.gmra.mrb[104].mxu1 %v3204_v23  ;;  %v3133_v34 = vmax.f32 %v3005_v26, 0.0 }
 0x2cc   : > { %v3004_v32 = vadd.f32 %v8392_v7, %v2812_v31  ;;  %v3131_v36 = vmax.f32 %v3003_v28, 0.0 }
 0x2cd   : > { %v3134_v35 = vmax.f32 %v3006_v30, 0.0 }
 0x2ce   : > { %v3132_v37 = vmax.f32 %v3004_v32, 0.0  ;;  %v7096_v38 = vpop.f32.mrb[0].mxu1 }
 0x2cf   : > { %v3206_v39 = vpack.c.bf16 %v3134_v35, %v3133_v34  ;;  %v3329_v40 = vadd.f32 %v7096_v38, %v8552_v33  ;;  %v3320_v41 = vpop.f32.mrb[1].mxu1 }
 0x2d0   : > { %v3205_v42 = vpack.c.bf16 %v3132_v37, %v3131_v36  ;;  %v3321_v43 = vadd.f32 %v8552_v33, %v3320_v41  ;;  %v7064_v44 = vpop.f32.mrb[112].mxu0  ;;  %v7097_v45 = vpop.f32.mrb[2].mxu1 }
 0x2d1   : > { %v3009_v46 = vadd.f32 %v7064_v44, %v8392_v7  ;;  %v3332_v47 = vadd.f32 %v7097_v45, %v8552_v33  ;;  %v2825_v48 = vpop.f32.mrb[113].mxu0  ;;  %v3323_v49 = vpop.f32.mrb[3].mxu1  ;;  %v3833_v53 = vmax.f32 %v3329_v40, 0.0 }
 0x2d2   : > { %v3007_v50 = vadd.f32 %v8392_v7, %v2825_v48  ;;  %v3324_v51 = vadd.f32 %v8552_v33, %v3323_v49  ;;  %v7065_v52 = vpop.f32.mrb[114].mxu0  ;;  %7202 = vmatprep.mubr.bf16.mxu1 %v3205_v42  ;;  %v3831_v57 = vmax.f32 %v3321_v43, 0.0 }
 0x2d3   : > { %v3834_v54 = vmax.f32 %v3332_v47, 0.0  ;;  %v3010_v55 = vadd.f32 %v7065_v52, %v8392_v7  ;;  %v2828_v56 = vpop.f32.mrb[115].mxu0  ;;  %7203 = vmatmul.mubr.bf16.gmra.mrb[108].mxu1 %v3206_v39  ;;  %v3137_v61 = vmax.f32 %v3009_v46, 0.0 }
 0x2d4   : > { %v3832_v58 = vmax.f32 %v3324_v51, 0.0  ;;  %v3008_v60 = vadd.f32 %v8564_v59, %v2828_v56  ;;  %v3135_v0 = vmax.f32 %v3007_v50, 0.0 }
 0x2d5   : > { %v8567_v62 = vpack.c.bf16 %v3834_v54, %v3833_v53  ;;  %v3138_v63 = vmax.f32 %v3010_v55, 0.0 }
 0x2d6   : > { %v3136_v1 = vmax.f32 %v3008_v60, 0.0  ;;  %v7100_v2 = vpop.f32.mrb[4].mxu1  ;;  %v8569_v3 = vpack.c.bf16 %v3832_v58, %v3831_v57 }
 0x2d7   : > { %v3208_v7 = vpack.c.bf16 %v3138_v63, %v3137_v61  ;;  %v3345_v4 = vadd.f32 %v7100_v2, %v8552_v33  ;;  %v3336_v5 = vpop.f32.mrb[5].mxu1 }
 0x2d8   : > { %v3207_v6 = vpack.c.bf16 %v3136_v1, %v3135_v0  ;;  %v3337_v8 = vadd.f32 %v8552_v33, %v3336_v5  ;;  %v7068_v9 = vpop.f32.mrb[116].mxu0  ;;  %v7101_v10 = vpop.f32.mrb[6].mxu1 }
 0x2d9   : > { %v3013_v11 = vadd.f32 %v8564_v59, %v7068_v9  ;;  %v3348_v12 = vadd.f32 %v7101_v10, %v8552_v33  ;;  %v2841_v13 = vpop.f32.mrb[117].mxu0  ;;  %v3339_v14 = vpop.f32.mrb[7].mxu1  ;;  %v3837_v18 = vmax.f32 %v3345_v4, 0.0 }
 0x2da   : > { %v3011_v15 = vadd.f32 %v8564_v59, %v2841_v13  ;;  %v3340_v16 = vadd.f32 %v8552_v33, %v3339_v14  ;;  %v7069_v17 = vpop.f32.mrb[118].mxu0  ;;  %7206 = vmatprep.mubr.bf16.mxu1 %v3207_v6  ;;  %v3835_v22 = vmax.f32 %v3337_v8, 0.0 }
 0x2db   : > { %v3838_v19 = vmax.f32 %v3348_v12, 0.0  ;;  %v3014_v20 = vadd.f32 %v8564_v59, %v7069_v17  ;;  %v2844_v21 = vpop.f32.mrb[119].mxu0  ;;  %7207 = vmatmul.mubr.bf16.gmra.mrb[112].mxu1 %v3208_v7  ;;  %v3141_v25 = vmax.f32 %v3013_v11, 0.0 }
 0x2dc   : > { %v3836_v23 = vmax.f32 %v3340_v16, 0.0  ;;  %v3012_v24 = vadd.f32 %v8564_v59, %v2844_v21  ;;  %v3139_v28 = vmax.f32 %v3011_v15, 0.0 }
 0x2dd   : > { %v3142_v26 = vmax.f32 %v3014_v20, 0.0  ;;  %v8579_v27 = vpack.c.bf16 %v3838_v19, %v3837_v18 }
 0x2de   : > { %v3140_v29 = vmax.f32 %v3012_v24, 0.0  ;;  %v7104_v30 = vpop.f32.mrb[8].mxu1  ;;  %v8581_v31 = vpack.c.bf16 %v3836_v23, %v3835_v22 }
 0x2df   : > { %v3210_v32 = vpack.c.bf16 %v3142_v26, %v3141_v25  ;;  %v3361_v34 = vadd.f32 %v7104_v30, %v8552_v33  ;;  %v3352_v35 = vpop.f32.mrb[9].mxu1 }
 0x2e0   : > { %v3209_v36 = vpack.c.bf16 %v3140_v29, %v3139_v28  ;;  %v3353_v37 = vadd.f32 %v8552_v33, %v3352_v35  ;;  %v7072_v38 = vpop.f32.mrb[120].mxu0  ;;  %v7105_v39 = vpop.f32.mrb[10].mxu1 }
 0x2e1   : > { %v3017_v40 = vadd.f32 %v8564_v59, %v7072_v38  ;;  %v3364_v41 = vadd.f32 %v7105_v39, %v8552_v33  ;;  %v2857_v42 = vpop.f32.mrb[121].mxu0  ;;  %v3355_v43 = vpop.f32.mrb[11].mxu1  ;;  %v3841_v47 = vmax.f32 %v3361_v34, 0.0 }
 0x2e2   : > { %v3015_v44 = vadd.f32 %v8564_v59, %v2857_v42  ;;  %v3356_v45 = vadd.f32 %v8552_v33, %v3355_v43  ;;  %v7073_v46 = vpop.f32.mrb[122].mxu0  ;;  %7210 = vmatprep.mubr.bf16.mxu1 %v3209_v36  ;;  %v3839_v51 = vmax.f32 %v3353_v37, 0.0 }
 0x2e3   : > { %v3842_v48 = vmax.f32 %v3364_v41, 0.0  ;;  %v3018_v49 = vadd.f32 %v8564_v59, %v7073_v46  ;;  %v2860_v50 = vpop.f32.mrb[123].mxu0  ;;  %7211 = vmatmul.mubr.bf16.gmra.mrb[116].mxu1 %v3210_v32  ;;  %v3145_v54 = vmax.f32 %v3017_v40, 0.0 }
 0x2e4   : > { %v3840_v52 = vmax.f32 %v3356_v45, 0.0  ;;  %v3016_v53 = vadd.f32 %v8564_v59, %v2860_v50  ;;  %v3143_v57 = vmax.f32 %v3015_v44, 0.0 }
 0x2e5   : > { %v3146_v55 = vmax.f32 %v3018_v49, 0.0  ;;  %v8591_v56 = vpack.c.bf16 %v3842_v48, %v3841_v47 }
 0x2e6   : > { %v3144_v58 = vmax.f32 %v3016_v53, 0.0  ;;  %v7108_v60 = vpop.f32.mrb[12].mxu1  ;;  %v8593_v61 = vpack.c.bf16 %v3840_v52, %v3839_v51 }
 0x2e7   : > { %v3212_v63 = vpack.c.bf16 %v3146_v55, %v3145_v54  ;;  %v3377_v0 = vadd.f32 %v7108_v60, %v8552_v33  ;;  %v3368_v1 = vpop.f32.mrb[13].mxu1 }
 0x2e8   : > { %v3211_v2 = vpack.c.bf16 %v3144_v58, %v3143_v57  ;;  %v3369_v7 = vadd.f32 %v8552_v33, %v3368_v1  ;;  %v7076_v4 = vpop.f32.mrb[124].mxu0  ;;  %v7109_v5 = vpop.f32.mrb[14].mxu1 }
 0x2e9   : > { %v3021_v6 = vadd.f32 %v8564_v59, %v7076_v4  ;;  %v3380_v8 = vadd.f32 %v7109_v5, %v8552_v33  ;;  %v2873_v9 = vpop.f32.mrb[125].mxu0  ;;  %v3371_v10 = vpop.f32.mrb[15].mxu1  ;;  %v3845_v14 = vmax.f32 %v3377_v0, 0.0 }
 0x2ea   : > { %v3019_v11 = vadd.f32 %v8564_v59, %v2873_v9  ;;  %v3372_v12 = vadd.f32 %v8552_v33, %v3371_v10  ;;  %v7077_v13 = vpop.f32.mrb[126].mxu0  ;;  %7214 = vmatprep.mubr.bf16.mxu1 %v3211_v2  ;;  %v3843_v18 = vmax.f32 %v3369_v7, 0.0 }
 0x2eb   : > { %v3846_v15 = vmax.f32 %v3380_v8, 0.0  ;;  %v3022_v16 = vadd.f32 %v8564_v59, %v7077_v13  ;;  %v2876_v17 = vpop.f32.mrb[127].mxu0  ;;  %7215 = vmatmul.mubr.bf16.gmra.mrb[120].mxu1 %v3212_v63  ;;  %v3149_v21 = vmax.f32 %v3021_v6, 0.0 }
 0x2ec   : > { %v3844_v19 = vmax.f32 %v3372_v12, 0.0  ;;  %v3020_v20 = vadd.f32 %v8564_v59, %v2876_v17  ;;  %v3147_v24 = vmax.f32 %v3019_v11, 0.0 }
 0x2ed   : > { %v3150_v22 = vmax.f32 %v3022_v16, 0.0  ;;  %v8603_v23 = vpack.c.bf16 %v3846_v15, %v3845_v14 }
 0x2ee   : > { %v3148_v25 = vmax.f32 %v3020_v20, 0.0  ;;  %v7112_v26 = vpop.f32.mrb[16].mxu1  ;;  %v8605_v28 = vpack.c.bf16 %v3844_v19, %v3843_v18 }
 0x2ef   : > { %v3214_v29 = vpack.c.bf16 %v3150_v22, %v3149_v21  ;;  %v3393_v30 = vadd.f32 %v7112_v26, %v8552_v33  ;;  %v3384_v32 = vpop.f32.mrb[17].mxu1 }
 0x2f0   : > { %v3213_v34 = vpack.c.bf16 %v3148_v25, %v3147_v24  ;;  %v3385_v35 = vadd.f32 %v8552_v33, %v3384_v32  ;;  %v7113_v36 = vpop.f32.mrb[18].mxu1 }
 0x2f1   : > { %v3396_v37 = vadd.f32 %v7113_v36, %v8552_v33  ;;  %v3387_v59 = vpop.f32.mrb[19].mxu1  ;;  %v3849_v39 = vmax.f32 %v3393_v30, 0.0 }
 0x2f2   : > { %v3388_v38 = vadd.f32 %v8552_v33, %v3387_v59  ;;  %7218 = vmatprep.mubr.bf16.mxu1 %v3213_v34  ;;  %v3847_v41 = vmax.f32 %v3385_v35, 0.0 }
 0x2f3   : > { %v3850_v40 = vmax.f32 %v3396_v37, 0.0  ;;  %7219 = vmatmul.mubr.bf16.gmra.mrb[124].mxu1 %v3214_v29 }
 0x2f4   : > { %v3848_v42 = vmax.f32 %v3388_v38, 0.0  ;;  %7238 = vmatprep.mubr.bf16.mxu1 %v8569_v3 }
 0x2f5   : > { %v8612_v43 = vpack.c.bf16 %v3850_v40, %v3849_v39 }
 0x2f6   : > { %v3967_v44 = vpack.c.bf16 %v3848_v42, %v3847_v41  ;;  %v7116_v45 = vpop.f32.mrb[20].mxu1 }
 0x2f7   : > { %v3409_v46 = vadd.f32 %v7116_v45, %v8552_v33  ;;  %v3400_v47 = vpop.f32.mrb[21].mxu1 }
 0x2f8   : > { %v3401_v48 = vadd.f32 %v8552_v33, %v3400_v47  ;;  %v7117_v49 = vpop.f32.mrb[22].mxu1 }
 0x2f9   : > { %v3412_v50 = vadd.f32 %v7117_v49, %v8552_v33  ;;  %v3403_v51 = vpop.f32.mrb[23].mxu1  ;;  %v3853_v53 = vmax.f32 %v3409_v46, 0.0 }
 0x2fa   : > { %v3404_v52 = vadd.f32 %v8552_v33, %v3403_v51  ;;  %v3851_v3 = vmax.f32 %v3401_v48, 0.0 }
 0x2fb   : > { %v3854_v54 = vmax.f32 %v3412_v50, 0.0  ;;  %7239 = vmatmul.mubr.bf16.vlgmr.msra.gmra.mrb[128].mxu1 %v8567_v62 }
 0x2fc   : > { %v3852_v55 = vmax.f32 %v3404_v52, 0.0  ;;  %7242 = vmatprep.mubr.bf16.mxu1 %v8581_v31  ;;  %v7831_v52 = vld [vmem:[%s9356_s9] sm:$0xff]  }
 0x2fd   : > { %v8620_v57 = vpack.c.bf16 %v3854_v54, %v3853_v53  ;;  %7366 = vmatprep.subr.bf16.mxu0 %v7831_v52 }
 0x2fe   : > { %v3969_v58 = vpack.c.bf16 %v3852_v55, %v3851_v3  ;;  %v7120_v60 = vpop.f32.mrb[24].mxu1  ;;  %7367 = vmatpush3.bf16.msra.mxu0 %v7831_v52 }
 0x2ff   : > { %v3425_v63 = vadd.f32 %v7120_v60, %v8552_v33  ;;  %v3416_v0 = vpop.f32.mrb[25].mxu1 }
 0x300   : > { %v3417_v1 = vadd.f32 %v8552_v33, %v3416_v0  ;;  %v7121_v2 = vpop.f32.mrb[26].mxu1 }
 0x301   : > { %v3428_v7 = vadd.f32 %v7121_v2, %v8552_v33  ;;  %v3419_v4 = vpop.f32.mrb[27].mxu1  ;;  %v3857_v62 = vmax.f32 %v3425_v63, 0.0 }
 0x302   : > { %v3420_v5 = vadd.f32 %v8552_v33, %v3419_v4  ;;  %v3855_v31 = vmax.f32 %v3417_v1, 0.0 }
 0x303   : > { %v3858_v6 = vmax.f32 %v3428_v7, 0.0  ;;  %7243 = vmatmul.mubr.bf16.gmra.mrb[132].mxu1 %v8579_v27 }
 0x304   : > { %v3856_v8 = vmax.f32 %v3420_v5, 0.0  ;;  %7246 = vmatprep.mubr.bf16.mxu1 %v8593_v61 }
 0x305   : > { %v8628_v9 = vpack.c.bf16 %v3858_v6, %v3857_v62 }
 0x306   : > { %v8630_v10 = vpack.c.bf16 %v3856_v8, %v3855_v31  ;;  %v7124_v11 = vpop.f32.mrb[28].mxu1 }
 0x307   : > { %v3441_v12 = vadd.f32 %v7124_v11, %v8552_v33  ;;  %v3432_v13 = vpop.f32.mrb[29].mxu1 }
 0x308   : > { %v3433_v14 = vadd.f32 %v8552_v33, %v3432_v13  ;;  %v7125_v15 = vpop.f32.mrb[30].mxu1 }
 0x309   : > { %v3444_v16 = vadd.f32 %v7125_v15, %v8552_v33  ;;  %v3435_v17 = vpop.f32.mrb[31].mxu1  ;;  %v3861_v18 = vmax.f32 %v3441_v12, 0.0 }
 0x30a   : > { %v3436_v27 = vadd.f32 %v8552_v33, %v3435_v17  ;;  %v3859_v61 = vmax.f32 %v3433_v14, 0.0 }
 0x30b   : > { %v3862_v19 = vmax.f32 %v3444_v16, 0.0  ;;  %7247 = vmatmul.mubr.bf16.gmra.mrb[136].mxu1 %v8591_v56 }
 0x30c   : > { %v3860_v20 = vmax.f32 %v3436_v27, 0.0  ;;  %7250 = vmatprep.mubr.bf16.mxu1 %v8605_v28 }
 0x30d   : > { %v8638_v21 = vpack.c.bf16 %v3862_v19, %v3861_v18 }
 0x30e   : > { %v8640_v22 = vpack.c.bf16 %v3860_v20, %v3859_v61  ;;  %v7128_v24 = vpop.f32.mrb[32].mxu1 }
 0x30f   : > { %v3457_v25 = vadd.f32 %v7128_v24, %v8552_v33  ;;  %v3448_v26 = vpop.f32.mrb[33].mxu1 }
 0x310   : > { %v3449_v29 = vadd.f32 %v8552_v33, %v3448_v26  ;;  %v7129_v30 = vpop.f32.mrb[34].mxu1 }
 0x311   : > { %v3460_v32 = vadd.f32 %v7129_v30, %v8552_v33  ;;  %v3451_v34 = vpop.f32.mrb[35].mxu1  ;;  %v3865_v35 = vmax.f32 %v3457_v25, 0.0 }
 0x312   : > { %v3452_v56 = vadd.f32 %v8552_v33, %v3451_v34  ;;  %v3863_v28 = vmax.f32 %v3449_v29, 0.0 }
 0x313   : > { %v3866_v36 = vmax.f32 %v3460_v32, 0.0  ;;  %7251 = vmatmul.mubr.bf16.gmra.mrb[140].mxu1 %v8603_v23 }
 0x314   : > { %v3864_v37 = vmax.f32 %v3452_v56, 0.0  ;;  %7254 = vmatprep.mubr.bf16.mxu1 %v3967_v44 }
 0x315   : > { %v8647_v59 = vpack.c.bf16 %v3866_v36, %v3865_v35 }
 0x316   : > { %v8649_v38 = vpack.c.bf16 %v3864_v37, %v3863_v28  ;;  %v7132_v39 = vpop.f32.mrb[36].mxu1 }
 0x317   : > { %v3473_v40 = vadd.f32 %v7132_v39, %v8552_v33  ;;  %v3464_v41 = vpop.f32.mrb[37].mxu1 }
 0x318   : > { %v3465_v42 = vadd.f32 %v8552_v33, %v3464_v41  ;;  %v7133_v45 = vpop.f32.mrb[38].mxu1 }
 0x319   : > { %v3476_v46 = vadd.f32 %v7133_v45, %v8552_v33  ;;  %v3467_v47 = vpop.f32.mrb[39].mxu1  ;;  %v3869_v23 = vmax.f32 %v3473_v40, 0.0 }
 0x31a   : > { %v3468_v48 = vadd.f32 %v8552_v33, %v3467_v47  ;;  %v3867_v44 = vmax.f32 %v3465_v42, 0.0 }
 0x31b   : > { %v3870_v49 = vmax.f32 %v3476_v46, 0.0  ;;  %7255 = vmatmul.mubr.bf16.gmra.mrb[144].mxu1 %v8612_v43 }
 0x31c   : > { %v3868_v50 = vmax.f32 %v3468_v48, 0.0  ;;  %7258 = vmatprep.mubr.bf16.mxu1 %v3969_v58 }
 0x31d   : > { %v8656_v51 = vpack.c.bf16 %v3870_v49, %v3869_v23 }
 0x31e   : > { %v8661_v53 = vpack.c.bf16 %v3868_v50, %v3867_v44  ;;  %v7136_v54 = vpop.f32.mrb[40].mxu1 }
 0x31f   : > { %v3489_v3 = vadd.f32 %v7136_v54, %v8552_v33  ;;  %v3480_v55 = vpop.f32.mrb[41].mxu1 }
 0x320   : > { %v3481_v60 = vadd.f32 %v8552_v33, %v3480_v55  ;;  %v7137_v63 = vpop.f32.mrb[42].mxu1 }
 0x321   : > { %v3492_v43 = vadd.f32 %v7137_v63, %v8552_v33  ;;  %v3483_v58 = vpop.f32.mrb[43].mxu1  ;;  %v3873_v1 = vmax.f32 %v3489_v3, 0.0 }
 0x322   : > { %v3484_v0 = vadd.f32 %v8552_v33, %v3483_v58  ;;  %v3871_v7 = vmax.f32 %v3481_v60, 0.0  ;;  %v7834_v58 = vld [vmem:[%s9356_s9 + $0x18] sm:$0xff]  }
 0x323   : > { %v3874_v2 = vmax.f32 %v3492_v43, 0.0  ;;  %7259 = vmatmul.mubr.bf16.gmra.mrb[148].mxu1 %v8620_v57 }
 0x324   : > { %v3872_v4 = vmax.f32 %v3484_v0, 0.0  ;;  %7262 = vmatprep.mubr.bf16.mxu1 %v8630_v10 }
 0x325   : > { %v8669_v5 = vpack.c.bf16 %v3874_v2, %v3873_v1 }
 0x326   : > { %v8671_v62 = vpack.c.bf16 %v3872_v4, %v3871_v7  ;;  %v7140_v6 = vpop.f32.mrb[44].mxu1 }
 0x327   : > { %v3505_v31 = vadd.f32 %v7140_v6, %v8552_v33  ;;  %v3496_v8 = vpop.f32.mrb[45].mxu1 }
 0x328   : > { %v3497_v11 = vadd.f32 %v8552_v33, %v3496_v8  ;;  %v7141_v12 = vpop.f32.mrb[46].mxu1 }
 0x329   : > { %v3508_v13 = vadd.f32 %v7141_v12, %v8552_v33  ;;  %v3499_v14 = vpop.f32.mrb[47].mxu1  ;;  %v3877_v15 = vmax.f32 %v3505_v31, 0.0 }
 0x32a   : > { %v3500_v57 = vadd.f32 %v8552_v33, %v3499_v14  ;;  %v3875_v10 = vmax.f32 %v3497_v11, 0.0 }
 0x32b   : > { %v3878_v16 = vmax.f32 %v3508_v13, 0.0  ;;  %7263 = vmatmul.mubr.bf16.gmra.mrb[152].mxu1 %v8628_v9 }
 0x32c   : > { %v3876_v17 = vmax.f32 %v3500_v57, 0.0  ;;  %7266 = vmatprep.mubr.bf16.mxu1 %v8640_v22 }
 0x32d   : > { %v8679_v27 = vpack.c.bf16 %v3878_v16, %v3877_v15  ;;  %v7836_v15 = vld [vmem:[%s9356_s9 + $0x28] sm:$0xff]  }
 0x32e   : > { %v8681_v18 = vpack.c.bf16 %v3876_v17, %v3875_v10  ;;  %v7144_v19 = vpop.f32.mrb[48].mxu1 }
 0x32f   : > { %v3521_v61 = vadd.f32 %v7144_v19, %v8552_v33  ;;  %v3512_v20 = vpop.f32.mrb[49].mxu1 }
 0x330   : > { %v3513_v24 = vadd.f32 %v8552_v33, %v3512_v20  ;;  %v7145_v25 = vpop.f32.mrb[50].mxu1 }
 0x331   : > { %v3524_v26 = vadd.f32 %v7145_v25, %v8552_v33  ;;  %v3515_v29 = vpop.f32.mrb[51].mxu1  ;;  %v3881_v30 = vmax.f32 %v3521_v61, 0.0 }
 0x332   : > { %v3516_v9 = vadd.f32 %v8552_v33, %v3515_v29  ;;  %v3879_v22 = vmax.f32 %v3513_v24, 0.0 }
 0x333   : > { %v3882_v32 = vmax.f32 %v3524_v26, 0.0  ;;  %7267 = vmatmul.mubr.bf16.gmra.mrb[156].mxu1 %v8638_v21 }
 0x334   : > { %v3880_v34 = vmax.f32 %v3516_v9, 0.0  ;;  %7270 = vmatprep.mubr.bf16.mxu1 %v8649_v38  ;;  %v7832_v38 = vld [vmem:[%s9356_s9 + $0x8] sm:$0xff]  }
 0x335   : > { %v8689_v56 = vpack.c.bf16 %v3882_v32, %v3881_v30  ;;  %7368 = vmatprep.subr.bf16.mxu0 %v7832_v38 }
 0x336   : > { %v8691_v35 = vpack.c.bf16 %v3880_v34, %v3879_v22  ;;  %v7148_v36 = vpop.f32.mrb[52].mxu1  ;;  %7369 = vmatpush3.bf16.msra.mxu0 %v7832_v38  ;;  %v7838_v22 = vld [vmem:[%s9356_s9 + $0x38] sm:$0xff]  }
 0x337   : > { %v3537_v28 = vadd.f32 %v7148_v36, %v8552_v33  ;;  %v3528_v37 = vpop.f32.mrb[53].mxu1 }
 0x338   : > { %v3529_v39 = vadd.f32 %v8552_v33, %v3528_v37  ;;  %v7149_v40 = vpop.f32.mrb[54].mxu1 }
 0x339   : > { %v3540_v41 = vadd.f32 %v7149_v40, %v8552_v33  ;;  %v3531_v42 = vpop.f32.mrb[55].mxu1  ;;  %v3885_v45 = vmax.f32 %v3537_v28, 0.0 }
 0x33a   : > { %v3532_v21 = vadd.f32 %v8552_v33, %v3531_v42  ;;  %v3883_v47 = vmax.f32 %v3529_v39, 0.0 }
 0x33b   : > { %v3886_v46 = vmax.f32 %v3540_v41, 0.0  ;;  %7271 = vmatmul.mubr.bf16.gmra.mrb[160].mxu1 %v8647_v59  ;;  %v7833_v59 = vld [vmem:[%s9356_s9 + $0x10] sm:$0xff]  }
 0x33c   : > { %v3884_v48 = vmax.f32 %v3532_v21, 0.0  ;;  %7274 = vmatprep.mubr.bf16.mxu1 %v8661_v53  ;;  %7370 = vmatprep.subr.bf16.mxu0 %v7833_v59 }
 0x33d   : > { %v8702_v23 = vpack.c.bf16 %v3886_v46, %v3885_v45  ;;  %7371 = vmatpush3.bf16.msra.mxu0 %v7833_v59 }
 0x33e   : > { %v8704_v49 = vpack.c.bf16 %v3884_v48, %v3883_v47  ;;  %v7152_v44 = vpop.f32.mrb[56].mxu1  ;;  %7372 = vmatprep.subr.bf16.mxu0 %v7834_v58 }
 0x33f   : > { %v3553_v50 = vadd.f32 %v7152_v44, %v8552_v33  ;;  %v3544_v52 = vpop.f32.mrb[57].mxu1 }
 0x340   : > { %v3545_v54 = vadd.f32 %v8552_v33, %v3544_v52  ;;  %v7153_v3 = vpop.f32.mrb[58].mxu1 }
 0x341   : > { %v3556_v55 = vadd.f32 %v7153_v3, %v8552_v33  ;;  %v3547_v53 = vpop.f32.mrb[59].mxu1  ;;  %v3889_v63 = vmax.f32 %v3553_v50, 0.0  ;;  %7373 = vmatpush3.bf16.msra.mxu0 %v7834_v58 }
 0x342   : > { %v3548_v60 = vadd.f32 %v8552_v33, %v3547_v53  ;;  %v3887_v0 = vmax.f32 %v3545_v54, 0.0 }
 0x343   : > { %v3890_v43 = vmax.f32 %v3556_v55, 0.0  ;;  %7275 = vmatmul.mubr.bf16.gmra.mrb[164].mxu1 %v8656_v51  ;;  %v7835_v51 = vld [vmem:[%s9356_s9 + $0x20] sm:$0xff]  }
 0x344   : > { %v3888_v1 = vmax.f32 %v3548_v60, 0.0  ;;  %7278 = vmatprep.mubr.bf16.mxu1 %v8671_v62  ;;  %7374 = vmatprep.subr.bf16.mxu0 %v7835_v51 }
 0x345   : > { %v8718_v2 = vpack.c.bf16 %v3890_v43, %v3889_v63  ;;  %7375 = vmatpush3.bf16.msra.mxu0 %v7835_v51 }
 0x346   : > { %v8720_v7 = vpack.c.bf16 %v3888_v1, %v3887_v0  ;;  %v7156_v4 = vpop.f32.mrb[60].mxu1  ;;  %7376 = vmatprep.subr.bf16.mxu0 %v7836_v15 }
 0x347   : > { %v3569_v6 = vadd.f32 %v7156_v4, %v8552_v33  ;;  %v3560_v31 = vpop.f32.mrb[61].mxu1 }
 0x348   : > { %v3561_v8 = vadd.f32 %v8552_v33, %v3560_v31  ;;  %v7157_v11 = vpop.f32.mrb[62].mxu1 }
 0x349   : > { %v3572_v12 = vadd.f32 %v7157_v11, %v8552_v33  ;;  %v3563_v62 = vpop.f32.mrb[63].mxu1  ;;  %v3893_v14 = vmax.f32 %v3569_v6, 0.0  ;;  %7377 = vmatpush3.bf16.msra.mxu0 %v7836_v15 }
 0x34a   : > { %v3564_v13 = vadd.f32 %v8552_v33, %v3563_v62  ;;  %v3891_v16 = vmax.f32 %v3561_v8, 0.0 }
 0x34b   : > { %v3894_v57 = vmax.f32 %v3572_v12, 0.0  ;;  %7279 = vmatmul.mubr.bf16.gmra.mrb[168].mxu1 %v8669_v5  ;;  %v7837_v5 = vld [vmem:[%s9356_s9 + $0x30] sm:$0xff]  }
 0x34c   : > { %v3892_v10 = vmax.f32 %v3564_v13, 0.0  ;;  %7282 = vmatprep.mubr.bf16.mxu1 %v8681_v18  ;;  %7378 = vmatprep.subr.bf16.mxu0 %v7837_v5 }
 0x34d   : > { %v8734_v17 = vpack.c.bf16 %v3894_v57, %v3893_v14  ;;  %7379 = vmatpush3.bf16.msra.mxu0 %v7837_v5 }
 0x34e   : > { %v8736_v19 = vpack.c.bf16 %v3892_v10, %v3891_v16  ;;  %v7160_v61 = vpop.f32.mrb[64].mxu1  ;;  %7380 = vmatprep.subr.bf16.mxu0 %v7838_v22 }
 0x34f   : > { %v3585_v20 = vadd.f32 %v7160_v61, %v8552_v33  ;;  %v3576_v24 = vpop.f32.mrb[65].mxu1 }
 0x350   : > { %v3577_v25 = vadd.f32 %v8552_v33, %v3576_v24  ;;  %v7161_v26 = vpop.f32.mrb[66].mxu1 }
 0x351   : > { %v3588_v29 = vadd.f32 %v7161_v26, %v8552_v33  ;;  %v3579_v18 = vpop.f32.mrb[67].mxu1  ;;  %v3897_v30 = vmax.f32 %v3585_v20, 0.0  ;;  %7381 = vmatpush3.bf16.msra.mxu0 %v7838_v22 }
 0x352   : > { %v3580_v9 = vadd.f32 %v8552_v33, %v3579_v18  ;;  %v3895_v34 = vmax.f32 %v3577_v25, 0.0 }
 0x353   : > { %v3898_v32 = vmax.f32 %v3588_v29, 0.0  ;;  %7283 = vmatmul.mubr.bf16.gmra.mrb[172].mxu1 %v8679_v27 }
 0x354   : > { %v3896_v36 = vmax.f32 %v3580_v9, 0.0  ;;  %7286 = vmatprep.mubr.bf16.mxu1 %v8691_v35 }
 0x355   : > { %v8750_v28 = vpack.c.bf16 %v3898_v32, %v3897_v30 }
 0x356   : > { %v3991_v37 = vpack.c.bf16 %v3896_v36, %v3895_v34  ;;  %v7164_v39 = vpop.f32.mrb[68].mxu1 }
 0x357   : > { %v3601_v40 = vadd.f32 %v7164_v39, %v8552_v33  ;;  %v3592_v41 = vpop.f32.mrb[69].mxu1 }
 0x358   : > { %v3593_v42 = vadd.f32 %v8552_v33, %v3592_v41  ;;  %v7165_v27 = vpop.f32.mrb[70].mxu1 }
 0x359   : > { %v3604_v21 = vadd.f32 %v7165_v27, %v8552_v33  ;;  %v3595_v45 = vpop.f32.mrb[71].mxu1  ;;  %v3901_v38 = vmax.f32 %v3601_v40, 0.0 }
 0x35a   : > { %v3596_v46 = vadd.f32 %v8552_v33, %v3595_v45  ;;  %v3899_v35 = vmax.f32 %v3593_v42, 0.0 }
 0x35b   : > { %v3902_v47 = vmax.f32 %v3604_v21, 0.0  ;;  %7287 = vmatmul.mubr.bf16.gmra.mrb[176].mxu1 %v8689_v56 }
 0x35c   : > { %v3900_v48 = vmax.f32 %v3596_v46, 0.0  ;;  %7290 = vmatprep.mubr.bf16.mxu1 %v8704_v49 }
 0x35d   : > { %v8758_v44 = vpack.c.bf16 %v3902_v47, %v3901_v38 }
 0x35e   : > { %v3993_v50 = vpack.c.bf16 %v3900_v48, %v3899_v35  ;;  %v7168_v52 = vpop.f32.mrb[72].mxu1 }
 0x35f   : > { %v3617_v59 = vadd.f32 %v7168_v52, %v8552_v33  ;;  %v3608_v54 = vpop.f32.mrb[73].mxu1 }
 0x360   : > { %v3609_v3 = vadd.f32 %v8552_v33, %v3608_v54  ;;  %v7169_v55 = vpop.f32.mrb[74].mxu1 }
 0x361   : > { %v3620_v53 = vadd.f32 %v7169_v55, %v8552_v33  ;;  %v3611_v60 = vpop.f32.mrb[75].mxu1  ;;  %v3905_v56 = vmax.f32 %v3617_v59, 0.0 }
 0x362   : > { %v3612_v63 = vadd.f32 %v8552_v33, %v3611_v60  ;;  %v3903_v49 = vmax.f32 %v3609_v3, 0.0 }
 0x363   : > { %v3906_v43 = vmax.f32 %v3620_v53, 0.0  ;;  %7291 = vmatmul.mubr.bf16.gmra.mrb[180].mxu1 %v8702_v23 }
 0x364   : > { %v3904_v58 = vmax.f32 %v3612_v63, 0.0  ;;  %7294 = vmatprep.mubr.bf16.mxu1 %v8720_v7 }
 0x365   : > { %v8766_v0 = vpack.c.bf16 %v3906_v43, %v3905_v56 }
 0x366   : > { %v3995_v1 = vpack.c.bf16 %v3904_v58, %v3903_v49  ;;  %v7172_v4 = vpop.f32.mrb[76].mxu1 }
 0x367   : > { %v3633_v6 = vadd.f32 %v7172_v4, %v8552_v33  ;;  %v3624_v31 = vpop.f32.mrb[77].mxu1 }
 0x368   : > { %v3625_v51 = vadd.f32 %v8552_v33, %v3624_v31  ;;  %v7173_v8 = vpop.f32.mrb[78].mxu1 }
 0x369   : > { %v3636_v11 = vadd.f32 %v7173_v8, %v8552_v33  ;;  %v3627_v12 = vpop.f32.mrb[79].mxu1  ;;  %v3909_v23 = vmax.f32 %v3633_v6, 0.0 }
 0x36a   : > { %v3628_v62 = vadd.f32 %v8552_v33, %v3627_v12  ;;  %v3907_v7 = vmax.f32 %v3625_v51, 0.0 }
 0x36b   : > { %v3910_v13 = vmax.f32 %v3636_v11, 0.0  ;;  %7295 = vmatmul.mubr.bf16.gmra.mrb[184].mxu1 %v8718_v2 }
 0x36c   : > { %v3908_v14 = vmax.f32 %v3628_v62, 0.0  ;;  %7298 = vmatprep.mubr.bf16.mxu1 %v8736_v19 }
 0x36d   : > { %v8774_v57 = vpack.c.bf16 %v3910_v13, %v3909_v23 }
 0x36e   : > { %v3997_v15 = vpack.c.bf16 %v3908_v14, %v3907_v7  ;;  %v7176_v16 = vpop.f32.mrb[80].mxu1 }
 0x36f   : > { %v3649_v10 = vadd.f32 %v7176_v16, %v8552_v33  ;;  %v3640_v61 = vpop.f32.mrb[81].mxu1 }
 0x370   : > { %v3641_v20 = vadd.f32 %v8552_v33, %v3640_v61  ;;  %v7177_v24 = vpop.f32.mrb[82].mxu1 }
 0x371   : > { %v3652_v5 = vadd.f32 %v7177_v24, %v8552_v33  ;;  %v3643_v25 = vpop.f32.mrb[83].mxu1  ;;  %v3913_v2 = vmax.f32 %v3649_v10, 0.0 }
 0x372   : > { %v3644_v26 = vadd.f32 %v8552_v33, %v3643_v25  ;;  %v3911_v19 = vmax.f32 %v3641_v20, 0.0 }
 0x373   : > { %v3914_v29 = vmax.f32 %v3652_v5, 0.0  ;;  %7299 = vmatmul.mubr.bf16.gmra.mrb[188].mxu1 %v8734_v17 }
 0x374   : > { %v3912_v18 = vmax.f32 %v3644_v26, 0.0  ;;  %7302 = vmatprep.mubr.bf16.mxu1 %v3991_v37 }
 0x375   : > { %v8781_v9 = vpack.c.bf16 %v3914_v29, %v3913_v2 }
 0x376   : > { %v3999_v30 = vpack.c.bf16 %v3912_v18, %v3911_v19  ;;  %v7180_v32 = vpop.f32.mrb[84].mxu1 }
 0x377   : > { %v3665_v22 = vadd.f32 %v7180_v32, %v8552_v33  ;;  %v3656_v34 = vpop.f32.mrb[85].mxu1 }
 0x378   : > { %v3657_v36 = vadd.f32 %v8552_v33, %v3656_v34  ;;  %v7181_v39 = vpop.f32.mrb[86].mxu1 }
 0x379   : > { %v3668_v40 = vadd.f32 %v7181_v39, %v8552_v33  ;;  %v3659_v41 = vpop.f32.mrb[87].mxu1  ;;  %v3917_v27 = vmax.f32 %v3665_v22, 0.0 }
 0x37a   : > { %v3660_v42 = vadd.f32 %v8552_v33, %v3659_v41  ;;  %v3915_v37 = vmax.f32 %v3657_v36, 0.0 }
 0x37b   : > { %v3918_v17 = vmax.f32 %v3668_v40, 0.0  ;;  %7303 = vmatmul.mubr.bf16.gmra.mrb[192].mxu1 %v8750_v28 }
 0x37c   : > { %v3916_v21 = vmax.f32 %v3660_v42, 0.0  ;;  %7306 = vmatprep.mubr.bf16.mxu1 %v3993_v50 }
 0x37d   : > { %v8788_v45 = vpack.c.bf16 %v3918_v17, %v3917_v27 }
 0x37e   : > { %v4001_v46 = vpack.c.bf16 %v3916_v21, %v3915_v37  ;;  %v7184_v38 = vpop.f32.mrb[88].mxu1 }
 0x37f   : > { %v3681_v47 = vadd.f32 %v7184_v38, %v8552_v33  ;;  %v3672_v35 = vpop.f32.mrb[89].mxu1 }
 0x380   : > { %v3673_v48 = vadd.f32 %v8552_v33, %v3672_v35  ;;  %v7185_v52 = vpop.f32.mrb[90].mxu1 }
 0x381   : > { %v3684_v59 = vadd.f32 %v7185_v52, %v8552_v33  ;;  %v3675_v54 = vpop.f32.mrb[91].mxu1  ;;  %v3921_v55 = vmax.f32 %v3681_v47, 0.0 }
 0x382   : > { %v3676_v3 = vadd.f32 %v8552_v33, %v3675_v54  ;;  %v3919_v50 = vmax.f32 %v3673_v48, 0.0 }
 0x383   : > { %v3922_v28 = vmax.f32 %v3684_v59, 0.0  ;;  %7307 = vmatmul.mubr.bf16.gmra.mrb[196].mxu1 %v8758_v44 }
 0x384   : > { %v3920_v53 = vmax.f32 %v3676_v3, 0.0  ;;  %7310 = vmatprep.mubr.bf16.mxu1 %v3995_v1 }
 0x385   : > { %v8795_v60 = vpack.c.bf16 %v3922_v28, %v3921_v55  ;;  %v8828_v28 = vld [vmem:[%s9353_s6] ss:$0 sm:$0xff] }
 0x386   : > { %v4003_v63 = vpack.c.bf16 %v3920_v53, %v3919_v50  ;;  %v7188_v56 = vpop.f32.mrb[92].mxu1 }
 0x387   : > { %v3697_v43 = vadd.f32 %v7188_v56, %v8552_v33  ;;  %v3688_v49 = vpop.f32.mrb[93].mxu1 }
 0x388   : > { %v3689_v58 = vadd.f32 %v8552_v33, %v3688_v49  ;;  %v7189_v4 = vpop.f32.mrb[94].mxu1 }
 0x389   : > { %v3700_v6 = vadd.f32 %v7189_v4, %v8552_v33  ;;  %v3691_v31 = vpop.f32.mrb[95].mxu1  ;;  %v3925_v8 = vmax.f32 %v3697_v43, 0.0 }
 0x38a   : > { %v3692_v51 = vadd.f32 %v8552_v33, %v3691_v31  ;;  %v3923_v1 = vmax.f32 %v3689_v58, 0.0 }
 0x38b   : > { %v3926_v44 = vmax.f32 %v3700_v6, 0.0  ;;  %7311 = vmatmul.mubr.bf16.gmra.mrb[200].mxu1 %v8766_v0 }
 0x38c   : > { %v3924_v11 = vmax.f32 %v3692_v51, 0.0  ;;  %7314 = vmatprep.mubr.bf16.mxu1 %v3997_v15 }
 0x38d   : > { %v8802_v12 = vpack.c.bf16 %v3926_v44, %v3925_v8 }
 0x38e   : > { %v4005_v62 = vpack.c.bf16 %v3924_v11, %v3923_v1  ;;  %v7192_v23 = vpop.f32.mrb[96].mxu1 }
 0x38f   : > { %v3713_v13 = vadd.f32 %v7192_v23, %v8552_v33  ;;  %v3704_v7 = vpop.f32.mrb[97].mxu1 }
 0x390   : > { %v3705_v14 = vadd.f32 %v8552_v33, %v3704_v7  ;;  %v7193_v16 = vpop.f32.mrb[98].mxu1 }
 0x391   : > { %v3716_v10 = vadd.f32 %v7193_v16, %v8552_v33  ;;  %v3707_v61 = vpop.f32.mrb[99].mxu1  ;;  %v3929_v24 = vmax.f32 %v3713_v13, 0.0 }
 0x392   : > { %v3708_v20 = vadd.f32 %v8552_v33, %v3707_v61  ;;  %v3927_v15 = vmax.f32 %v3705_v14, 0.0 }
 0x393   : > { %v3930_v0 = vmax.f32 %v3716_v10, 0.0  ;;  %7315 = vmatmul.mubr.bf16.gmra.mrb[204].mxu1 %v8774_v57 }
 0x394   : > { %v3928_v5 = vmax.f32 %v3708_v20, 0.0  ;;  %7318 = vmatprep.mubr.bf16.mxu1 %v3999_v30 }
 0x395   : > { %v8809_v25 = vpack.c.bf16 %v3930_v0, %v3929_v24 }
 0x396   : > { %v4007_v26 = vpack.c.bf16 %v3928_v5, %v3927_v15  ;;  %v7196_v2 = vpop.f32.mrb[100].mxu1 }
 0x397   : > { %v3729_v29 = vadd.f32 %v7196_v2, %v8552_v33  ;;  %v3720_v19 = vpop.f32.mrb[101].mxu1 }
 0x398   : > { %v3721_v18 = vadd.f32 %v8552_v33, %v3720_v19  ;;  %v7197_v32 = vpop.f32.mrb[102].mxu1 }
 0x399   : > { %v3732_v22 = vadd.f32 %v7197_v32, %v8552_v33  ;;  %v3723_v34 = vpop.f32.mrb[103].mxu1  ;;  %v3933_v39 = vmax.f32 %v3729_v29, 0.0 }
 0x39a   : > { %v3724_v36 = vadd.f32 %v8552_v33, %v3723_v34  ;;  %v3931_v30 = vmax.f32 %v3721_v18, 0.0 }
 0x39b   : > { %v3934_v57 = vmax.f32 %v3732_v22, 0.0  ;;  %7319 = vmatmul.mubr.bf16.gmra.mrb[208].mxu1 %v8781_v9 }
 0x39c   : > { %v3932_v40 = vmax.f32 %v3724_v36, 0.0  ;;  %7322 = vmatprep.mubr.bf16.mxu1 %v4001_v46 }
 0x39d   : > { %v8816_v41 = vpack.c.bf16 %v3934_v57, %v3933_v39 }
 0x39e   : > { %v4009_v42 = vpack.c.bf16 %v3932_v40, %v3931_v30  ;;  %v7200_v27 = vpop.f32.mrb[104].mxu1 }
 0x39f   : > { %v3745_v17 = vadd.f32 %v7200_v27, %v8552_v33  ;;  %v3736_v37 = vpop.f32.mrb[105].mxu1 }
 0x3a0   : > { %v3737_v21 = vadd.f32 %v8552_v33, %v3736_v37  ;;  %v7201_v38 = vpop.f32.mrb[106].mxu1 }
 0x3a1   : > { %v3748_v47 = vadd.f32 %v7201_v38, %v8552_v33  ;;  %v3739_v35 = vpop.f32.mrb[107].mxu1  ;;  %v3937_v52 = vmax.f32 %v3745_v17, 0.0 }
 0x3a2   : > { %v3740_v48 = vadd.f32 %v8552_v33, %v3739_v35  ;;  %v3935_v46 = vmax.f32 %v3737_v21, 0.0 }
 0x3a3   : > { %v3938_v9 = vmax.f32 %v3748_v47, 0.0  ;;  %7323 = vmatmul.mubr.bf16.gmra.mrb[212].mxu1 %v8788_v45 }
 0x3a4   : > { %v3936_v59 = vmax.f32 %v3740_v48, 0.0  ;;  %7326 = vmatprep.mubr.bf16.mxu1 %v4003_v63 }
 0x3a5   : > { %v8823_v54 = vpack.c.bf16 %v3938_v9, %v3937_v52 }
 0x3a6   : > { %v4011_v3 = vpack.c.bf16 %v3936_v59, %v3935_v46  ;;  %v7204_v55 = vpop.f32.mrb[108].mxu1 }
 0x3a7   : > { %v3761_v50 = vadd.f32 %v8828_v28, %v7204_v55  ;;  %v3752_v53 = vpop.f32.mrb[109].mxu1 }
 0x3a8   : > { %v3753_v33 = vadd.f32 %v8828_v28, %v3752_v53  ;;  %v7205_v56 = vpop.f32.mrb[110].mxu1 }
 0x3a9   : > { %v3764_v45 = vadd.f32 %v8828_v28, %v7205_v56  ;;  %v3755_v43 = vpop.f32.mrb[111].mxu1  ;;  %v3941_v49 = vmax.f32 %v3761_v50, 0.0 }
 0x3aa   : > { %v3756_v63 = vadd.f32 %v8828_v28, %v3755_v43  ;;  %v3939_v4 = vmax.f32 %v3753_v33, 0.0  ;;  %v8870_v43 = vld [vmem:[%s9355_s8] ss:$0 sm:$0xff] }
 0x3ab   : > { %v3942_v58 = vmax.f32 %v3764_v45, 0.0  ;;  %7327 = vmatmul.mubr.bf16.gmra.mrb[216].mxu1 %v8795_v60 }
 0x3ac   : > { %v3940_v6 = vmax.f32 %v3756_v63, 0.0  ;;  %7330 = vmatprep.mubr.bf16.mxu1 %v4005_v62 }
 0x3ad   : > { %v8835_v31 = vpack.c.bf16 %v3942_v58, %v3941_v49 }
 0x3ae   : > { %v4013_v51 = vpack.c.bf16 %v3940_v6, %v3939_v4  ;;  %v7208_v8 = vpop.f32.mrb[112].mxu1 }
 0x3af   : > { %v3777_v44 = vadd.f32 %v8828_v28, %v7208_v8  ;;  %v3768_v1 = vpop.f32.mrb[113].mxu1 }
 0x3b0   : > { %v3769_v11 = vadd.f32 %v8828_v28, %v3768_v1  ;;  %v7209_v23 = vpop.f32.mrb[114].mxu1 }
 0x3b1   : > { %v3780_v13 = vadd.f32 %v8828_v28, %v7209_v23  ;;  %v3771_v7 = vpop.f32.mrb[115].mxu1  ;;  %v3945_v16 = vmax.f32 %v3777_v44, 0.0 }
 0x3b2   : > { %v3772_v14 = vadd.f32 %v8828_v28, %v3771_v7  ;;  %v3943_v62 = vmax.f32 %v3769_v11, 0.0 }
 0x3b3   : > { %v3946_v60 = vmax.f32 %v3780_v13, 0.0  ;;  %7331 = vmatmul.mubr.bf16.gmra.mrb[220].mxu1 %v8802_v12 }
 0x3b4   : > { %v3944_v10 = vmax.f32 %v3772_v14, 0.0  ;;  %7334 = vmatprep.mubr.bf16.mxu1 %v4007_v26 }
 0x3b5   : > { %v8842_v61 = vpack.c.bf16 %v3946_v60, %v3945_v16 }
 0x3b6   : > { %v4015_v20 = vpack.c.bf16 %v3944_v10, %v3943_v62  ;;  %v7212_v24 = vpop.f32.mrb[116].mxu1 }
 0x3b7   : > { %v3793_v0 = vadd.f32 %v8828_v28, %v7212_v24  ;;  %v3784_v15 = vpop.f32.mrb[117].mxu1 }
 0x3b8   : > { %v3785_v5 = vadd.f32 %v8828_v28, %v3784_v15  ;;  %v7213_v2 = vpop.f32.mrb[118].mxu1 }
 0x3b9   : > { %v3796_v29 = vadd.f32 %v8828_v28, %v7213_v2  ;;  %v3787_v19 = vpop.f32.mrb[119].mxu1  ;;  %v3949_v32 = vmax.f32 %v3793_v0, 0.0 }
 0x3ba   : > { %v3788_v18 = vadd.f32 %v8828_v28, %v3787_v19  ;;  %v3947_v26 = vmax.f32 %v3785_v5, 0.0 }
 0x3bb   : > { %v3950_v12 = vmax.f32 %v3796_v29, 0.0  ;;  %7335 = vmatmul.mubr.bf16.gmra.mrb[224].mxu1 %v8809_v25 }
 0x3bc   : > { %v3948_v22 = vmax.f32 %v3788_v18, 0.0  ;;  %7338 = vmatprep.mubr.bf16.mxu1 %v4009_v42 }
 0x3bd   : > { %v8849_v34 = vpack.c.bf16 %v3950_v12, %v3949_v32 }
 0x3be   : > { %v8851_v36 = vpack.c.bf16 %v3948_v22, %v3947_v26  ;;  %v7216_v39 = vpop.f32.mrb[120].mxu1 }
 0x3bf   : > { %v3809_v57 = vadd.f32 %v8828_v28, %v7216_v39  ;;  %v3800_v30 = vpop.f32.mrb[121].mxu1 }
 0x3c0   : > { %v3801_v40 = vadd.f32 %v8828_v28, %v3800_v30  ;;  %v7217_v27 = vpop.f32.mrb[122].mxu1 }
 0x3c1   : > { %v3812_v17 = vadd.f32 %v8828_v28, %v7217_v27  ;;  %v3803_v37 = vpop.f32.mrb[123].mxu1  ;;  %v3953_v25 = vmax.f32 %v3809_v57, 0.0 }
 0x3c2   : > { %v3804_v21 = vadd.f32 %v8828_v28, %v3803_v37  ;;  %v3951_v42 = vmax.f32 %v3801_v40, 0.0 }
 0x3c3   : > { %v3954_v38 = vmax.f32 %v3812_v17, 0.0  ;;  %7339 = vmatmul.mubr.bf16.gmra.mrb[228].mxu1 %v8816_v41 }
 0x3c4   : > { %v3952_v47 = vmax.f32 %v3804_v21, 0.0  ;;  %7342 = vmatprep.mubr.bf16.mxu1 %v4011_v3 }
 0x3c5   : > { %v8858_v35 = vpack.c.bf16 %v3954_v38, %v3953_v25 }
 0x3c6   : > { %v8860_v48 = vpack.c.bf16 %v3952_v47, %v3951_v42  ;;  %v7220_v52 = vpop.f32.mrb[124].mxu1 }
 0x3c7   : > { %v3825_v9 = vadd.f32 %v8828_v28, %v7220_v52  ;;  %v3816_v46 = vpop.f32.mrb[125].mxu1 }
 0x3c8   : > { %v3817_v59 = vadd.f32 %v8828_v28, %v3816_v46  ;;  %v7221_v55 = vpop.f32.mrb[126].mxu1 }
 0x3c9   : > { %v3828_v50 = vadd.f32 %v8828_v28, %v7221_v55  ;;  %v3819_v53 = vpop.f32.mrb[127].mxu1  ;;  %v3957_v41 = vmax.f32 %v3825_v9, 0.0 }
 0x3ca   : > { %v3820_v33 = vadd.f32 %v8828_v28, %v3819_v53  ;;  %v3955_v3 = vmax.f32 %v3817_v59, 0.0 }
 0x3cb   : > { %v3958_v56 = vmax.f32 %v3828_v50, 0.0  ;;  %7343 = vmatmul.mubr.bf16.gmra.mrb[232].mxu1 %v8823_v54 }
 0x3cc   : > { %v3956_v45 = vmax.f32 %v3820_v33, 0.0  ;;  %7346 = vmatprep.mubr.bf16.mxu1 %v4013_v51 }
 0x3cd   : > { %v8872_v63 = vpack.c.bf16 %v3958_v56, %v3957_v41 }
 0x3ce   : > { %v8874_v49 = vpack.c.bf16 %v3956_v45, %v3955_v3  ;;  %v7240_v58 = vpop.f32.mrb[128].mxu1 }
 0x3cf   : > { %v4137_v4 = vadd.f32 %v7240_v58, %v8870_v43  ;;  %v4128_v28 = vpop.f32.mrb[129].mxu1 }
 0x3d0   : > { %v4129_v6 = vadd.f32 %v8870_v43, %v4128_v28  ;;  %v7241_v8 = vpop.f32.mrb[130].mxu1 }
 0x3d1   : > { %v4140_v54 = vadd.f32 %v7241_v8, %v8870_v43  ;;  %v4131_v44 = vpop.f32.mrb[131].mxu1  ;;  %v4641_v1 = vmax.f32 %v4137_v4, 0.0 }
 0x3d2   : > { %v4132_v51 = vadd.f32 %v8870_v43, %v4131_v44  ;;  %v4639_v23 = vmax.f32 %v4129_v6, 0.0 }
 0x3d3   : > { %v4642_v11 = vmax.f32 %v4140_v54, 0.0  ;;  %7347 = vmatmul.mubr.bf16.gmra.mrb[236].mxu1 %v8835_v31 }
 0x3d4   : > { %v4640_v13 = vmax.f32 %v4132_v51, 0.0  ;;  %7350 = vmatprep.mubr.bf16.mxu1 %v4015_v20 }
 0x3d5   : > { %v4768_v7 = vpack.c.bf16 %v4642_v11, %v4641_v1 }
 0x3d6   : > { %v4767_v14 = vpack.c.bf16 %v4640_v13, %v4639_v23  ;;  %v7244_v16 = vpop.f32.mrb[132].mxu1 }
 0x3d7   : > { %v4153_v60 = vadd.f32 %v7244_v16, %v8870_v43  ;;  %v4144_v62 = vpop.f32.mrb[133].mxu1 }
 0x3d8   : > { %v4145_v10 = vadd.f32 %v8870_v43, %v4144_v62  ;;  %v7245_v24 = vpop.f32.mrb[134].mxu1  ;;  %7382 = vmatprep.mubr.bf16.mxu0 %v4767_v14 }
 0x3d9   : > { %v4156_v0 = vadd.f32 %v7245_v24, %v8870_v43  ;;  %v4147_v15 = vpop.f32.mrb[135].mxu1  ;;  %7383 = vmatmul.mubr.bf16.vlgmr.msra.gmra.mrb[128].mxu0 %v4768_v7  ;;  %v4645_v31 = vmax.f32 %v4153_v60, 0.0 }
 0x3da   : > { %v4148_v5 = vadd.f32 %v8870_v43, %v4147_v15  ;;  %v4643_v20 = vmax.f32 %v4145_v10, 0.0 }
 0x3db   : > { %v4646_v2 = vmax.f32 %v4156_v0, 0.0  ;;  %7351 = vmatmul.mubr.bf16.gmra.mrb[240].mxu1 %v8842_v61 }
 0x3dc   : > { %v4644_v29 = vmax.f32 %v4148_v5, 0.0  ;;  %7354 = vmatprep.mubr.bf16.mxu1 %v8851_v36 }
 0x3dd   : > { %v4770_v19 = vpack.c.bf16 %v4646_v2, %v4645_v31 }
 0x3de   : > { %v4769_v18 = vpack.c.bf16 %v4644_v29, %v4643_v20  ;;  %v7248_v32 = vpop.f32.mrb[136].mxu1 }
 0x3df   : > { %v4169_v12 = vadd.f32 %v7248_v32, %v8870_v43  ;;  %v4160_v26 = vpop.f32.mrb[137].mxu1 }
 0x3e0   : > { %v4161_v22 = vadd.f32 %v8870_v43, %v4160_v26  ;;  %v7249_v39 = vpop.f32.mrb[138].mxu1  ;;  %7386 = vmatprep.mubr.bf16.mxu0 %v4769_v18 }
 0x3e1   : > { %v4172_v57 = vadd.f32 %v7249_v39, %v8870_v43  ;;  %v4163_v30 = vpop.f32.mrb[139].mxu1  ;;  %7387 = vmatmul.mubr.bf16.gmra.mrb[132].mxu0 %v4770_v19  ;;  %v4649_v40 = vmax.f32 %v4169_v12, 0.0 }
 0x3e2   : > { %v4164_v61 = vadd.f32 %v8870_v43, %v4163_v30  ;;  %v4647_v36 = vmax.f32 %v4161_v22, 0.0 }
 0x3e3   : > { %v4650_v27 = vmax.f32 %v4172_v57, 0.0  ;;  %7355 = vmatmul.mubr.bf16.gmra.mrb[244].mxu1 %v8849_v34 }
 0x3e4   : > { %v4648_v17 = vmax.f32 %v4164_v61, 0.0  ;;  %7358 = vmatprep.mubr.bf16.mxu1 %v8860_v48 }
 0x3e5   : > { %v4772_v37 = vpack.c.bf16 %v4650_v27, %v4649_v40 }
 0x3e6   : > { %v4771_v21 = vpack.c.bf16 %v4648_v17, %v4647_v36  ;;  %v7252_v25 = vpop.f32.mrb[140].mxu1 }
 0x3e7   : > { %v4185_v38 = vadd.f32 %v7252_v25, %v8870_v43  ;;  %v4176_v42 = vpop.f32.mrb[141].mxu1 }
 0x3e8   : > { %v4177_v47 = vadd.f32 %v8870_v43, %v4176_v42  ;;  %v7253_v52 = vpop.f32.mrb[142].mxu1  ;;  %7390 = vmatprep.mubr.bf16.mxu0 %v4771_v21 }
 0x3e9   : > { %v4188_v9 = vadd.f32 %v7253_v52, %v8870_v43  ;;  %v4179_v46 = vpop.f32.mrb[143].mxu1  ;;  %7391 = vmatmul.mubr.bf16.gmra.mrb[136].mxu0 %v4772_v37  ;;  %v4653_v59 = vmax.f32 %v4185_v38, 0.0 }
 0x3ea   : > { %v4180_v34 = vadd.f32 %v8870_v43, %v4179_v46  ;;  %v4651_v48 = vmax.f32 %v4177_v47, 0.0 }
 0x3eb   : > { %v4654_v55 = vmax.f32 %v4188_v9, 0.0  ;;  %7359 = vmatmul.mubr.bf16.gmra.mrb[248].mxu1 %v8858_v35 }
 0x3ec   : > { %v4652_v50 = vmax.f32 %v4180_v34, 0.0  ;;  %7362 = vmatprep.mubr.bf16.mxu1 %v8874_v49 }
 0x3ed   : > { %v4774_v53 = vpack.c.bf16 %v4654_v55, %v4653_v59 }
 0x3ee   : > { %v4773_v33 = vpack.c.bf16 %v4652_v50, %v4651_v48  ;;  %v7256_v41 = vpop.f32.mrb[144].mxu1 }
 0x3ef   : > { %v4201_v56 = vadd.f32 %v7256_v41, %v8870_v43  ;;  %v4192_v3 = vpop.f32.mrb[145].mxu1 }
 0x3f0   : > { %v4193_v45 = vadd.f32 %v8870_v43, %v4192_v3  ;;  %v7257_v58 = vpop.f32.mrb[146].mxu1  ;;  %7394 = vmatprep.mubr.bf16.mxu0 %v4773_v33 }
 0x3f1   : > { %v4204_v4 = vadd.f32 %v7257_v58, %v8870_v43  ;;  %v4195_v28 = vpop.f32.mrb[147].mxu1  ;;  %7395 = vmatmul.mubr.bf16.gmra.mrb[140].mxu0 %v4774_v53  ;;  %v4657_v6 = vmax.f32 %v4201_v56, 0.0 }
 0x3f2   : > { %v4196_v35 = vadd.f32 %v8870_v43, %v4195_v28  ;;  %v4655_v49 = vmax.f32 %v4193_v45, 0.0 }
 0x3f3   : > { %v4658_v8 = vmax.f32 %v4204_v4, 0.0  ;;  %7363 = vmatmul.mubr.bf16.gmra.mrb[252].mxu1 %v8872_v63 }
 0x3f4   : > { %v4656_v54 = vmax.f32 %v4196_v35, 0.0 }
 0x3f5   : > { %v4776_v44 = vpack.c.bf16 %v4658_v8, %v4657_v6 }
 0x3f6   : > { %v4775_v51 = vpack.c.bf16 %v4656_v54, %v4655_v49  ;;  %v7260_v1 = vpop.f32.mrb[148].mxu1 }
 0x3f7   : > { %v4217_v11 = vadd.f32 %v7260_v1, %v8870_v43  ;;  %v4208_v23 = vpop.f32.mrb[149].mxu1 }
 0x3f8   : > { %v4209_v13 = vadd.f32 %v8870_v43, %v4208_v23  ;;  %v7261_v7 = vpop.f32.mrb[150].mxu1  ;;  %7398 = vmatprep.mubr.bf16.mxu0 %v4775_v51 }
 0x3f9   : > { %v4220_v14 = vadd.f32 %v7261_v7, %v8870_v43  ;;  %v4211_v16 = vpop.f32.mrb[151].mxu1  ;;  %7399 = vmatmul.mubr.bf16.gmra.mrb[144].mxu0 %v4776_v44  ;;  %v4661_v62 = vmax.f32 %v4217_v11, 0.0 }
 0x3fa   : > { %v4212_v60 = vadd.f32 %v8870_v43, %v4211_v16  ;;  %v4659_v10 = vmax.f32 %v4209_v13, 0.0 }
 0x3fb   : > { %v4662_v63 = vmax.f32 %v4220_v14, 0.0 }
 0x3fc   : > { %v4660_v24 = vmax.f32 %v4212_v60, 0.0 }
 0x3fd   : > { %v4778_v0 = vpack.c.bf16 %v4662_v63, %v4661_v62 }
 0x3fe   : > { %v4777_v15 = vpack.c.bf16 %v4660_v24, %v4659_v10  ;;  %v7264_v5 = vpop.f32.mrb[152].mxu1 }
 0x3ff   : > { %v4233_v31 = vadd.f32 %v7264_v5, %v8870_v43  ;;  %v4224_v2 = vpop.f32.mrb[153].mxu1 }
 0x400   : > { %v4225_v20 = vadd.f32 %v8870_v43, %v4224_v2  ;;  %v7265_v29 = vpop.f32.mrb[154].mxu1  ;;  %7402 = vmatprep.mubr.bf16.mxu0 %v4777_v15 }
 0x401   : > { %v4236_v19 = vadd.f32 %v7265_v29, %v8870_v43  ;;  %v4227_v18 = vpop.f32.mrb[155].mxu1  ;;  %7403 = vmatmul.mubr.bf16.gmra.mrb[148].mxu0 %v4778_v0  ;;  %v4665_v12 = vmax.f32 %v4233_v31, 0.0 }
 0x402   : > { %v4228_v32 = vadd.f32 %v8870_v43, %v4227_v18  ;;  %v4663_v22 = vmax.f32 %v4225_v20, 0.0 }
 0x403   : > { %v4666_v26 = vmax.f32 %v4236_v19, 0.0 }
 0x404   : > { %v4664_v39 = vmax.f32 %v4228_v32, 0.0 }
 0x405   : > { %v4780_v57 = vpack.c.bf16 %v4666_v26, %v4665_v12 }
 0x406   : > { %v4779_v30 = vpack.c.bf16 %v4664_v39, %v4663_v22  ;;  %v7268_v61 = vpop.f32.mrb[156].mxu1 }
 0x407   : > { %v4249_v40 = vadd.f32 %v7268_v61, %v8870_v43  ;;  %v4240_v27 = vpop.f32.mrb[157].mxu1 }
 0x408   : > { %v4241_v36 = vadd.f32 %v8870_v43, %v4240_v27  ;;  %v7269_v17 = vpop.f32.mrb[158].mxu1  ;;  %7406 = vmatprep.mubr.bf16.mxu0 %v4779_v30 }
 0x409   : > { %v4252_v37 = vadd.f32 %v7269_v17, %v8870_v43  ;;  %v4243_v21 = vpop.f32.mrb[159].mxu1  ;;  %7407 = vmatmul.mubr.bf16.gmra.mrb[152].mxu0 %v4780_v57  ;;  %v4669_v38 = vmax.f32 %v4249_v40, 0.0 }
 0x40a   : > { %v4244_v25 = vadd.f32 %v8870_v43, %v4243_v21  ;;  %v4667_v47 = vmax.f32 %v4241_v36, 0.0 }
 0x40b   : > { %v4670_v42 = vmax.f32 %v4252_v37, 0.0 }
 0x40c   : > { %v4668_v52 = vmax.f32 %v4244_v25, 0.0 }
 0x40d   : > { %v4782_v9 = vpack.c.bf16 %v4670_v42, %v4669_v38 }
 0x40e   : > { %v4781_v46 = vpack.c.bf16 %v4668_v52, %v4667_v47  ;;  %v7272_v34 = vpop.f32.mrb[160].mxu1 }
 0x40f   : > { %v4265_v59 = vadd.f32 %v7272_v34, %v8870_v43  ;;  %v4256_v55 = vpop.f32.mrb[161].mxu1 }
 0x410   : > { %v4257_v48 = vadd.f32 %v8870_v43, %v4256_v55  ;;  %v7273_v50 = vpop.f32.mrb[162].mxu1  ;;  %7410 = vmatprep.mubr.bf16.mxu0 %v4781_v46 }
 0x411   : > { %v4268_v53 = vadd.f32 %v7273_v50, %v8870_v43  ;;  %v4259_v33 = vpop.f32.mrb[163].mxu1  ;;  %7411 = vmatmul.mubr.bf16.gmra.mrb[156].mxu0 %v4782_v9  ;;  %v4673_v56 = vmax.f32 %v4265_v59, 0.0 }
 0x412   : > { %v4260_v41 = vadd.f32 %v8870_v43, %v4259_v33  ;;  %v4671_v45 = vmax.f32 %v4257_v48, 0.0 }
 0x413   : > { %v4674_v3 = vmax.f32 %v4268_v53, 0.0 }
 0x414   : > { %v4672_v58 = vmax.f32 %v4260_v41, 0.0 }
 0x415   : > { %v4784_v4 = vpack.c.bf16 %v4674_v3, %v4673_v56 }
 0x416   : > { %v4783_v28 = vpack.c.bf16 %v4672_v58, %v4671_v45  ;;  %v7276_v35 = vpop.f32.mrb[164].mxu1 }
 0x417   : > { %v4281_v6 = vadd.f32 %v7276_v35, %v8870_v43  ;;  %v4272_v8 = vpop.f32.mrb[165].mxu1 }
 0x418   : > { %v4273_v49 = vadd.f32 %v8870_v43, %v4272_v8  ;;  %v7277_v54 = vpop.f32.mrb[166].mxu1  ;;  %7414 = vmatprep.mubr.bf16.mxu0 %v4783_v28 }
 0x419   : > { %v4284_v44 = vadd.f32 %v7277_v54, %v8870_v43  ;;  %v4275_v51 = vpop.f32.mrb[167].mxu1  ;;  %7415 = vmatmul.mubr.bf16.gmra.mrb[160].mxu0 %v4784_v4  ;;  %v4677_v11 = vmax.f32 %v4281_v6, 0.0 }
 0x41a   : > { %v4276_v1 = vadd.f32 %v8870_v43, %v4275_v51  ;;  %v4675_v13 = vmax.f32 %v4273_v49, 0.0 }
 0x41b   : > { %v4678_v23 = vmax.f32 %v4284_v44, 0.0 }
 0x41c   : > { %v4676_v7 = vmax.f32 %v4276_v1, 0.0 }
 0x41d   : > { %v4786_v14 = vpack.c.bf16 %v4678_v23, %v4677_v11 }
 0x41e   : > { %v4785_v16 = vpack.c.bf16 %v4676_v7, %v4675_v13  ;;  %v7280_v60 = vpop.f32.mrb[168].mxu1 }
 0x41f   : > { %v4297_v62 = vadd.f32 %v7280_v60, %v8870_v43  ;;  %v4288_v63 = vpop.f32.mrb[169].mxu1 }
 0x420   : > { %v4289_v10 = vadd.f32 %v8870_v43, %v4288_v63  ;;  %v7281_v24 = vpop.f32.mrb[170].mxu1  ;;  %7418 = vmatprep.mubr.bf16.mxu0 %v4785_v16 }
 0x421   : > { %v4300_v0 = vadd.f32 %v7281_v24, %v8870_v43  ;;  %v4291_v15 = vpop.f32.mrb[171].mxu1  ;;  %7419 = vmatmul.mubr.bf16.gmra.mrb[164].mxu0 %v4786_v14  ;;  %v4681_v31 = vmax.f32 %v4297_v62, 0.0 }
 0x422   : > { %v4292_v5 = vadd.f32 %v8870_v43, %v4291_v15  ;;  %v4679_v20 = vmax.f32 %v4289_v10, 0.0 }
 0x423   : > { %v4682_v2 = vmax.f32 %v4300_v0, 0.0 }
 0x424   : > { %v4680_v29 = vmax.f32 %v4292_v5, 0.0 }
 0x425   : > { %v4788_v19 = vpack.c.bf16 %v4682_v2, %v4681_v31 }
 0x426   : > { %v4787_v18 = vpack.c.bf16 %v4680_v29, %v4679_v20  ;;  %v7284_v32 = vpop.f32.mrb[172].mxu1 }
 0x427   : > { %v4313_v12 = vadd.f32 %v7284_v32, %v8870_v43  ;;  %v4304_v26 = vpop.f32.mrb[173].mxu1 }
 0x428   : > { %v4305_v22 = vadd.f32 %v8870_v43, %v4304_v26  ;;  %v7285_v39 = vpop.f32.mrb[174].mxu1  ;;  %7422 = vmatprep.mubr.bf16.mxu0 %v4787_v18 }
 0x429   : > { %v4316_v57 = vadd.f32 %v7285_v39, %v8870_v43  ;;  %v4307_v30 = vpop.f32.mrb[175].mxu1  ;;  %7423 = vmatmul.mubr.bf16.gmra.mrb[168].mxu0 %v4788_v19  ;;  %v4685_v40 = vmax.f32 %v4313_v12, 0.0 }
 0x42a   : > { %v4308_v61 = vadd.f32 %v8870_v43, %v4307_v30  ;;  %v4683_v36 = vmax.f32 %v4305_v22, 0.0 }
 0x42b   : > { %v4686_v27 = vmax.f32 %v4316_v57, 0.0 }
 0x42c   : > { %v4684_v17 = vmax.f32 %v4308_v61, 0.0 }
 0x42d   : > { %v4790_v37 = vpack.c.bf16 %v4686_v27, %v4685_v40 }
 0x42e   : > { %v4789_v21 = vpack.c.bf16 %v4684_v17, %v4683_v36  ;;  %v7288_v25 = vpop.f32.mrb[176].mxu1 }
 0x42f   : > { %v4329_v38 = vadd.f32 %v7288_v25, %v8870_v43  ;;  %v4320_v42 = vpop.f32.mrb[177].mxu1 }
 0x430   : > { %v4321_v47 = vadd.f32 %v8870_v43, %v4320_v42  ;;  %v7289_v52 = vpop.f32.mrb[178].mxu1  ;;  %7426 = vmatprep.mubr.bf16.mxu0 %v4789_v21 }
 0x431   : > { %v4332_v9 = vadd.f32 %v7289_v52, %v8870_v43  ;;  %v4323_v46 = vpop.f32.mrb[179].mxu1  ;;  %7427 = vmatmul.mubr.bf16.gmra.mrb[172].mxu0 %v4790_v37  ;;  %v4689_v59 = vmax.f32 %v4329_v38, 0.0 }
 0x432   : > { %v4324_v34 = vadd.f32 %v8870_v43, %v4323_v46  ;;  %v4687_v48 = vmax.f32 %v4321_v47, 0.0 }
 0x433   : > { %v4690_v55 = vmax.f32 %v4332_v9, 0.0 }
 0x434   : > { %v4688_v50 = vmax.f32 %v4324_v34, 0.0 }
 0x435   : > { %v4792_v53 = vpack.c.bf16 %v4690_v55, %v4689_v59 }
 0x436   : > { %v4791_v33 = vpack.c.bf16 %v4688_v50, %v4687_v48  ;;  %v7292_v41 = vpop.f32.mrb[180].mxu1 }
 0x437   : > { %v4345_v56 = vadd.f32 %v7292_v41, %v8870_v43  ;;  %v4336_v3 = vpop.f32.mrb[181].mxu1 }
 0x438   : > { %v4337_v45 = vadd.f32 %v8870_v43, %v4336_v3  ;;  %v7293_v58 = vpop.f32.mrb[182].mxu1  ;;  %7430 = vmatprep.mubr.bf16.mxu0 %v4791_v33 }
 0x439   : > { %v4348_v4 = vadd.f32 %v7293_v58, %v8870_v43  ;;  %v4339_v28 = vpop.f32.mrb[183].mxu1  ;;  %7431 = vmatmul.mubr.bf16.gmra.mrb[176].mxu0 %v4792_v53  ;;  %v4693_v6 = vmax.f32 %v4345_v56, 0.0 }
 0x43a   : > { %v4340_v35 = vadd.f32 %v8870_v43, %v4339_v28  ;;  %v4691_v49 = vmax.f32 %v4337_v45, 0.0 }
 0x43b   : > { %v4694_v8 = vmax.f32 %v4348_v4, 0.0 }
 0x43c   : > { %v4692_v54 = vmax.f32 %v4340_v35, 0.0 }
 0x43d   : > { %v4794_v44 = vpack.c.bf16 %v4694_v8, %v4693_v6 }
 0x43e   : > { %v4793_v51 = vpack.c.bf16 %v4692_v54, %v4691_v49  ;;  %v7296_v1 = vpop.f32.mrb[184].mxu1 }
 0x43f   : > { %v4361_v11 = vadd.f32 %v7296_v1, %v8870_v43  ;;  %v4352_v23 = vpop.f32.mrb[185].mxu1 }
 0x440   : > { %v4353_v13 = vadd.f32 %v8870_v43, %v4352_v23  ;;  %v7297_v7 = vpop.f32.mrb[186].mxu1  ;;  %7434 = vmatprep.mubr.bf16.mxu0 %v4793_v51 }
 0x441   : > { %v4364_v14 = vadd.f32 %v7297_v7, %v8870_v43  ;;  %v4355_v16 = vpop.f32.mrb[187].mxu1  ;;  %7435 = vmatmul.mubr.bf16.gmra.mrb[180].mxu0 %v4794_v44  ;;  %v4697_v62 = vmax.f32 %v4361_v11, 0.0 }
 0x442   : > { %v4356_v60 = vadd.f32 %v8870_v43, %v4355_v16  ;;  %v4695_v10 = vmax.f32 %v4353_v13, 0.0 }
 0x443   : > { %v4698_v63 = vmax.f32 %v4364_v14, 0.0 }
 0x444   : > { %v4696_v24 = vmax.f32 %v4356_v60, 0.0 }
 0x445   : > { %v4796_v0 = vpack.c.bf16 %v4698_v63, %v4697_v62 }
 0x446   : > { %v4795_v15 = vpack.c.bf16 %v4696_v24, %v4695_v10  ;;  %v7300_v5 = vpop.f32.mrb[188].mxu1 }
 0x447   : > { %v4377_v31 = vadd.f32 %v7300_v5, %v8870_v43  ;;  %v4368_v2 = vpop.f32.mrb[189].mxu1 }
 0x448   : > { %v4369_v20 = vadd.f32 %v8870_v43, %v4368_v2  ;;  %v7301_v29 = vpop.f32.mrb[190].mxu1  ;;  %7438 = vmatprep.mubr.bf16.mxu0 %v4795_v15 }
 0x449   : > { %v4380_v19 = vadd.f32 %v7301_v29, %v8870_v43  ;;  %v4371_v18 = vpop.f32.mrb[191].mxu1  ;;  %7439 = vmatmul.mubr.bf16.gmra.mrb[184].mxu0 %v4796_v0  ;;  %v4701_v12 = vmax.f32 %v4377_v31, 0.0 }
 0x44a   : > { %v4372_v32 = vadd.f32 %v8870_v43, %v4371_v18  ;;  %v4699_v22 = vmax.f32 %v4369_v20, 0.0 }
 0x44b   : > { %v4702_v26 = vmax.f32 %v4380_v19, 0.0 }
 0x44c   : > { %v4700_v39 = vmax.f32 %v4372_v32, 0.0 }
 0x44d   : > { %v4798_v57 = vpack.c.bf16 %v4702_v26, %v4701_v12 }
 0x44e   : > { %v4797_v30 = vpack.c.bf16 %v4700_v39, %v4699_v22  ;;  %v7304_v61 = vpop.f32.mrb[192].mxu1 }
 0x44f   : > { %v4393_v40 = vadd.f32 %v7304_v61, %v8870_v43  ;;  %v4384_v27 = vpop.f32.mrb[193].mxu1 }
 0x450   : > { %v4385_v36 = vadd.f32 %v8870_v43, %v4384_v27  ;;  %v7305_v17 = vpop.f32.mrb[194].mxu1  ;;  %7442 = vmatprep.mubr.bf16.mxu0 %v4797_v30 }
 0x451   : > { %v4396_v37 = vadd.f32 %v7305_v17, %v8870_v43  ;;  %v4387_v21 = vpop.f32.mrb[195].mxu1  ;;  %7443 = vmatmul.mubr.bf16.gmra.mrb[188].mxu0 %v4798_v57  ;;  %v4705_v38 = vmax.f32 %v4393_v40, 0.0 }
 0x452   : > { %v4388_v25 = vadd.f32 %v8870_v43, %v4387_v21  ;;  %v4703_v47 = vmax.f32 %v4385_v36, 0.0 }
 0x453   : > { %v4706_v42 = vmax.f32 %v4396_v37, 0.0 }
 0x454   : > { %v4704_v52 = vmax.f32 %v4388_v25, 0.0 }
 0x455   : > { %v4800_v9 = vpack.c.bf16 %v4706_v42, %v4705_v38 }
 0x456   : > { %v4799_v46 = vpack.c.bf16 %v4704_v52, %v4703_v47  ;;  %v7308_v34 = vpop.f32.mrb[196].mxu1 }
 0x457   : > { %v4409_v59 = vadd.f32 %v7308_v34, %v8870_v43  ;;  %v4400_v55 = vpop.f32.mrb[197].mxu1 }
 0x458   : > { %v4401_v48 = vadd.f32 %v8870_v43, %v4400_v55  ;;  %v7309_v50 = vpop.f32.mrb[198].mxu1  ;;  %7446 = vmatprep.mubr.bf16.mxu0 %v4799_v46 }
 0x459   : > { %v4412_v53 = vadd.f32 %v7309_v50, %v8870_v43  ;;  %v4403_v33 = vpop.f32.mrb[199].mxu1  ;;  %7447 = vmatmul.mubr.bf16.gmra.mrb[192].mxu0 %v4800_v9  ;;  %v4709_v56 = vmax.f32 %v4409_v59, 0.0 }
 0x45a   : > { %v4404_v41 = vadd.f32 %v8870_v43, %v4403_v33  ;;  %v4707_v45 = vmax.f32 %v4401_v48, 0.0 }
 0x45b   : > { %v4710_v3 = vmax.f32 %v4412_v53, 0.0 }
 0x45c   : > { %v4708_v58 = vmax.f32 %v4404_v41, 0.0 }
 0x45d   : > { %v4802_v4 = vpack.c.bf16 %v4710_v3, %v4709_v56 }
 0x45e   : > { %v4801_v28 = vpack.c.bf16 %v4708_v58, %v4707_v45  ;;  %v7312_v35 = vpop.f32.mrb[200].mxu1 }
 0x45f   : > { %v4425_v6 = vadd.f32 %v7312_v35, %v8870_v43  ;;  %v4416_v8 = vpop.f32.mrb[201].mxu1 }
 0x460   : > { %v4417_v49 = vadd.f32 %v8870_v43, %v4416_v8  ;;  %v7313_v54 = vpop.f32.mrb[202].mxu1  ;;  %7450 = vmatprep.mubr.bf16.mxu0 %v4801_v28 }
 0x461   : > { %v4428_v44 = vadd.f32 %v7313_v54, %v8870_v43  ;;  %v4419_v51 = vpop.f32.mrb[203].mxu1  ;;  %7451 = vmatmul.mubr.bf16.gmra.mrb[196].mxu0 %v4802_v4  ;;  %v4713_v11 = vmax.f32 %v4425_v6, 0.0 }
 0x462   : > { %v4420_v1 = vadd.f32 %v8870_v43, %v4419_v51  ;;  %v4711_v13 = vmax.f32 %v4417_v49, 0.0 }
 0x463   : > { %v4714_v23 = vmax.f32 %v4428_v44, 0.0 }
 0x464   : > { %v4712_v7 = vmax.f32 %v4420_v1, 0.0 }
 0x465   : > { %v4804_v14 = vpack.c.bf16 %v4714_v23, %v4713_v11 }
 0x466   : > { %v4803_v16 = vpack.c.bf16 %v4712_v7, %v4711_v13  ;;  %v7316_v60 = vpop.f32.mrb[204].mxu1 }
 0x467   : > { %v4441_v62 = vadd.f32 %v7316_v60, %v8870_v43  ;;  %v4432_v63 = vpop.f32.mrb[205].mxu1 }
 0x468   : > { %v4433_v10 = vadd.f32 %v8870_v43, %v4432_v63  ;;  %v7317_v24 = vpop.f32.mrb[206].mxu1  ;;  %7454 = vmatprep.mubr.bf16.mxu0 %v4803_v16 }
 0x469   : > { %v4444_v0 = vadd.f32 %v7317_v24, %v8870_v43  ;;  %v4435_v15 = vpop.f32.mrb[207].mxu1  ;;  %7455 = vmatmul.mubr.bf16.gmra.mrb[200].mxu0 %v4804_v14  ;;  %v4717_v31 = vmax.f32 %v4441_v62, 0.0 }
 0x46a   : > { %v4436_v5 = vadd.f32 %v8870_v43, %v4435_v15  ;;  %v4715_v20 = vmax.f32 %v4433_v10, 0.0 }
 0x46b   : > { %v4718_v2 = vmax.f32 %v4444_v0, 0.0 }
 0x46c   : > { %v4716_v29 = vmax.f32 %v4436_v5, 0.0 }
 0x46d   : > { %v4806_v19 = vpack.c.bf16 %v4718_v2, %v4717_v31 }
 0x46e   : > { %v4805_v18 = vpack.c.bf16 %v4716_v29, %v4715_v20  ;;  %v7320_v32 = vpop.f32.mrb[208].mxu1 }
 0x46f   : > { %v4457_v12 = vadd.f32 %v7320_v32, %v8870_v43  ;;  %v4448_v26 = vpop.f32.mrb[209].mxu1 }
 0x470   : > { %v4449_v22 = vadd.f32 %v8870_v43, %v4448_v26  ;;  %v7321_v39 = vpop.f32.mrb[210].mxu1  ;;  %7458 = vmatprep.mubr.bf16.mxu0 %v4805_v18 }
 0x471   : > { %v4460_v57 = vadd.f32 %v7321_v39, %v8870_v43  ;;  %v4451_v30 = vpop.f32.mrb[211].mxu1  ;;  %7459 = vmatmul.mubr.bf16.gmra.mrb[204].mxu0 %v4806_v19  ;;  %v4721_v40 = vmax.f32 %v4457_v12, 0.0 }
 0x472   : > { %v4452_v61 = vadd.f32 %v8870_v43, %v4451_v30  ;;  %v4719_v36 = vmax.f32 %v4449_v22, 0.0 }
 0x473   : > { %v4722_v27 = vmax.f32 %v4460_v57, 0.0  ;;  %v8987_v57 = vld [vmem:[%s9358_s11] sm:$0xf] }
 0x474   : > { %v4720_v17 = vmax.f32 %v4452_v61, 0.0  ;;  %6754 = vmatprep.mubr.bf16.mxu1 %v8987_v57 }
 0x475   : > { %v4808_v37 = vpack.c.bf16 %v4722_v27, %v4721_v40 }
 0x476   : > { %v4807_v21 = vpack.c.bf16 %v4720_v17, %v4719_v36  ;;  %v7324_v25 = vpop.f32.mrb[212].mxu1 }
 0x477   : > { %v4473_v38 = vadd.f32 %v7324_v25, %v8870_v43  ;;  %v4464_v42 = vpop.f32.mrb[213].mxu1 }
 0x478   : > { %v4465_v47 = vadd.f32 %v8870_v43, %v4464_v42  ;;  %v7325_v52 = vpop.f32.mrb[214].mxu1  ;;  %7462 = vmatprep.mubr.bf16.mxu0 %v4807_v21 }
 0x479   : > { %v4476_v9 = vadd.f32 %v7325_v52, %v8870_v43  ;;  %v4467_v46 = vpop.f32.mrb[215].mxu1  ;;  %7463 = vmatmul.mubr.bf16.gmra.mrb[208].mxu0 %v4808_v37  ;;  %v4725_v59 = vmax.f32 %v4473_v38, 0.0 }
 0x47a   : > { %v4468_v34 = vadd.f32 %v8870_v43, %v4467_v46  ;;  %v4723_v48 = vmax.f32 %v4465_v47, 0.0 }
 0x47b   : > { %v4726_v55 = vmax.f32 %v4476_v9, 0.0 }
 0x47c   : > { %v4724_v50 = vmax.f32 %v4468_v34, 0.0 }
 0x47d   : > { %v4810_v53 = vpack.c.bf16 %v4726_v55, %v4725_v59 }
 0x47e   : > { %v4809_v33 = vpack.c.bf16 %v4724_v50, %v4723_v48  ;;  %v7328_v41 = vpop.f32.mrb[216].mxu1 }
 0x47f   : > { %v4489_v56 = vadd.f32 %v7328_v41, %v8870_v43  ;;  %v4480_v3 = vpop.f32.mrb[217].mxu1 }
 0x480   : > { %v4481_v45 = vadd.f32 %v8870_v43, %v4480_v3  ;;  %v7329_v58 = vpop.f32.mrb[218].mxu1  ;;  %7466 = vmatprep.mubr.bf16.mxu0 %v4809_v33 }
 0x481   : > { %v4492_v4 = vadd.f32 %v7329_v58, %v8870_v43  ;;  %v4483_v28 = vpop.f32.mrb[219].mxu1  ;;  %7467 = vmatmul.mubr.bf16.gmra.mrb[212].mxu0 %v4810_v53  ;;  %v4729_v6 = vmax.f32 %v4489_v56, 0.0 }
 0x482   : > { %v4484_v35 = vadd.f32 %v8870_v43, %v4483_v28  ;;  %v4727_v49 = vmax.f32 %v4481_v45, 0.0 }
 0x483   : > { %v4730_v8 = vmax.f32 %v4492_v4, 0.0 }
 0x484   : > { %v4728_v54 = vmax.f32 %v4484_v35, 0.0 }
 0x485   : > { %v4812_v44 = vpack.c.bf16 %v4730_v8, %v4729_v6 }
 0x486   : > { %v4811_v51 = vpack.c.bf16 %v4728_v54, %v4727_v49  ;;  %v7332_v1 = vpop.f32.mrb[220].mxu1 }
 0x487   : > { %v4505_v11 = vadd.f32 %v7332_v1, %v8870_v43  ;;  %v4496_v23 = vpop.f32.mrb[221].mxu1 }
 0x488   : > { %v4497_v13 = vadd.f32 %v8870_v43, %v4496_v23  ;;  %v7333_v7 = vpop.f32.mrb[222].mxu1  ;;  %7470 = vmatprep.mubr.bf16.mxu0 %v4811_v51  ;;  %v9005_v23 = vld [vmem:[%s9357_s10] ss:$0 sm:$0xff] }
 0x489   : > { %v4508_v14 = vadd.f32 %v7333_v7, %v8870_v43  ;;  %v4499_v16 = vpop.f32.mrb[223].mxu1  ;;  %7471 = vmatmul.mubr.bf16.gmra.mrb[216].mxu0 %v4812_v44  ;;  %v4733_v62 = vmax.f32 %v4505_v11, 0.0 }
 0x48a   : > { %v4500_v60 = vadd.f32 %v8870_v43, %v4499_v16  ;;  %v4731_v10 = vmax.f32 %v4497_v13, 0.0 }
 0x48b   : > { %v4734_v63 = vmax.f32 %v4508_v14, 0.0 }
 0x48c   : > { %v4732_v24 = vmax.f32 %v4500_v60, 0.0 }
 0x48d   : > { %v4814_v0 = vpack.c.bf16 %v4734_v63, %v4733_v62 }
 0x48e   : > { %v4813_v15 = vpack.c.bf16 %v4732_v24, %v4731_v10  ;;  %v7336_v5 = vpop.f32.mrb[224].mxu1 }
 0x48f   : > { %v4521_v31 = vadd.f32 %v7336_v5, %v8870_v43  ;;  %v4512_v2 = vpop.f32.mrb[225].mxu1 }
 0x490   : > { %v4513_v20 = vadd.f32 %v8870_v43, %v4512_v2  ;;  %v7337_v29 = vpop.f32.mrb[226].mxu1  ;;  %7474 = vmatprep.mubr.bf16.mxu0 %v4813_v15 }
 0x491   : > { %v4524_v19 = vadd.f32 %v7337_v29, %v8870_v43  ;;  %v4515_v18 = vpop.f32.mrb[227].mxu1  ;;  %7475 = vmatmul.mubr.bf16.gmra.mrb[220].mxu0 %v4814_v0  ;;  %v4737_v12 = vmax.f32 %v4521_v31, 0.0 }
 0x492   : > { %v4516_v32 = vadd.f32 %v8870_v43, %v4515_v18  ;;  %v4735_v22 = vmax.f32 %v4513_v20, 0.0 }
 0x493   : > { %v4738_v26 = vmax.f32 %v4524_v19, 0.0 }
 0x494   : > { %v4736_v39 = vmax.f32 %v4516_v32, 0.0 }
 0x495   : > { %v4816_v30 = vpack.c.bf16 %v4738_v26, %v4737_v12 }
 0x496   : > { %v4815_v61 = vpack.c.bf16 %v4736_v39, %v4735_v22  ;;  %v7340_v40 = vpop.f32.mrb[228].mxu1 }
 0x497   : > { %v4537_v27 = vadd.f32 %v7340_v40, %v8870_v43  ;;  %v4528_v36 = vpop.f32.mrb[229].mxu1 }
 0x498   : > { %v4529_v17 = vadd.f32 %v8870_v43, %v4528_v36  ;;  %v7341_v37 = vpop.f32.mrb[230].mxu1  ;;  %7478 = vmatprep.mubr.bf16.mxu0 %v4815_v61 }
 0x499   : > { %v4540_v21 = vadd.f32 %v7341_v37, %v8870_v43  ;;  %v4531_v25 = vpop.f32.mrb[231].mxu1  ;;  %7479 = vmatmul.mubr.bf16.gmra.mrb[224].mxu0 %v4816_v30  ;;  %v4741_v42 = vmax.f32 %v4537_v27, 0.0 }
 0x49a   : > { %v4532_v38 = vadd.f32 %v8870_v43, %v4531_v25  ;;  %v4739_v52 = vmax.f32 %v4529_v17, 0.0 }
 0x49b   : > { %v4742_v47 = vmax.f32 %v4540_v21, 0.0 }
 0x49c   : > { %v4740_v9 = vmax.f32 %v4532_v38, 0.0 }
 0x49d   : > { %v4818_v46 = vpack.c.bf16 %v4742_v47, %v4741_v42 }
 0x49e   : > { %v4817_v34 = vpack.c.bf16 %v4740_v9, %v4739_v52  ;;  %v7344_v59 = vpop.f32.mrb[232].mxu1 }
 0x49f   : > { %v4553_v55 = vadd.f32 %v7344_v59, %v8870_v43  ;;  %v4544_v48 = vpop.f32.mrb[233].mxu1 }
 0x4a0   : > { %v4545_v50 = vadd.f32 %v8870_v43, %v4544_v48  ;;  %v7345_v53 = vpop.f32.mrb[234].mxu1  ;;  %7482 = vmatprep.mubr.bf16.mxu0 %v4817_v34 }
 0x4a1   : > { %v4556_v33 = vadd.f32 %v7345_v53, %v8870_v43  ;;  %v4547_v41 = vpop.f32.mrb[235].mxu1  ;;  %7483 = vmatmul.mubr.bf16.gmra.mrb[228].mxu0 %v4818_v46  ;;  %v4745_v3 = vmax.f32 %v4553_v55, 0.0 }
 0x4a2   : > { %v4548_v56 = vadd.f32 %v8870_v43, %v4547_v41  ;;  %v4743_v58 = vmax.f32 %v4545_v50, 0.0 }
 0x4a3   : > { %v4746_v45 = vmax.f32 %v4556_v33, 0.0 }
 0x4a4   : > { %v4744_v4 = vmax.f32 %v4548_v56, 0.0 }
 0x4a5   : > { %v4820_v28 = vpack.c.bf16 %v4746_v45, %v4745_v3 }
 0x4a6   : > { %v4819_v35 = vpack.c.bf16 %v4744_v4, %v4743_v58  ;;  %v7348_v6 = vpop.f32.mrb[236].mxu1 }
 0x4a7   : > { %v4569_v8 = vadd.f32 %v7348_v6, %v8870_v43  ;;  %v4560_v49 = vpop.f32.mrb[237].mxu1  ;;  %v7905_v6 = vld [vmem:[%s9355_s8] ss:$0 sm:$0xff] }
 0x4a8   : > { %v4561_v54 = vadd.f32 %v8870_v43, %v4560_v49  ;;  %v7349_v44 = vpop.f32.mrb[238].mxu1  ;;  %7486 = vmatprep.mubr.bf16.mxu0 %v4819_v35 }
 0x4a9   : > { %v4572_v51 = vadd.f32 %v7349_v44, %v8870_v43  ;;  %v4563_v1 = vpop.f32.mrb[239].mxu1  ;;  %7487 = vmatmul.mubr.bf16.gmra.mrb[232].mxu0 %v4820_v28  ;;  %v4749_v13 = vmax.f32 %v4569_v8, 0.0 }
 0x4aa   : > { %v4564_v11 = vadd.f32 %v8870_v43, %v4563_v1  ;;  %v4747_v14 = vmax.f32 %v4561_v54, 0.0 }
 0x4ab   : > { %v4750_v7 = vmax.f32 %v4572_v51, 0.0 }
 0x4ac   : > { %v4748_v16 = vmax.f32 %v4564_v11, 0.0  ;;  %v7384_v60 = vpop.f32.mrb[128].mxu0 }
 0x4ad   : > { %v4822_v62 = vpack.c.bf16 %v4750_v7, %v4749_v13  ;;  %v4945_v63 = vadd.f32 %v7384_v60, %v9005_v23  ;;  %v4936_v10 = vpop.f32.mrb[129].mxu0 }
 0x4ae   : > { %v4821_v24 = vpack.c.bf16 %v4748_v16, %v4747_v14  ;;  %v4937_v0 = vadd.f32 %v9005_v23, %v4936_v10  ;;  %v7352_v15 = vpop.f32.mrb[240].mxu1  ;;  %v7385_v5 = vpop.f32.mrb[130].mxu0 }
 0x4af   : > { %v4585_v31 = vadd.f32 %v7352_v15, %v8870_v43  ;;  %v4948_v2 = vadd.f32 %v7385_v5, %v9005_v23  ;;  %v4576_v20 = vpop.f32.mrb[241].mxu1  ;;  %v4939_v29 = vpop.f32.mrb[131].mxu0  ;;  %v5449_v12 = vmax.f32 %v4945_v63, 0.0 }
 0x4b0   : > { %v4577_v19 = vadd.f32 %v8870_v43, %v4576_v20  ;;  %v4940_v18 = vadd.f32 %v9005_v23, %v4939_v29  ;;  %v7353_v32 = vpop.f32.mrb[242].mxu1  ;;  %7490 = vmatprep.mubr.bf16.mxu0 %v4821_v24  ;;  %v5447_v30 = vmax.f32 %v4937_v0, 0.0 }
 0x4b1   : > { %v5450_v26 = vmax.f32 %v4948_v2, 0.0  ;;  %v4588_v22 = vadd.f32 %v7353_v32, %v8870_v43  ;;  %v4579_v39 = vpop.f32.mrb[243].mxu1  ;;  %7491 = vmatmul.mubr.bf16.gmra.mrb[236].mxu0 %v4822_v62  ;;  %v4753_v27 = vmax.f32 %v4585_v31, 0.0 }
 0x4b2   : > { %v5448_v61 = vmax.f32 %v4940_v18, 0.0  ;;  %v4580_v40 = vadd.f32 %v8870_v43, %v4579_v39  ;;  %v4751_v37 = vmax.f32 %v4577_v19, 0.0 }
 0x4b3   : > { %v9015_v36 = vpack.c.bf16 %v5450_v26, %v5449_v12  ;;  %v4754_v17 = vmax.f32 %v4588_v22, 0.0 }
 0x4b4   : > { %v9017_v21 = vpack.c.bf16 %v5448_v61, %v5447_v30  ;;  %v4752_v25 = vmax.f32 %v4580_v40, 0.0  ;;  %v7388_v38 = vpop.f32.mrb[132].mxu0 }
 0x4b5   : > { %v4824_v42 = vpack.c.bf16 %v4754_v17, %v4753_v27  ;;  %v4961_v47 = vadd.f32 %v7388_v38, %v9005_v23  ;;  %v4952_v52 = vpop.f32.mrb[133].mxu0 }
 0x4b6   : > { %v4823_v9 = vpack.c.bf16 %v4752_v25, %v4751_v37  ;;  %v4953_v46 = vadd.f32 %v9005_v23, %v4952_v52  ;;  %v7356_v34 = vpop.f32.mrb[244].mxu1  ;;  %v7389_v59 = vpop.f32.mrb[134].mxu0 }
 0x4b7   : > { %v4601_v55 = vadd.f32 %v7356_v34, %v8870_v43  ;;  %v4964_v48 = vadd.f32 %v7389_v59, %v9005_v23  ;;  %v4592_v50 = vpop.f32.mrb[245].mxu1  ;;  %v4955_v53 = vpop.f32.mrb[135].mxu0  ;;  %v5453_v3 = vmax.f32 %v4961_v47, 0.0 }
 0x4b8   : > { %v4593_v33 = vadd.f32 %v8870_v43, %v4592_v50  ;;  %v4956_v41 = vadd.f32 %v9005_v23, %v4955_v53  ;;  %v7357_v56 = vpop.f32.mrb[246].mxu1  ;;  %7494 = vmatprep.mubr.bf16.mxu0 %v4823_v9  ;;  %v5451_v28 = vmax.f32 %v4953_v46, 0.0 }
 0x4b9   : > { %v5454_v45 = vmax.f32 %v4964_v48, 0.0  ;;  %v4604_v58 = vadd.f32 %v7357_v56, %v8870_v43  ;;  %v4595_v4 = vpop.f32.mrb[247].mxu1  ;;  %7495 = vmatmul.mubr.bf16.gmra.mrb[240].mxu0 %v4824_v42  ;;  %v4757_v49 = vmax.f32 %v4601_v55, 0.0 }
 0x4ba   : > { %v5452_v35 = vmax.f32 %v4956_v41, 0.0  ;;  %v4596_v8 = vadd.f32 %v7905_v6, %v4595_v4  ;;  %v4755_v51 = vmax.f32 %v4593_v33, 0.0 }
 0x4bb   : > { %v9029_v54 = vpack.c.bf16 %v5454_v45, %v5453_v3  ;;  %v4758_v44 = vmax.f32 %v4604_v58, 0.0 }
 0x4bc   : > { %v9031_v1 = vpack.c.bf16 %v5452_v35, %v5451_v28  ;;  %v4756_v11 = vmax.f32 %v4596_v8, 0.0  ;;  %v7392_v13 = vpop.f32.mrb[136].mxu0 }
 0x4bd   : > { %v4826_v7 = vpack.c.bf16 %v4758_v44, %v4757_v49  ;;  %v4977_v43 = vadd.f32 %v7392_v13, %v9005_v23  ;;  %v4968_v14 = vpop.f32.mrb[137].mxu0 }
 0x4be   : > { %v4825_v16 = vpack.c.bf16 %v4756_v11, %v4755_v51  ;;  %v4969_v60 = vadd.f32 %v9005_v23, %v4968_v14  ;;  %v7360_v62 = vpop.f32.mrb[248].mxu1  ;;  %v7393_v63 = vpop.f32.mrb[138].mxu0 }
 0x4bf   : > { %v4617_v10 = vadd.f32 %v7905_v6, %v7360_v62  ;;  %v4980_v24 = vadd.f32 %v7393_v63, %v9005_v23  ;;  %v4608_v0 = vpop.f32.mrb[249].mxu1  ;;  %v4971_v15 = vpop.f32.mrb[139].mxu0  ;;  %v5457_v20 = vmax.f32 %v4977_v43, 0.0 }
 0x4c0   : > { %v4609_v5 = vadd.f32 %v7905_v6, %v4608_v0  ;;  %v4972_v31 = vadd.f32 %v9005_v23, %v4971_v15  ;;  %v7361_v2 = vpop.f32.mrb[250].mxu1  ;;  %7498 = vmatprep.mubr.bf16.mxu0 %v4825_v16  ;;  %v5455_v32 = vmax.f32 %v4969_v60, 0.0 }
 0x4c1   : > { %v5458_v29 = vmax.f32 %v4980_v24, 0.0  ;;  %v4620_v19 = vadd.f32 %v7905_v6, %v7361_v2  ;;  %v4611_v18 = vpop.f32.mrb[251].mxu1  ;;  %7499 = vmatmul.mubr.bf16.gmra.mrb[244].mxu0 %v4826_v7  ;;  %v4761_v22 = vmax.f32 %v4617_v10, 0.0 }
 0x4c2   : > { %v5456_v12 = vmax.f32 %v4972_v31, 0.0  ;;  %v4612_v26 = vadd.f32 %v7905_v6, %v4611_v18  ;;  %v4759_v61 = vmax.f32 %v4609_v5, 0.0 }
 0x4c3   : > { %v9037_v39 = vpack.c.bf16 %v5458_v29, %v5457_v20  ;;  %v4762_v30 = vmax.f32 %v4620_v19, 0.0 }
 0x4c4   : > { %v9039_v40 = vpack.c.bf16 %v5456_v12, %v5455_v32  ;;  %v4760_v27 = vmax.f32 %v4612_v26, 0.0  ;;  %v7396_v17 = vpop.f32.mrb[140].mxu0 }
 0x4c5   : > { %v4828_v37 = vpack.c.bf16 %v4762_v30, %v4761_v22  ;;  %v4993_v25 = vadd.f32 %v7396_v17, %v9005_v23  ;;  %v4984_v38 = vpop.f32.mrb[141].mxu0 }
 0x4c6   : > { %v4827_v42 = vpack.c.bf16 %v4760_v27, %v4759_v61  ;;  %v4985_v47 = vadd.f32 %v9005_v23, %v4984_v38  ;;  %v7364_v52 = vpop.f32.mrb[252].mxu1  ;;  %v7397_v9 = vpop.f32.mrb[142].mxu0 }
 0x4c7   : > { %v4633_v46 = vadd.f32 %v7905_v6, %v7364_v52  ;;  %v4996_v34 = vadd.f32 %v7397_v9, %v9005_v23  ;;  %v4624_v59 = vpop.f32.mrb[253].mxu1  ;;  %v4987_v55 = vpop.f32.mrb[143].mxu0  ;;  %v5461_v33 = vmax.f32 %v4993_v25, 0.0 }
 0x4c8   : > { %v4625_v48 = vadd.f32 %v7905_v6, %v4624_v59  ;;  %v4988_v50 = vadd.f32 %v9005_v23, %v4987_v55  ;;  %v7365_v53 = vpop.f32.mrb[254].mxu1  ;;  %7502 = vmatprep.mubr.bf16.mxu0 %v4827_v42  ;;  %v5459_v45 = vmax.f32 %v4985_v47, 0.0 }
 0x4c9   : > { %v5462_v41 = vmax.f32 %v4996_v34, 0.0  ;;  %v4636_v56 = vadd.f32 %v7905_v6, %v7365_v53  ;;  %v4627_v3 = vpop.f32.mrb[255].mxu1  ;;  %7503 = vmatmul.mubr.bf16.gmra.mrb[248].mxu0 %v4828_v37  ;;  %v4765_v28 = vmax.f32 %v4633_v46, 0.0 }
 0x4ca   : > { %v5460_v58 = vmax.f32 %v4988_v50, 0.0  ;;  %v4628_v4 = vadd.f32 %v7905_v6, %v4627_v3  ;;  %v4763_v49 = vmax.f32 %v4625_v48, 0.0 }
 0x4cb   : > { %v9045_v35 = vpack.c.bf16 %v5462_v41, %v5461_v33  ;;  %v4766_v8 = vmax.f32 %v4636_v56, 0.0 }
 0x4cc   : > { %v9047_v44 = vpack.c.bf16 %v5460_v58, %v5459_v45  ;;  %v4764_v51 = vmax.f32 %v4628_v4, 0.0  ;;  %v7400_v11 = vpop.f32.mrb[144].mxu0 }
 0x4cd   : > { %v4830_v13 = vpack.c.bf16 %v4766_v8, %v4765_v28  ;;  %v5009_v7 = vadd.f32 %v7400_v11, %v9005_v23  ;;  %v5000_v43 = vpop.f32.mrb[145].mxu0 }
 0x4ce   : > { %v4829_v14 = vpack.c.bf16 %v4764_v51, %v4763_v49  ;;  %v5001_v16 = vadd.f32 %v9005_v23, %v5000_v43  ;;  %v7401_v60 = vpop.f32.mrb[146].mxu0  ;;  %v7972_v49 = vmov 0   ;;  %v5640_v51 = vld [vmem:[%s9359_s12] sm:$0xff] }
 0x4cf   : > { %v5012_v62 = vadd.f32 %v7401_v60, %v9005_v23  ;;  %v5003_v6 = vpop.f32.mrb[147].mxu0  ;;  %v5465_v10 = vmax.f32 %v5009_v7, 0.0  ;;  %7680 = vset.pattern.permute.xlu0 %v7972_v49 }
 0x4d0   : > { %v5004_v63 = vadd.f32 %v9005_v23, %v5003_v6  ;;  %7506 = vmatprep.mubr.bf16.mxu0 %v4829_v14  ;;  %v5463_v0 = vmax.f32 %v5001_v16, 0.0  ;;  %5643 = vperm.xlu0 %7680, %v5640_v51  }
 0x4d1   : > { %v5466_v24 = vmax.f32 %v5012_v62, 0.0  ;;  %7507 = vmatmul.mubr.bf16.gmra.mrb[252].mxu0 %v4830_v13 }
 0x4d2   : > { %v5464_v15 = vmax.f32 %v5004_v63, 0.0 }
 0x4d3   : > { %v5584_v5 = vpack.c.bf16 %v5466_v24, %v5465_v10 }
 0x4d4   : > { %v5583_v31 = vpack.c.bf16 %v5464_v15, %v5463_v0  ;;  %v7404_v2 = vpop.f32.mrb[148].mxu0 }
 0x4d5   : > { %v5025_v20 = vadd.f32 %v7404_v2, %v9005_v23  ;;  %v5016_v29 = vpop.f32.mrb[149].mxu0 }
 0x4d6   : > { %v5017_v19 = vadd.f32 %v9005_v23, %v5016_v29  ;;  %v7405_v18 = vpop.f32.mrb[150].mxu0  ;;  %6738 = vmatprep.subr.bf16.mxu1 %v5583_v31 }
 0x4d7   : > { %v5028_v32 = vadd.f32 %v7405_v18, %v9005_v23  ;;  %v5019_v12 = vpop.f32.mrb[151].mxu0  ;;  %6739 = vmatpush3.bf16.xpose.msra.mxu1 %v9017_v21  ;;  %v5469_v22 = vmax.f32 %v5025_v20, 0.0 }
 0x4d8   : > { %v5020_v26 = vadd.f32 %v9005_v23, %v5019_v12  ;;  %6740 = vmatprep.subr.bf16.mxu1 %v5584_v5  ;;  %v5467_v61 = vmax.f32 %v5017_v19, 0.0 }
 0x4d9   : > { %v5470_v30 = vmax.f32 %v5028_v32, 0.0 }
 0x4da   : > { %v5468_v27 = vmax.f32 %v5020_v26, 0.0 }
 0x4db   : > { %v5586_v17 = vpack.c.bf16 %v5470_v30, %v5469_v22 }
 0x4dc   : > { %v5585_v37 = vpack.c.bf16 %v5468_v27, %v5467_v61  ;;  %v7408_v25 = vpop.f32.mrb[152].mxu0 }
 0x4dd   : > { %v5041_v38 = vadd.f32 %v7408_v25, %v9005_v23  ;;  %v5032_v42 = vpop.f32.mrb[153].mxu0 }
 0x4de   : > { %v5033_v47 = vadd.f32 %v9005_v23, %v5032_v42  ;;  %v7409_v52 = vpop.f32.mrb[154].mxu0 }
 0x4df   : > { %v5044_v9 = vadd.f32 %v7409_v52, %v9005_v23  ;;  %v5035_v46 = vpop.f32.mrb[155].mxu0  ;;  %6741 = vmatpush3.bf16.xpose.msra.mxu1 %v9015_v36  ;;  %v5473_v34 = vmax.f32 %v5041_v38, 0.0 }
 0x4e0   : > { %v5036_v21 = vadd.f32 %v9005_v23, %v5035_v46  ;;  %6742 = vmatprep.subr.bf16.mxu1 %v5585_v37  ;;  %v5471_v55 = vmax.f32 %v5033_v47, 0.0 }
 0x4e1   : > { %v5474_v59 = vmax.f32 %v5044_v9, 0.0 }
 0x4e2   : > { %v5472_v48 = vmax.f32 %v5036_v21, 0.0 }
 0x4e3   : > { %v5588_v50 = vpack.c.bf16 %v5474_v59, %v5473_v34 }
 0x4e4   : > { %v5587_v53 = vpack.c.bf16 %v5472_v48, %v5471_v55  ;;  %v7412_v33 = vpop.f32.mrb[156].mxu0 }
 0x4e5   : > { %v5057_v41 = vadd.f32 %v7412_v33, %v9005_v23  ;;  %v5048_v56 = vpop.f32.mrb[157].mxu0 }
 0x4e6   : > { %v5049_v3 = vadd.f32 %v9005_v23, %v5048_v56  ;;  %v7413_v45 = vpop.f32.mrb[158].mxu0 }
 0x4e7   : > { %v5060_v58 = vadd.f32 %v7413_v45, %v9005_v23  ;;  %v5051_v4 = vpop.f32.mrb[159].mxu0  ;;  %6743 = vmatpush3.bf16.xpose.msra.mxu1 %v9031_v1  ;;  %v5477_v28 = vmax.f32 %v5057_v41, 0.0 }
 0x4e8   : > { %v5052_v36 = vadd.f32 %v9005_v23, %v5051_v4  ;;  %6744 = vmatprep.subr.bf16.mxu1 %v5586_v17  ;;  %v5475_v11 = vmax.f32 %v5049_v3, 0.0 }
 0x4e9   : > { %v5478_v8 = vmax.f32 %v5060_v58, 0.0 }
 0x4ea   : > { %v5476_v13 = vmax.f32 %v5052_v36, 0.0 }
 0x4eb   : > { %v5590_v7 = vpack.c.bf16 %v5478_v8, %v5477_v28 }
 0x4ec   : > { %v5589_v43 = vpack.c.bf16 %v5476_v13, %v5475_v11  ;;  %v7416_v14 = vpop.f32.mrb[160].mxu0 }
 0x4ed   : > { %v5073_v16 = vadd.f32 %v7416_v14, %v9005_v23  ;;  %v5064_v1 = vpop.f32.mrb[161].mxu0 }
 0x4ee   : > { %v5065_v60 = vadd.f32 %v9005_v23, %v5064_v1  ;;  %v7417_v62 = vpop.f32.mrb[162].mxu0 }
 0x4ef   : > { %v5076_v6 = vadd.f32 %v7417_v62, %v9005_v23  ;;  %v5067_v63 = vpop.f32.mrb[163].mxu0  ;;  %6745 = vmatpush3.bf16.xpose.msra.mxu1 %v9029_v54  ;;  %v5481_v24 = vmax.f32 %v5073_v16, 0.0 }
 0x4f0   : > { %v5068_v10 = vadd.f32 %v9005_v23, %v5067_v63  ;;  %6746 = vmatprep.subr.bf16.mxu1 %v5587_v53  ;;  %v5479_v15 = vmax.f32 %v5065_v60, 0.0 }
 0x4f1   : > { %v5482_v0 = vmax.f32 %v5076_v6, 0.0 }
 0x4f2   : > { %v5480_v5 = vmax.f32 %v5068_v10, 0.0 }
 0x4f3   : > { %v9076_v31 = vpack.c.bf16 %v5482_v0, %v5481_v24 }
 0x4f4   : > { %v9078_v2 = vpack.c.bf16 %v5480_v5, %v5479_v15  ;;  %v7420_v20 = vpop.f32.mrb[164].mxu0 }
 0x4f5   : > { %v5089_v29 = vadd.f32 %v7420_v20, %v9005_v23  ;;  %v5080_v19 = vpop.f32.mrb[165].mxu0 }
 0x4f6   : > { %v5081_v18 = vadd.f32 %v9005_v23, %v5080_v19  ;;  %v7421_v32 = vpop.f32.mrb[166].mxu0 }
 0x4f7   : > { %v5092_v54 = vadd.f32 %v7421_v32, %v9005_v23  ;;  %v5083_v12 = vpop.f32.mrb[167].mxu0  ;;  %6747 = vmatpush3.bf16.xpose.msra.mxu1 %v9039_v40  ;;  %v5485_v22 = vmax.f32 %v5089_v29, 0.0 }
 0x4f8   : > { %v5084_v26 = vadd.f32 %v9005_v23, %v5083_v12  ;;  %6748 = vmatprep.subr.bf16.mxu1 %v5588_v50  ;;  %v5483_v61 = vmax.f32 %v5081_v18, 0.0 }
 0x4f9   : > { %v5486_v30 = vmax.f32 %v5092_v54, 0.0 }
 0x4fa   : > { %v5484_v27 = vmax.f32 %v5084_v26, 0.0 }
 0x4fb   : > { %v9085_v17 = vpack.c.bf16 %v5486_v30, %v5485_v22 }
 0x4fc   : > { %v9087_v37 = vpack.c.bf16 %v5484_v27, %v5483_v61  ;;  %v7424_v25 = vpop.f32.mrb[168].mxu0 }
 0x4fd   : > { %v5105_v38 = vadd.f32 %v7424_v25, %v9005_v23  ;;  %v5096_v42 = vpop.f32.mrb[169].mxu0 }
 0x4fe   : > { %v5097_v47 = vadd.f32 %v9005_v23, %v5096_v42  ;;  %v7425_v52 = vpop.f32.mrb[170].mxu0 }
 0x4ff   : > { %v5108_v40 = vadd.f32 %v7425_v52, %v9005_v23  ;;  %v5099_v9 = vpop.f32.mrb[171].mxu0  ;;  %6749 = vmatpush3.bf16.xpose.msra.mxu1 %v9037_v39  ;;  %v5489_v21 = vmax.f32 %v5105_v38, 0.0 }
 0x500   : > { %v5100_v46 = vadd.f32 %v9005_v23, %v5099_v9  ;;  %6750 = vmatprep.subr.bf16.mxu1 %v5589_v43  ;;  %v5487_v59 = vmax.f32 %v5097_v47, 0.0 }
 0x501   : > { %v5490_v34 = vmax.f32 %v5108_v40, 0.0 }
 0x502   : > { %v5488_v55 = vmax.f32 %v5100_v46, 0.0 }
 0x503   : > { %v9094_v48 = vpack.c.bf16 %v5490_v34, %v5489_v21 }
 0x504   : > { %v9096_v50 = vpack.c.bf16 %v5488_v55, %v5487_v59  ;;  %v7428_v53 = vpop.f32.mrb[172].mxu0 }
 0x505   : > { %v5121_v33 = vadd.f32 %v7428_v53, %v9005_v23  ;;  %v5112_v41 = vpop.f32.mrb[173].mxu0 }
 0x506   : > { %v5113_v56 = vadd.f32 %v9005_v23, %v5112_v41  ;;  %v7429_v3 = vpop.f32.mrb[174].mxu0 }
 0x507   : > { %v5124_v39 = vadd.f32 %v7429_v3, %v9005_v23  ;;  %v5115_v45 = vpop.f32.mrb[175].mxu0  ;;  %6751 = vmatpush3.bf16.xpose.msra.mxu1 %v9047_v44  ;;  %v5493_v4 = vmax.f32 %v5121_v33, 0.0 }
 0x508   : > { %v5116_v58 = vadd.f32 %v9005_v23, %v5115_v45  ;;  %6752 = vmatprep.subr.bf16.mxu1 %v5590_v7  ;;  %v5491_v28 = vmax.f32 %v5113_v56, 0.0 }
 0x509   : > { %v5494_v36 = vmax.f32 %v5124_v39, 0.0 }
 0x50a   : > { %v5492_v8 = vmax.f32 %v5116_v58, 0.0 }
 0x50b   : > { %v9103_v49 = vpack.c.bf16 %v5494_v36, %v5493_v4 }
 0x50c   : > { %v9105_v51 = vpack.c.bf16 %v5492_v8, %v5491_v28  ;;  %v7432_v11 = vpop.f32.mrb[176].mxu0 }
 0x50d   : > { %v5137_v13 = vadd.f32 %v7432_v11, %v9005_v23  ;;  %v5128_v43 = vpop.f32.mrb[177].mxu0 }
 0x50e   : > { %v5129_v14 = vadd.f32 %v9005_v23, %v5128_v43  ;;  %v7433_v16 = vpop.f32.mrb[178].mxu0 }
 0x50f   : > { %v5140_v44 = vadd.f32 %v7433_v16, %v9005_v23  ;;  %v5131_v1 = vpop.f32.mrb[179].mxu0  ;;  %6753 = vmatpush3.bf16.xpose.msra.mxu1 %v9045_v35  ;;  %v5497_v60 = vmax.f32 %v5137_v13, 0.0 }
 0x510   : > { %v5132_v7 = vadd.f32 %v9005_v23, %v5131_v1  ;;  %v5495_v6 = vmax.f32 %v5129_v14, 0.0 }
 0x511   : > { %v5498_v62 = vmax.f32 %v5140_v44, 0.0 }
 0x512   : > { %v5496_v63 = vmax.f32 %v5132_v7, 0.0 }
 0x513   : > { %v5600_v10 = vpack.c.bf16 %v5498_v62, %v5497_v60 }
 0x514   : > { %v5599_v24 = vpack.c.bf16 %v5496_v63, %v5495_v6  ;;  %v7436_v0 = vpop.f32.mrb[180].mxu0 }
 0x515   : > { %v5153_v15 = vadd.f32 %v7436_v0, %v9005_v23  ;;  %v5144_v5 = vpop.f32.mrb[181].mxu0 }
 0x516   : > { %v5145_v20 = vadd.f32 %v9005_v23, %v5144_v5  ;;  %v7437_v29 = vpop.f32.mrb[182].mxu0  ;;  %6756 = vmatprep.subr.bf16.mxu1 %v5599_v24  ;;  %6755 = vmatmul.mubr.bf16.vlgmr.msra.gmra.mrb[0].mxu1 %v8987_v57 }
 0x517   : > { %v5156_v35 = vadd.f32 %v7437_v29, %v9005_v23  ;;  %v5147_v19 = vpop.f32.mrb[183].mxu0  ;;  %6757 = vmatpush3.bf16.xpose.msra.mxu1 %v9078_v2  ;;  %6772 = vmatprep.mubr.bf16.mxu1 %v8987_v57  ;;  %v5501_v32 = vmax.f32 %v5153_v15, 0.0 }
 0x518   : > { %v5148_v18 = vadd.f32 %v9005_v23, %v5147_v19  ;;  %6758 = vmatprep.subr.bf16.mxu1 %v5600_v10  ;;  %v5499_v12 = vmax.f32 %v5145_v20, 0.0 }
 0x519   : > { %v5502_v54 = vmax.f32 %v5156_v35, 0.0 }
 0x51a   : > { %v5500_v26 = vmax.f32 %v5148_v18, 0.0 }
 0x51b   : > { %v5602_v22 = vpack.c.bf16 %v5502_v54, %v5501_v32 }
 0x51c   : > { %v5601_v30 = vpack.c.bf16 %v5500_v26, %v5499_v12  ;;  %v7440_v61 = vpop.f32.mrb[184].mxu0 }
 0x51d   : > { %v5169_v27 = vadd.f32 %v7440_v61, %v9005_v23  ;;  %v5160_v25 = vpop.f32.mrb[185].mxu0 }
 0x51e   : > { %v5161_v38 = vadd.f32 %v9005_v23, %v5160_v25  ;;  %v7441_v42 = vpop.f32.mrb[186].mxu0 }
 0x51f   : > { %v5172_v2 = vadd.f32 %v7441_v42, %v9005_v23  ;;  %v5163_v47 = vpop.f32.mrb[187].mxu0  ;;  %6759 = vmatpush3.bf16.xpose.msra.mxu1 %v9076_v31  ;;  %v5505_v40 = vmax.f32 %v5169_v27, 0.0 }
 0x520   : > { %v5164_v52 = vadd.f32 %v9005_v23, %v5163_v47  ;;  %6760 = vmatprep.subr.bf16.mxu1 %v5601_v30  ;;  %v5503_v46 = vmax.f32 %v5161_v38, 0.0 }
 0x521   : > { %v5506_v9 = vmax.f32 %v5172_v2, 0.0 }
 0x522   : > { %v5504_v21 = vmax.f32 %v5164_v52, 0.0 }
 0x523   : > { %v5604_v34 = vpack.c.bf16 %v5506_v9, %v5505_v40 }
 0x524   : > { %v5603_v59 = vpack.c.bf16 %v5504_v21, %v5503_v46  ;;  %v7444_v55 = vpop.f32.mrb[188].mxu0 }
 0x525   : > { %v5185_v53 = vadd.f32 %v7444_v55, %v9005_v23  ;;  %v5176_v33 = vpop.f32.mrb[189].mxu0 }
 0x526   : > { %v5177_v41 = vadd.f32 %v9005_v23, %v5176_v33  ;;  %v7445_v56 = vpop.f32.mrb[190].mxu0 }
 0x527   : > { %v5188_v3 = vadd.f32 %v7445_v56, %v9005_v23  ;;  %v5179_v39 = vpop.f32.mrb[191].mxu0  ;;  %6761 = vmatpush3.bf16.xpose.msra.mxu1 %v9087_v37  ;;  %v5509_v45 = vmax.f32 %v5185_v53, 0.0 }
 0x528   : > { %v5180_v31 = vadd.f32 %v9005_v23, %v5179_v39  ;;  %6762 = vmatprep.subr.bf16.mxu1 %v5602_v22  ;;  %v5507_v4 = vmax.f32 %v5177_v41, 0.0 }
 0x529   : > { %v5510_v58 = vmax.f32 %v5188_v3, 0.0 }
 0x52a   : > { %v5508_v36 = vmax.f32 %v5180_v31, 0.0 }
 0x52b   : > { %v5606_v28 = vpack.c.bf16 %v5510_v58, %v5509_v45 }
 0x52c   : > { %v5605_v8 = vpack.c.bf16 %v5508_v36, %v5507_v4  ;;  %v7448_v11 = vpop.f32.mrb[192].mxu0 }
 0x52d   : > { %v5201_v13 = vadd.f32 %v7448_v11, %v9005_v23  ;;  %v5192_v43 = vpop.f32.mrb[193].mxu0 }
 0x52e   : > { %v5193_v14 = vadd.f32 %v9005_v23, %v5192_v43  ;;  %v7449_v16 = vpop.f32.mrb[194].mxu0 }
 0x52f   : > { %v5204_v44 = vadd.f32 %v7449_v16, %v9005_v23  ;;  %v5195_v1 = vpop.f32.mrb[195].mxu0  ;;  %6763 = vmatpush3.bf16.xpose.msra.mxu1 %v9085_v17  ;;  %v5513_v7 = vmax.f32 %v5201_v13, 0.0 }
 0x530   : > { %v5196_v37 = vadd.f32 %v9005_v23, %v5195_v1  ;;  %6764 = vmatprep.subr.bf16.mxu1 %v5603_v59  ;;  %v5511_v62 = vmax.f32 %v5193_v14, 0.0 }
 0x531   : > { %v5514_v60 = vmax.f32 %v5204_v44, 0.0 }
 0x532   : > { %v5512_v6 = vmax.f32 %v5196_v37, 0.0 }
 0x533   : > { %v9134_v63 = vpack.c.bf16 %v5514_v60, %v5513_v7 }
 0x534   : > { %v9136_v10 = vpack.c.bf16 %v5512_v6, %v5511_v62  ;;  %v7452_v24 = vpop.f32.mrb[196].mxu0 }
 0x535   : > { %v5217_v0 = vadd.f32 %v7452_v24, %v9005_v23  ;;  %v5208_v15 = vpop.f32.mrb[197].mxu0 }
 0x536   : > { %v5209_v5 = vadd.f32 %v9005_v23, %v5208_v15  ;;  %v7453_v20 = vpop.f32.mrb[198].mxu0 }
 0x537   : > { %v5220_v17 = vadd.f32 %v7453_v20, %v9005_v23  ;;  %v5211_v29 = vpop.f32.mrb[199].mxu0  ;;  %6765 = vmatpush3.bf16.xpose.msra.mxu1 %v9096_v50  ;;  %v5517_v19 = vmax.f32 %v5217_v0, 0.0 }
 0x538   : > { %v5212_v35 = vadd.f32 %v9005_v23, %v5211_v29  ;;  %6766 = vmatprep.subr.bf16.mxu1 %v5604_v34  ;;  %v5515_v32 = vmax.f32 %v5209_v5, 0.0 }
 0x539   : > { %v5518_v18 = vmax.f32 %v5220_v17, 0.0 }
 0x53a   : > { %v5516_v54 = vmax.f32 %v5212_v35, 0.0 }
 0x53b   : > { %v9143_v12 = vpack.c.bf16 %v5518_v18, %v5517_v19 }
 0x53c   : > { %v9145_v26 = vpack.c.bf16 %v5516_v54, %v5515_v32  ;;  %v7456_v22 = vpop.f32.mrb[200].mxu0 }
 0x53d   : > { %v5233_v30 = vadd.f32 %v7456_v22, %v9005_v23  ;;  %v5224_v61 = vpop.f32.mrb[201].mxu0 }
 0x53e   : > { %v5225_v27 = vadd.f32 %v9005_v23, %v5224_v61  ;;  %v7457_v25 = vpop.f32.mrb[202].mxu0 }
 0x53f   : > { %v5236_v50 = vadd.f32 %v7457_v25, %v9005_v23  ;;  %v5227_v38 = vpop.f32.mrb[203].mxu0  ;;  %6767 = vmatpush3.bf16.xpose.msra.mxu1 %v9094_v48  ;;  %v5521_v2 = vmax.f32 %v5233_v30, 0.0 }
 0x540   : > { %v5228_v42 = vadd.f32 %v9005_v23, %v5227_v38  ;;  %6768 = vmatprep.subr.bf16.mxu1 %v5605_v8  ;;  %v5519_v52 = vmax.f32 %v5225_v27, 0.0 }
 0x541   : > { %v5522_v47 = vmax.f32 %v5236_v50, 0.0 }
 0x542   : > { %v5520_v40 = vmax.f32 %v5228_v42, 0.0 }
 0x543   : > { %v9152_v9 = vpack.c.bf16 %v5522_v47, %v5521_v2 }
 0x544   : > { %v9154_v46 = vpack.c.bf16 %v5520_v40, %v5519_v52  ;;  %v7460_v21 = vpop.f32.mrb[204].mxu0 }
 0x545   : > { %v5249_v34 = vadd.f32 %v7460_v21, %v9005_v23  ;;  %v5240_v59 = vpop.f32.mrb[205].mxu0 }
 0x546   : > { %v5241_v55 = vadd.f32 %v9005_v23, %v5240_v59  ;;  %v7461_v53 = vpop.f32.mrb[206].mxu0 }
 0x547   : > { %v5252_v48 = vadd.f32 %v7461_v53, %v9005_v23  ;;  %v5243_v33 = vpop.f32.mrb[207].mxu0  ;;  %6769 = vmatpush3.bf16.xpose.msra.mxu1 %v9105_v51  ;;  %v5525_v56 = vmax.f32 %v5249_v34, 0.0 }
 0x548   : > { %v5244_v41 = vadd.f32 %v9005_v23, %v5243_v33  ;;  %6770 = vmatprep.subr.bf16.mxu1 %v5606_v28  ;;  %v5523_v39 = vmax.f32 %v5241_v55, 0.0 }
 0x549   : > { %v5526_v3 = vmax.f32 %v5252_v48, 0.0 }
 0x54a   : > { %v5524_v31 = vmax.f32 %v5244_v41, 0.0 }
 0x54b   : > { %v9161_v45 = vpack.c.bf16 %v5526_v3, %v5525_v56 }
 0x54c   : > { %v9163_v58 = vpack.c.bf16 %v5524_v31, %v5523_v39  ;;  %v7464_v4 = vpop.f32.mrb[208].mxu0 }
 0x54d   : > { %v5265_v36 = vadd.f32 %v7464_v4, %v9005_v23  ;;  %v5256_v8 = vpop.f32.mrb[209].mxu0 }
 0x54e   : > { %v5257_v11 = vadd.f32 %v9005_v23, %v5256_v8  ;;  %v7465_v13 = vpop.f32.mrb[210].mxu0 }
 0x54f   : > { %v5268_v51 = vadd.f32 %v7465_v13, %v9005_v23  ;;  %v5259_v43 = vpop.f32.mrb[211].mxu0  ;;  %6771 = vmatpush3.bf16.xpose.msra.mxu1 %v9103_v49  ;;  %v5529_v14 = vmax.f32 %v5265_v36, 0.0 }
 0x550   : > { %v5260_v28 = vadd.f32 %v9005_v23, %v5259_v43  ;;  %v5527_v44 = vmax.f32 %v5257_v11, 0.0 }
 0x551   : > { %v5530_v16 = vmax.f32 %v5268_v51, 0.0 }
 0x552   : > { %v5528_v1 = vmax.f32 %v5260_v28, 0.0 }
 0x553   : > { %v5616_v37 = vpack.c.bf16 %v5530_v16, %v5529_v14 }
 0x554   : > { %v5615_v7 = vpack.c.bf16 %v5528_v1, %v5527_v44  ;;  %v7468_v60 = vpop.f32.mrb[212].mxu0 }
 0x555   : > { %v5281_v62 = vadd.f32 %v7468_v60, %v9005_v23  ;;  %v5272_v6 = vpop.f32.mrb[213].mxu0 }
 0x556   : > { %v5273_v24 = vadd.f32 %v9005_v23, %v5272_v6  ;;  %v7469_v0 = vpop.f32.mrb[214].mxu0  ;;  %6774 = vmatprep.subr.bf16.mxu1 %v5615_v7  ;;  %6773 = vmatmul.mubr.bf16.vlgmr.msra.gmra.mrb[4].mxu1 %v8987_v57 }
 0x557   : > { %v5284_v49 = vadd.f32 %v7469_v0, %v9005_v23  ;;  %v5275_v15 = vpop.f32.mrb[215].mxu0  ;;  %6775 = vmatpush3.bf16.xpose.msra.mxu1 %v9136_v10  ;;  %6790 = vmatprep.mubr.bf16.mxu1 %v8987_v57  ;;  %v5533_v20 = vmax.f32 %v5281_v62, 0.0 }
 0x558   : > { %v5276_v5 = vadd.f32 %v9005_v23, %v5275_v15  ;;  %6776 = vmatprep.subr.bf16.mxu1 %v5616_v37  ;;  %v5531_v29 = vmax.f32 %v5273_v24, 0.0 }
 0x559   : > { %v5534_v17 = vmax.f32 %v5284_v49, 0.0 }
 0x55a   : > { %v5532_v35 = vmax.f32 %v5276_v5, 0.0 }
 0x55b   : > { %v5618_v19 = vpack.c.bf16 %v5534_v17, %v5533_v20 }
 0x55c   : > { %v5617_v18 = vpack.c.bf16 %v5532_v35, %v5531_v29  ;;  %v7472_v32 = vpop.f32.mrb[216].mxu0 }
 0x55d   : > { %v5297_v54 = vadd.f32 %v7472_v32, %v9005_v23  ;;  %v5288_v22 = vpop.f32.mrb[217].mxu0 }
 0x55e   : > { %v5289_v30 = vadd.f32 %v9005_v23, %v5288_v22  ;;  %v7473_v61 = vpop.f32.mrb[218].mxu0 }
 0x55f   : > { %v5300_v10 = vadd.f32 %v7473_v61, %v9005_v23  ;;  %v5291_v27 = vpop.f32.mrb[219].mxu0  ;;  %6777 = vmatpush3.bf16.xpose.msra.mxu1 %v9134_v63  ;;  %v5537_v25 = vmax.f32 %v5297_v54, 0.0 }
 0x560   : > { %v5292_v57 = vadd.f32 %v9005_v23, %v5291_v27  ;;  %6778 = vmatprep.subr.bf16.mxu1 %v5617_v18  ;;  %v5535_v38 = vmax.f32 %v5289_v30, 0.0 }
 0x561   : > { %v5538_v50 = vmax.f32 %v5300_v10, 0.0 }
 0x562   : > { %v5536_v42 = vmax.f32 %v5292_v57, 0.0 }
 0x563   : > { %v5620_v2 = vpack.c.bf16 %v5538_v50, %v5537_v25 }
 0x564   : > { %v5619_v47 = vpack.c.bf16 %v5536_v42, %v5535_v38  ;;  %v7476_v52 = vpop.f32.mrb[220].mxu0 }
 0x565   : > { %v5313_v40 = vadd.f32 %v7476_v52, %v9005_v23  ;;  %v5304_v21 = vpop.f32.mrb[221].mxu0 }
 0x566   : > { %v5305_v34 = vadd.f32 %v9005_v23, %v5304_v21  ;;  %v7477_v59 = vpop.f32.mrb[222].mxu0  ;;  %v9221_v21 = vld [vmem:[%s9357_s10] ss:$0 sm:$0xff] }
 0x567   : > { %v5316_v55 = vadd.f32 %v7477_v59, %v9005_v23  ;;  %v5307_v53 = vpop.f32.mrb[223].mxu0  ;;  %6779 = vmatpush3.bf16.xpose.msra.mxu1 %v9145_v26  ;;  %v5541_v48 = vmax.f32 %v5313_v40, 0.0 }
 0x568   : > { %v5308_v63 = vadd.f32 %v9005_v23, %v5307_v53  ;;  %6780 = vmatprep.subr.bf16.mxu1 %v5618_v19  ;;  %v5539_v41 = vmax.f32 %v5305_v34, 0.0 }
 0x569   : > { %v5542_v33 = vmax.f32 %v5316_v55, 0.0 }
 0x56a   : > { %v5540_v56 = vmax.f32 %v5308_v63, 0.0 }
 0x56b   : > { %v5622_v3 = vpack.c.bf16 %v5542_v33, %v5541_v48 }
 0x56c   : > { %v5621_v39 = vpack.c.bf16 %v5540_v56, %v5539_v41  ;;  %v7480_v31 = vpop.f32.mrb[224].mxu0 }
 0x56d   : > { %v5329_v4 = vadd.f32 %v7480_v31, %v9005_v23  ;;  %v5320_v36 = vpop.f32.mrb[225].mxu0 }
 0x56e   : > { %v5321_v8 = vadd.f32 %v9005_v23, %v5320_v36  ;;  %v7481_v11 = vpop.f32.mrb[226].mxu0 }
 0x56f   : > { %v5332_v13 = vadd.f32 %v7481_v11, %v9005_v23  ;;  %v5323_v51 = vpop.f32.mrb[227].mxu0  ;;  %6781 = vmatpush3.bf16.xpose.msra.mxu1 %v9143_v12  ;;  %v5545_v43 = vmax.f32 %v5329_v4, 0.0 }
 0x570   : > { %v5324_v26 = vadd.f32 %v9005_v23, %v5323_v51  ;;  %6782 = vmatprep.subr.bf16.mxu1 %v5619_v47  ;;  %v5543_v14 = vmax.f32 %v5321_v8, 0.0 }
 0x571   : > { %v5546_v28 = vmax.f32 %v5332_v13, 0.0 }
 0x572   : > { %v5544_v16 = vmax.f32 %v5324_v26, 0.0 }
 0x573   : > { %v9192_v44 = vpack.c.bf16 %v5546_v28, %v5545_v43 }
 0x574   : > { %v9194_v1 = vpack.c.bf16 %v5544_v16, %v5543_v14  ;;  %v7484_v37 = vpop.f32.mrb[228].mxu0 }
 0x575   : > { %v5345_v7 = vadd.f32 %v7484_v37, %v9005_v23  ;;  %v5336_v60 = vpop.f32.mrb[229].mxu0 }
 0x576   : > { %v5337_v62 = vadd.f32 %v9005_v23, %v5336_v60  ;;  %v7485_v6 = vpop.f32.mrb[230].mxu0 }
 0x577   : > { %v5348_v12 = vadd.f32 %v7485_v6, %v9005_v23  ;;  %v5339_v24 = vpop.f32.mrb[231].mxu0  ;;  %6783 = vmatpush3.bf16.xpose.msra.mxu1 %v9154_v46  ;;  %v5549_v49 = vmax.f32 %v5345_v7, 0.0 }
 0x578   : > { %v5340_v0 = vadd.f32 %v9005_v23, %v5339_v24  ;;  %6784 = vmatprep.subr.bf16.mxu1 %v5620_v2  ;;  %v5547_v5 = vmax.f32 %v5337_v62, 0.0 }
 0x579   : > { %v5550_v15 = vmax.f32 %v5348_v12, 0.0 }
 0x57a   : > { %v5548_v20 = vmax.f32 %v5340_v0, 0.0 }
 0x57b   : > { %v9201_v17 = vpack.c.bf16 %v5550_v15, %v5549_v49 }
 0x57c   : > { %v9203_v29 = vpack.c.bf16 %v5548_v20, %v5547_v5  ;;  %v7488_v35 = vpop.f32.mrb[232].mxu0 }
 0x57d   : > { %v5361_v19 = vadd.f32 %v7488_v35, %v9005_v23  ;;  %v5352_v18 = vpop.f32.mrb[233].mxu0 }
 0x57e   : > { %v5353_v32 = vadd.f32 %v9005_v23, %v5352_v18  ;;  %v7489_v54 = vpop.f32.mrb[234].mxu0 }
 0x57f   : > { %v5364_v46 = vadd.f32 %v7489_v54, %v9005_v23  ;;  %v5355_v22 = vpop.f32.mrb[235].mxu0  ;;  %6785 = vmatpush3.bf16.xpose.msra.mxu1 %v9152_v9  ;;  %v5553_v61 = vmax.f32 %v5361_v19, 0.0 }
 0x580   : > { %v5356_v30 = vadd.f32 %v9005_v23, %v5355_v22  ;;  %6786 = vmatprep.subr.bf16.mxu1 %v5621_v39  ;;  %v5551_v27 = vmax.f32 %v5353_v32, 0.0 }
 0x581   : > { %v5554_v10 = vmax.f32 %v5364_v46, 0.0 }
 0x582   : > { %v5552_v57 = vmax.f32 %v5356_v30, 0.0 }
 0x583   : > { %v9210_v25 = vpack.c.bf16 %v5554_v10, %v5553_v61 }
 0x584   : > { %v9212_v50 = vpack.c.bf16 %v5552_v57, %v5551_v27  ;;  %v7492_v38 = vpop.f32.mrb[236].mxu0 }
 0x585   : > { %v5377_v42 = vadd.f32 %v7492_v38, %v9005_v23  ;;  %v5368_v2 = vpop.f32.mrb[237].mxu0 }
 0x586   : > { %v5369_v47 = vadd.f32 %v9005_v23, %v5368_v2  ;;  %v7493_v52 = vpop.f32.mrb[238].mxu0 }
 0x587   : > { %v5380_v9 = vadd.f32 %v7493_v52, %v9005_v23  ;;  %v5371_v40 = vpop.f32.mrb[239].mxu0  ;;  %6787 = vmatpush3.bf16.xpose.msra.mxu1 %v9163_v58  ;;  %v5557_v59 = vmax.f32 %v5377_v42, 0.0 }
 0x588   : > { %v5372_v34 = vadd.f32 %v9221_v21, %v5371_v40  ;;  %6788 = vmatprep.subr.bf16.mxu1 %v5622_v3  ;;  %v5555_v53 = vmax.f32 %v5369_v47, 0.0 }
 0x589   : > { %v5558_v55 = vmax.f32 %v5380_v9, 0.0 }
 0x58a   : > { %v5556_v63 = vmax.f32 %v5372_v34, 0.0 }
 0x58b   : > { %v9224_v48 = vpack.c.bf16 %v5558_v55, %v5557_v59 }
 0x58c   : > { %v9226_v33 = vpack.c.bf16 %v5556_v63, %v5555_v53  ;;  %v7496_v23 = vpop.f32.mrb[240].mxu0 }
 0x58d   : > { %v5393_v41 = vadd.f32 %v9221_v21, %v7496_v23  ;;  %v5384_v58 = vpop.f32.mrb[241].mxu0 }
 0x58e   : > { %v5385_v56 = vadd.f32 %v9221_v21, %v5384_v58  ;;  %v7497_v39 = vpop.f32.mrb[242].mxu0 }
 0x58f   : > { %v5396_v31 = vadd.f32 %v9221_v21, %v7497_v39  ;;  %v5387_v4 = vpop.f32.mrb[243].mxu0  ;;  %6789 = vmatpush3.bf16.xpose.msra.mxu1 %v9161_v45  ;;  %v5561_v36 = vmax.f32 %v5393_v41, 0.0  ;;  %v7907_v45 = vld [vmem:[%s9358_s11] sm:$0xf] }
 0x590   : > { %v5388_v3 = vadd.f32 %v9221_v21, %v5387_v4  ;;  %v5559_v11 = vmax.f32 %v5385_v56, 0.0 }
 0x591   : > { %v5562_v8 = vmax.f32 %v5396_v31, 0.0 }
 0x592   : > { %v5560_v13 = vmax.f32 %v5388_v3, 0.0 }
 0x593   : > { %v5632_v51 = vpack.c.bf16 %v5562_v8, %v5561_v36 }
 0x594   : > { %v5631_v26 = vpack.c.bf16 %v5560_v13, %v5559_v11  ;;  %v7500_v43 = vpop.f32.mrb[244].mxu0 }
 0x595   : > { %v5409_v28 = vadd.f32 %v9221_v21, %v7500_v43  ;;  %v5400_v14 = vpop.f32.mrb[245].mxu0 }
 0x596   : > { %v5401_v16 = vadd.f32 %v9221_v21, %v5400_v14  ;;  %v7501_v37 = vpop.f32.mrb[246].mxu0  ;;  %6792 = vmatprep.subr.bf16.mxu1 %v5631_v26  ;;  %6791 = vmatmul.mubr.bf16.vlgmr.msra.gmra.mrb[8].mxu1 %v7907_v45 }
 0x597   : > { %v5412_v7 = vadd.f32 %v9221_v21, %v7501_v37  ;;  %v5403_v60 = vpop.f32.mrb[247].mxu0  ;;  %6793 = vmatpush3.bf16.xpose.msra.mxu1 %v9194_v1  ;;  %6808 = vmatprep.mubr.bf16.mxu1 %v7907_v45  ;;  %v5565_v6 = vmax.f32 %v5409_v28, 0.0  ;;  %v5810_v28 = vlaneseq }
 0x598   : > { %v5404_v62 = vadd.f32 %v9221_v21, %v5403_v60  ;;  %6794 = vmatprep.subr.bf16.mxu1 %v5632_v51  ;;  %v5563_v24 = vmax.f32 %v5401_v16, 0.0 }
 0x599   : > { %v5566_v12 = vmax.f32 %v5412_v7, 0.0  ;;  %v9261_v37 = vshrl.u32 %v5810_v28, 7 }
 0x59a   : > { %v5564_v0 = vmax.f32 %v5404_v62, 0.0 }
 0x59b   : > { %v5634_v49 = vpack.c.bf16 %v5566_v12, %v5565_v6  ;;  %vm5812_vm4 = vcmp.eq.s32.totalorder %v9261_v37, 0 }
 0x59c   : > { %v5633_v15 = vpack.c.bf16 %v5564_v0, %v5563_v24  ;;  %v7504_v5 = vpop.f32.mrb[248].mxu0 }
 0x59d   : > { %v5425_v20 = vadd.f32 %v9221_v21, %v7504_v5  ;;  %v5416_v35 = vpop.f32.mrb[249].mxu0 }
 0x59e   : > { %v5417_v19 = vadd.f32 %v9221_v21, %v5416_v35  ;;  %v7505_v18 = vpop.f32.mrb[250].mxu0 }
 0x59f   : > { %v5428_v32 = vadd.f32 %v9221_v21, %v7505_v18  ;;  %v5419_v1 = vpop.f32.mrb[251].mxu0  ;;  %6795 = vmatpush3.bf16.xpose.msra.mxu1 %v9192_v44  ;;  %v5569_v46 = vmax.f32 %v5425_v20, 0.0 }
 0x5a0   : > { %v5420_v54 = vadd.f32 %v9221_v21, %v5419_v1  ;;  %6796 = vmatprep.subr.bf16.mxu1 %v5633_v15  ;;  %v5567_v30 = vmax.f32 %v5417_v19, 0.0 }
 0x5a1   : > { %v5570_v22 = vmax.f32 %v5428_v32, 0.0 }
 0x5a2   : > { %v5568_v61 = vmax.f32 %v5420_v54, 0.0 }
 0x5a3   : > { %v5636_v10 = vpack.c.bf16 %v5570_v22, %v5569_v46 }
 0x5a4   : > { %v5635_v27 = vpack.c.bf16 %v5568_v61, %v5567_v30  ;;  %v7508_v57 = vpop.f32.mrb[252].mxu0 }
 0x5a5   : > { %v5441_v38 = vadd.f32 %v9221_v21, %v7508_v57  ;;  %v5432_v42 = vpop.f32.mrb[253].mxu0 }
 0x5a6   : > { %v5433_v2 = vadd.f32 %v9221_v21, %v5432_v42  ;;  %v7509_v47 = vpop.f32.mrb[254].mxu0 }
 0x5a7   : > { %v5444_v52 = vadd.f32 %v9221_v21, %v7509_v47  ;;  %v5435_v9 = vpop.f32.mrb[255].mxu0  ;;  %6797 = vmatpush3.bf16.xpose.msra.mxu1 %v9203_v29  ;;  %v5573_v40 = vmax.f32 %v5441_v38, 0.0  ;;  %v9256_v29 = vpop.permute.xlu0 %5643 }
 0x5a8   : > { %v5436_v44 = vadd.f32 %v9221_v21, %v5435_v9  ;;  %6798 = vmatprep.subr.bf16.mxu1 %v5634_v49  ;;  %v5571_v59 = vmax.f32 %v5433_v2, 0.0 }
 0x5a9   : > { %v5574_v34 = vmax.f32 %v5444_v52, 0.0 }
 0x5aa   : > { %v5572_v55 = vmax.f32 %v5436_v44, 0.0 }
 0x5ab   : > { %v5638_v53 = vpack.c.bf16 %v5574_v34, %v5573_v40 }
 0x5ac   : > { %v5637_v63 = vpack.c.bf16 %v5572_v55, %v5571_v59 }
 0x5af   : > { %6799 = vmatpush3.bf16.xpose.msra.mxu1 %v9201_v17 }
 0x5b0   : > { %6800 = vmatprep.subr.bf16.mxu1 %v5635_v27 }
 0x5b7   : > { %6801 = vmatpush3.bf16.xpose.msra.mxu1 %v9212_v50 }
 0x5b8   : > { %6802 = vmatprep.subr.bf16.mxu1 %v5636_v10 }
 0x5bf   : > { %6803 = vmatpush3.bf16.xpose.msra.mxu1 %v9210_v25 }
 0x5c0   : > { %6804 = vmatprep.subr.bf16.mxu1 %v5637_v63 }
 0x5c7   : > { %6805 = vmatpush3.bf16.xpose.msra.mxu1 %v9226_v33 }
 0x5c8   : > { %6806 = vmatprep.subr.bf16.mxu1 %v5638_v53 }
 0x5cf   : > { %6807 = vmatpush3.bf16.xpose.msra.mxu1 %v9224_v48 }
 0x5d6   : > { %6809 = vmatmul.mubr.bf16.vlgmr.msra.gmra.mrb[12].mxu1 %v7907_v45 }
 0x5e9   : > { %v5680_v21 = vpop.f32.mrb[0].mxu1 }
 0x5ea   : > { %v5681_v23 = vadd.f32 %v5680_v21, %v9256_v29  ;;  %v5682_v41 = vpop.f32.mrb[1].mxu1 }
 0x5eb   : > { %v5683_v17 = vadd.f32 %v5682_v41, %v9256_v29  ;;  %v5684_v58 = vpop.f32.mrb[2].mxu1 }
 0x5ec   : > { %v5821_v50 = vmin.f32 %v5681_v23, 20.0  ;;  %v6374_v56 = vmul.f32 -1.442695, %v5681_v23  ;;  %v5685_v39 = vpop.f32.mrb[3].mxu1  ;;  %vm5813_vm6 = vcmp.gt.f32.partialorder %v5681_v23, 20.0 }
 0x5ed   : > { %v5822_v25 = vmin.f32 %v5683_v17, 20.0  ;;  %v6375_v31 = vmul.f32 -1.442695, %v5683_v17  ;;  %vm5814_vm8 = vcmp.gt.f32.partialorder %v5683_v17, 20.0 }
 0x5ee   : > { %v5829_v4 = vmul.f32 1.442695, %v5821_v50  ;;  %7839 = vpow2.f32 %v6374_v56 }
 0x5ef   : > { %v5831_v33 = vmul.f32 1.442695, %v5822_v25  ;;  %7841 = vpow2.f32 %v6375_v31 }
 0x5f0   : > { %7843 = vpow2.f32 %v5829_v4 }
 0x5f1   : > { %7845 = vpow2.f32 %v5831_v33 }
 0x5f8   : > { %v7840_v48 = vpop.eup %7839 }
 0x5f9   : > { %v7842_v3 = vpop.eup %7841  ;;  %v5949_v51 = vadd.f32 1.0, %v7840_v48 }
 0x5fa   : > { %v7844_v36 = vpop.eup %7843  ;;  %v5950_v26 = vadd.f32 1.0, %v7842_v3 }
 0x5fb   : > { %v7846_v8 = vpop.eup %7845  ;;  %v5845_v11 = vadd.f32 1.0, %v7844_v36  ;;  %v5848_v43 = vmul.f32 -0.5, %v7844_v36  ;;  %v5851_v45 = vand.u32 2147483647, %v7844_v36 }
 0x5fc   : > { %v5854_v13 = vadd.f32 1.0, %v7846_v8  ;;  %v5857_v14 = vmul.f32 -0.5, %v7846_v8  ;;  %v5860_v60 = vand.u32 2147483647, %v7846_v8 }
 0x5fd   : > { %7847 = vlog2.f32 %v5845_v11  ;;  %v5849_v16 = vadd.f32 1.0, %v5848_v43  ;;  %vm5852_vm5 = vcmp.lt.f32.partialorder %v5851_v45, 0.0004427343 }
 0x5fe   : > { %7849 = vlog2.f32 %v5854_v13  ;;  %v5858_v7 = vadd.f32 1.0, %v5857_v14  ;;  %vm5861_vm7 = vcmp.lt.f32.partialorder %v5860_v60, 0.0004427343 }
 0x5ff   : > { %7851 = vrcp.f32 %v5949_v51  ;;  %v5850_v24 = vmul.f32 %v7844_v36, %v5849_v16 }
 0x600   : > { %7853 = vrcp.f32 %v5950_v26  ;;  %v5859_v49 = vmul.f32 %v7846_v8, %v5858_v7 }
 0x607   : > { %v7848_v62 = vpop.eup %7847 }
 0x608   : > { %v7850_v6 = vpop.eup %7849  ;;  %v5847_v12 = vmul.f32 0.6931472, %v7848_v62 }
 0x609   : > { %v5856_v0 = vmul.f32 0.6931472, %v7850_v6  ;;  %v7852_v5 = vpop.eup %7851 }
 0x60a   : > { %v5853_v15 = vsel %vm5852_vm5, %v5850_v24, %v5847_v12  ;;  %v7854_v19 = vpop.eup %7853 }
 0x60b   : > { %v5917_v20 = vsel %vm5813_vm6, %v5681_v23, %v5853_v15  ;;  %v5862_v35 = vsel %vm5861_vm7, %v5859_v49, %v5856_v0 }
 0x60c   : > { %v5973_v18 = vsel %vm5812_vm4, %v5917_v20, %v7852_v5  ;;  %v5918_v32 = vsel %vm5814_vm8, %v5683_v17, %v5862_v35 }
 0x60d   : > { %5981 = vst [vmem:[%s9268_s30] sm:$0xff] %v5973_v18  ;;  %v5974_v1 = vsel %vm5812_vm4, %v5918_v32, %v7854_v19 }
 0x60e   : > { %5982 = vst [vmem:[%s9268_s30 + $0x8] sm:$0xff] %v5974_v1 }
 0x629   : > { %v5721_v54 = vpop.f32.mrb[4].mxu1 }
 0x62a   : > { %v5722_v46 = vadd.f32 %v5721_v54, %v9256_v29  ;;  %v5723_v22 = vpop.f32.mrb[5].mxu1 }
 0x62b   : > { %v5724_v30 = vadd.f32 %v5723_v22, %v9256_v29  ;;  %v5725_v61 = vpop.f32.mrb[6].mxu1 }
 0x62c   : > { %v5823_v10 = vmin.f32 %v5722_v46, 20.0  ;;  %v6376_v27 = vmul.f32 -1.442695, %v5722_v46  ;;  %v5726_v57 = vpop.f32.mrb[7].mxu1  ;;  %vm5815_vm10 = vcmp.gt.f32.partialorder %v5722_v46, 20.0 }
 0x62d   : > { %v5824_v38 = vmin.f32 %v5724_v30, 20.0  ;;  %v6377_v42 = vmul.f32 -1.442695, %v5724_v30  ;;  %vm5816_vm12 = vcmp.gt.f32.partialorder %v5724_v30, 20.0 }
 0x62e   : > { %v5833_v2 = vmul.f32 1.442695, %v5823_v10  ;;  %7855 = vpow2.f32 %v6376_v27 }
 0x62f   : > { %v5835_v47 = vmul.f32 1.442695, %v5824_v38  ;;  %7857 = vpow2.f32 %v6377_v42 }
 0x630   : > { %7859 = vpow2.f32 %v5833_v2 }
 0x631   : > { %7861 = vpow2.f32 %v5835_v47 }
 0x638   : > { %v7856_v52 = vpop.eup %7855 }
 0x639   : > { %v7858_v9 = vpop.eup %7857  ;;  %v5951_v55 = vadd.f32 1.0, %v7856_v52 }
 0x63a   : > { %v7860_v44 = vpop.eup %7859  ;;  %v5952_v53 = vadd.f32 1.0, %v7858_v9 }
 0x63b   : > { %v7862_v40 = vpop.eup %7861  ;;  %v5863_v34 = vadd.f32 1.0, %v7860_v44  ;;  %v5866_v63 = vmul.f32 -0.5, %v7860_v44  ;;  %v5869_v41 = vand.u32 2147483647, %v7860_v44 }
 0x63c   : > { %v5872_v59 = vadd.f32 1.0, %v7862_v40  ;;  %v5875_v21 = vmul.f32 -0.5, %v7862_v40  ;;  %v5878_v58 = vand.u32 2147483647, %v7862_v40 }
 0x63d   : > { %7863 = vlog2.f32 %v5863_v34  ;;  %v5867_v23 = vadd.f32 1.0, %v5866_v63  ;;  %vm5870_vm9 = vcmp.lt.f32.partialorder %v5869_v41, 0.0004427343 }
 0x63e   : > { %7865 = vlog2.f32 %v5872_v59  ;;  %v5876_v17 = vadd.f32 1.0, %v5875_v21  ;;  %vm5879_vm11 = vcmp.lt.f32.partialorder %v5878_v58, 0.0004427343 }
 0x63f   : > { %7867 = vrcp.f32 %v5951_v55  ;;  %v5868_v25 = vmul.f32 %v7860_v44, %v5867_v23 }
 0x640   : > { %7869 = vrcp.f32 %v5952_v53  ;;  %v5877_v4 = vmul.f32 %v7862_v40, %v5876_v17 }
 0x647   : > { %v7864_v50 = vpop.eup %7863 }
 0x648   : > { %v7866_v56 = vpop.eup %7865  ;;  %v5865_v39 = vmul.f32 0.6931472, %v7864_v50 }
 0x649   : > { %v5874_v31 = vmul.f32 0.6931472, %v7866_v56  ;;  %v7868_v48 = vpop.eup %7867 }
 0x64a   : > { %v5871_v33 = vsel %vm5870_vm9, %v5868_v25, %v5865_v39  ;;  %v7870_v8 = vpop.eup %7869 }
 0x64b   : > { %v5919_v3 = vsel %vm5815_vm10, %v5722_v46, %v5871_v33  ;;  %v5880_v36 = vsel %vm5879_vm11, %v5877_v4, %v5874_v31 }
 0x64c   : > { %v5975_v11 = vsel %vm5812_vm4, %v5919_v3, %v7868_v48  ;;  %v5920_v13 = vsel %vm5816_vm12, %v5724_v30, %v5880_v36 }
 0x64d   : > { %5983 = vst [vmem:[%s9268_s30 + $0x10] sm:$0xff] %v5975_v11  ;;  %v5976_v51 = vsel %vm5812_vm4, %v5920_v13, %v7870_v8 }
 0x64e   : > { %5984 = vst [vmem:[%s9268_s30 + $0x18] sm:$0xff] %v5976_v51 }
 0x669   : > { %v5762_v26 = vpop.f32.mrb[8].mxu1 }
 0x66a   : > { %v5763_v43 = vadd.f32 %v5762_v26, %v9256_v29  ;;  %v5764_v28 = vpop.f32.mrb[9].mxu1 }
 0x66b   : > { %v5765_v14 = vadd.f32 %v5764_v28, %v9256_v29  ;;  %v5766_v16 = vpop.f32.mrb[10].mxu1 }
 0x66c   : > { %v5825_v45 = vmin.f32 %v5763_v43, 20.0  ;;  %v6378_v7 = vmul.f32 -1.442695, %v5763_v43  ;;  %v5767_v60 = vpop.f32.mrb[11].mxu1  ;;  %vm5817_vm14 = vcmp.gt.f32.partialorder %v5763_v43, 20.0 }
 0x66d   : > { %v5826_v62 = vmin.f32 %v5765_v14, 20.0  ;;  %v6379_v6 = vmul.f32 -1.442695, %v5765_v14  ;;  %vm5818_vm0 = vcmp.gt.f32.partialorder %v5765_v14, 20.0 }
 0x66e   : > { %v5837_v12 = vmul.f32 1.442695, %v5825_v45  ;;  %7871 = vpow2.f32 %v6378_v7 }
 0x66f   : > { %v5839_v24 = vmul.f32 1.442695, %v5826_v62  ;;  %7873 = vpow2.f32 %v6379_v6 }
 0x670   : > { %7875 = vpow2.f32 %v5837_v12 }
 0x671   : > { %7877 = vpow2.f32 %v5839_v24 }
 0x678   : > { %v7872_v0 = vpop.eup %7871 }
 0x679   : > { %v7874_v49 = vpop.eup %7873  ;;  %v5953_v19 = vadd.f32 1.0, %v7872_v0 }
 0x67a   : > { %v7876_v15 = vpop.eup %7875  ;;  %v5954_v18 = vadd.f32 1.0, %v7874_v49 }
 0x67b   : > { %v7878_v5 = vpop.eup %7877  ;;  %v5881_v20 = vadd.f32 1.0, %v7876_v15  ;;  %v5884_v32 = vmul.f32 -0.5, %v7876_v15  ;;  %v5887_v46 = vand.u32 2147483647, %v7876_v15 }
 0x67c   : > { %v5890_v35 = vadd.f32 1.0, %v7878_v5  ;;  %v5893_v1 = vmul.f32 -0.5, %v7878_v5  ;;  %v5896_v30 = vand.u32 2147483647, %v7878_v5 }
 0x67d   : > { %7879 = vlog2.f32 %v5881_v20  ;;  %v5885_v54 = vadd.f32 1.0, %v5884_v32  ;;  %vm5888_vm13 = vcmp.lt.f32.partialorder %v5887_v46, 0.0004427343 }
 0x67e   : > { %7881 = vlog2.f32 %v5890_v35  ;;  %v5894_v22 = vadd.f32 1.0, %v5893_v1  ;;  %vm5897_vm15 = vcmp.lt.f32.partialorder %v5896_v30, 0.0004427343 }
 0x67f   : > { %7883 = vrcp.f32 %v5953_v19  ;;  %v5886_v57 = vmul.f32 %v7876_v15, %v5885_v54 }
 0x680   : > { %7885 = vrcp.f32 %v5954_v18  ;;  %v5895_v42 = vmul.f32 %v7878_v5, %v5894_v22 }
 0x687   : > { %v7880_v61 = vpop.eup %7879 }
 0x688   : > { %v7882_v10 = vpop.eup %7881  ;;  %v5883_v27 = vmul.f32 0.6931472, %v7880_v61 }
 0x689   : > { %v5892_v38 = vmul.f32 0.6931472, %v7882_v10  ;;  %v7884_v47 = vpop.eup %7883 }
 0x68a   : > { %v5889_v2 = vsel %vm5888_vm13, %v5886_v57, %v5883_v27  ;;  %v7886_v44 = vpop.eup %7885 }
 0x68b   : > { %v5921_v52 = vsel %vm5817_vm14, %v5763_v43, %v5889_v2  ;;  %v5898_v9 = vsel %vm5897_vm15, %v5895_v42, %v5892_v38 }
 0x68c   : > { %v5977_v40 = vsel %vm5812_vm4, %v5921_v52, %v7884_v47  ;;  %v5922_v34 = vsel %vm5818_vm0, %v5765_v14, %v5898_v9 }
 0x68d   : > { %5985 = vst [vmem:[%s9268_s30 + $0x20] sm:$0xff] %v5977_v40  ;;  %v5978_v59 = vsel %vm5812_vm4, %v5922_v34, %v7886_v44 }
 0x68e   : > { %5986 = vst [vmem:[%s9268_s30 + $0x28] sm:$0xff] %v5978_v59 }
 0x6a9   : > { %v5803_v55 = vpop.f32.mrb[12].mxu1 }
 0x6aa   : > { %v5804_v53 = vadd.f32 %v5803_v55, %v9256_v29  ;;  %v5805_v63 = vpop.f32.mrb[13].mxu1 }
 0x6ab   : > { %v5806_v21 = vadd.f32 %v5805_v63, %v9256_v29  ;;  %v5807_v23 = vpop.f32.mrb[14].mxu1 }
 0x6ac   : > { %v5827_v41 = vmin.f32 %v5804_v53, 20.0  ;;  %v6380_v17 = vmul.f32 -1.442695, %v5804_v53  ;;  %v5808_v58 = vpop.f32.mrb[15].mxu1  ;;  %vm5819_vm2 = vcmp.gt.f32.partialorder %v5804_v53, 20.0 }
 0x6ad   : > { %v5828_v50 = vmin.f32 %v5806_v21, 20.0  ;;  %v6381_v56 = vmul.f32 -1.442695, %v5806_v21  ;;  %vm5820_vm5 = vcmp.gt.f32.partialorder %v5806_v21, 20.0 }
 0x6ae   : > { %v5841_v39 = vmul.f32 1.442695, %v5827_v41  ;;  %7887 = vpow2.f32 %v6380_v17 }
 0x6af   : > { %v5843_v25 = vmul.f32 1.442695, %v5828_v50  ;;  %7889 = vpow2.f32 %v6381_v56 }
 0x6b0   : > { %7891 = vpow2.f32 %v5841_v39 }
 0x6b1   : > { %7893 = vpow2.f32 %v5843_v25 }
 0x6b8   : > { %v7888_v31 = vpop.eup %7887 }
 0x6b9   : > { %v7890_v4 = vpop.eup %7889  ;;  %v5955_v29 = vadd.f32 1.0, %v7888_v31 }
 0x6ba   : > { %v7892_v33 = vpop.eup %7891  ;;  %v5956_v8 = vadd.f32 1.0, %v7890_v4 }
 0x6bb   : > { %v7894_v48 = vpop.eup %7893  ;;  %v5899_v3 = vadd.f32 1.0, %v7892_v33  ;;  %v5902_v11 = vmul.f32 -0.5, %v7892_v33  ;;  %v5905_v26 = vand.u32 2147483647, %v7892_v33 }
 0x6bc   : > { %v5908_v36 = vadd.f32 1.0, %v7894_v48  ;;  %v5911_v13 = vmul.f32 -0.5, %v7894_v48  ;;  %v5914_v28 = vand.u32 2147483647, %v7894_v48 }
 0x6bd   : > { %7895 = vlog2.f32 %v5899_v3  ;;  %v5903_v51 = vadd.f32 1.0, %v5902_v11  ;;  %vm5906_vm1 = vcmp.lt.f32.partialorder %v5905_v26, 0.0004427343 }
 0x6be   : > { %7897 = vlog2.f32 %v5908_v36  ;;  %v5912_v43 = vadd.f32 1.0, %v5911_v13  ;;  %vm5915_vm3 = vcmp.lt.f32.partialorder %v5914_v28, 0.0004427343 }
 0x6bf   : > { %7899 = vrcp.f32 %v5955_v29  ;;  %v5904_v7 = vmul.f32 %v7892_v33, %v5903_v51 }
 0x6c0   : > { %7901 = vrcp.f32 %v5956_v8  ;;  %v5913_v62 = vmul.f32 %v7894_v48, %v5912_v43 }
 0x6c7   : > { %v7896_v14 = vpop.eup %7895 }
 0x6c8   : > { %v7898_v16 = vpop.eup %7897  ;;  %v5901_v45 = vmul.f32 0.6931472, %v7896_v14 }
 0x6c9   : > { %v5910_v60 = vmul.f32 0.6931472, %v7898_v16  ;;  %v7900_v12 = vpop.eup %7899 }
 0x6ca   : > { %v5907_v6 = vsel %vm5906_vm1, %v5904_v7, %v5901_v45  ;;  %v7902_v49 = vpop.eup %7901 }
 0x6cb   : > { %v5923_v24 = vsel %vm5819_vm2, %v5804_v53, %v5907_v6  ;;  %v5916_v0 = vsel %vm5915_vm3, %v5913_v62, %v5910_v60 }
 0x6cc   : > { %v5979_v15 = vsel %vm5812_vm4, %v5923_v24, %v7900_v12  ;;  %v5924_v5 = vsel %vm5820_vm5, %v5806_v21, %v5916_v0 }
 0x6cd   : > { %5987 = vst [vmem:[%s9268_s30 + $0x30] sm:$0xff] %v5979_v15  ;;  %v5980_v20 = vsel %vm5812_vm4, %v5924_v5, %v7902_v49 }
 0x6ce   : > { %5988 = vst [vmem:[%s9268_s30 + $0x38] sm:$0xff] %v5980_v20 }
 0x6cf   : > { %7921 = shalt.err (!%p7918_p3)
}
 0x6d0   : > { %s7922_s20 = scalar_lea.hbm %s9299_s29, 1024  ;;  %s7926_s22 = scalar_lea.hbm %s9360_s13, 2048 }
 0x6d1   : > { %p7923_p4 = scmp.ne.s32.totalorder %s9299_s29, %s7922_s20  ;;  %p7927_p9 = scmp.lt.u32.totalorder %s9299_s29, %s9360_s13 }
 0x6d2   : > { %p7928_p10 = scmp.lt.u32.totalorder %s7926_s22, %s7922_s20  ;;  %p7930_p12 = scmp.lt.u32.totalorder %s7922_s20, %s9299_s29 }
 0x6d3   : > { %p7924_p7 = pnand %p7923_p4, %p8082_p5 }
 0x6d4   : > { %p7929_p11 = por %p7928_p10, %p7927_p9 }
 0x6d5   : > { %p7925_p8 = pneg %p7924_p7 }
 0x6d6   : > { %p7931_p13 = por %p7930_p12, %p7929_p11 }
 0x6d8   : > { %p7932_p0 = pnand %p7931_p13, %p7925_p8 }
 0x6da   : > { %7935 = shalt.err (!%p7932_p0)
}
 0x6db   : > { %7640 = dma.vmem_to_hbm [thread:$0]  (%p8082_p5), %s9301_s23, 1024, %s9299_s29, %s5990_s16  }
 0x6dc PF: > { %p7646_p1 = scmp.ge.s32.totalorder %s7970_s28, 2  ;;  %s6016_s0 = sand.u32 1, %s7958_s25  }
 0x6dd   : > { %s6017_s1 = scalar_lea.sflag [#allocation3], %s6016_s0 }
 0x6de   : > { %p7643_p2 = pnand %p7646_p1, %p8086_p6 }
 0x6e0   : > { %7953 = dma.done.wait (!%p7643_p2), %s6017_s1, 1024  }
 0x6e1   : > { %7955 = vsyncadd (!%p7643_p2), %s6017_s1, 4294966272  ;;  %p23_p3 = scmp.ge.s32.totalorder %s8069_s14, 4   ;;  %s9367_s25 = smov %s7962_s26 }
 0x6e2   : > { %s9368_s26 = smov %s7966_s27  ;;  %s9369_s27 = smov %s8080_s17 }
 0x6e3   : > { %s9370_s28 = smov %s8069_s14  ;;  %25 = sbr.rel (!%p23_p3) target bundleno = 6 (0x6), region = 110 }
 0x6ea   :  { %6022 = vsyncpa [#allocation3], 1 }
 0x6eb   :  { %6024 = vsyncpa [#allocation3 + $0x1], 1 }

</bundles_post_ra>
